<compile_context>
chip_gen: v7x
topology: tpu7x:2x2x1
jax: 0.10.0
libtpu: 0.0.40
codegen_flags: <defaults>
</compile_context>

<pallas_src>
import numpy as np
import jax
import jax.numpy as jnp
from jax.experimental import pallas as pl
from jax.experimental.pallas import tpu as pltpu

# ------------------------------ hyper-parameters -------------------------------
N = 2        # batch
C = 32       # channels == out_channels  (skip_connection = Identity)
H = 8
W = 8
E = 16       # emb_channels
GROUPS = 32  # normalization() == GroupNorm(32, C); GROUPS == C -> per-channel
EPS = 1e-5   # torch GroupNorm default

HW = H * W                  # 64
NHW = N * H * W             # 128
K_IM2COL = 9 * C            # 288
EMB_PAD = 8                 # emb rows padded to one full sublane tile

assert H & (H - 1) == 0 and W & (W - 1) == 0, "H, W must be powers of two"
LOG2_W = W.bit_length() - 1


def _silu(z):
    # z * sigmoid(z); sigmoid via the EUP tanh path (no VALU divide, no overflow).
    return z * (0.5 * jnp.tanh(0.5 * z) + 0.5)


# -------------------------------- fused kernel ---------------------------------
def _resblock_kernel(x_ref, emb_ref, vecs_ref, w_ref, we_ref, out_ref, col_ref):
    x = x_ref[...]                                  # (NHW, C) f32, NHWC-flattened
    vecs = vecs_ref[...]                            # (8, C) packed parameter rows
    g1, bt1 = vecs[0:1], vecs[1:2]                  # GroupNorm1 gamma / beta
    cb1 = vecs[2:3]                                 # conv1 bias
    be = vecs[3:4]                                  # emb linear bias
    g2, bt2 = vecs[4:5], vecs[5:6]                  # GroupNorm2 gamma / beta
    cb2 = vecs[6:7]                                 # conv2 bias

    # Static per-tap (shift, border-mask) table, shared by both convolutions.
    rr = jax.lax.broadcasted_iota(jnp.int32, (NHW, C), 0)
    y_idx = jnp.bitwise_and(jnp.right_shift(rr, LOG2_W), H - 1)
    x_idx = jnp.bitwise_and(rr, W - 1)
    taps = []
    for kh in range(3):
        for kw in range(3):
            dy, dx = kh - 1, kw - 1
            conds = []
            if dy == 1:
                conds.append(y_idx < H - 1)
            elif dy == -1:
                conds.append(y_idx >= 1)
            if dx == 1:
                conds.append(x_idx < W - 1)
            elif dx == -1:
                conds.append(x_idx >= 1)
            mask = None
            for cnd in conds:
                mask = cnd if mask is None else (mask & cnd)
            shift = (-(dy * W + dx)) % NHW          # roll so row r sees row r+dy*W+dx
            taps.append((shift, mask))

    def gnorm(h, gamma, beta):
        # GroupNorm(GROUPS, C) with GROUPS == C: per-(sample, channel) stats over
        # H*W, done as a single-axis sublane reduction in one pass over the data.
        h3 = h.reshape(N, HW, C)
        s1 = jnp.sum(h3, axis=1, keepdims=True)                 # (N,1,C)
        s2 = jnp.sum(h3 * h3, axis=1, keepdims=True)            # (N,1,C)
        mean = s1 * (1.0 / HW)
        var = s2 * (1.0 / HW) - mean * mean
        inv = jax.lax.rsqrt(var + EPS)
        hn = (h3 - mean) * inv
        hn = hn * gamma.reshape(1, 1, C) + beta.reshape(1, 1, C)
        return hn.reshape(NHW, C)

    def conv3x3(h, w_mat, bias):
        # 3x3 SAME conv as ONE im2col matmul: 9 rolled + masked taps -> (NHW, 9C)
        # scratch, then a single (128,288) @ (288,32) MXU push (K = 288).
        # Every column is rewritten each call, so no zero-init is needed.
        for t, (shift, mask) in enumerate(taps):
            tap = h if shift == 0 else pltpu.roll(h, shift, axis=0)
            if mask is not None:
                tap = jnp.where(mask, tap, 0.0)
            col_ref[:, t * C:(t + 1) * C] = tap
        out = jnp.dot(col_ref[...], w_mat, preferred_element_type=jnp.float32)
        return out + bias                                        # (NHW, C) + (1, C)

    # in_layers: GroupNorm -> SiLU -> Conv3x3
    h = conv3x3(_silu(gnorm(x, g1, bt1)), w_ref[0], cb1)

    # emb_layers: SiLU -> Linear  (emb zero-padded to 8 rows by the wrapper,
    # weight pre-transposed to (E, C))
    e = jnp.dot(_silu(emb_ref[...]), we_ref[...],
                preferred_element_type=jnp.float32) + be         # (8, C)
    e_full = jnp.concatenate(
        [jnp.broadcast_to(e[n:n + 1, :], (HW, C)) for n in range(N)], axis=0)
    h = h + e_full

    # out_layers: GroupNorm -> SiLU -> Dropout(eval: identity) -> Conv3x3
    h = conv3x3(_silu(gnorm(h, g2, bt2)), w_ref[1], cb2)

    # skip_connection = Identity (out_channels == channels)
    out_ref[...] = x + h


# ----------------------------------- wrapper ------------------------------------
def resblock_forward(x_nchw, emb, params):
    n, c, hh, ww = x_nchw.shape
    assert (n, c, hh, ww) == (N, C, H, W) and GROUPS == C

    # Layout plumbing at trace time: NCHW -> NHWC -> (NHW, C); conv weights
    # OIHW -> (kh, kw, cin, cout) -> (9*Cin, Cout) tap-major; emb weight -> (E, C).
    x_flat = jnp.transpose(x_nchw, (0, 2, 3, 1)).reshape(NHW, C)

    def conv_w(wt):
        return jnp.transpose(wt, (2, 3, 1, 0)).reshape(K_IM2COL, C)

    w_stack = jnp.stack([conv_w(params["w1"]), conv_w(params["w2"])])    # (2,288,32)
    we = jnp.transpose(params["w_emb"], (1, 0))                          # (E, C)

    # Pack the seven (C,) vectors into one (8, C) input (one DMA instead of 7).
    vecs = jnp.stack([params["gn1_g"], params["gn1_b"], params["b1"],
                      params["b_emb"], params["gn2_g"], params["gn2_b"],
                      params["b2"], jnp.zeros((C,), jnp.float32)])       # (8, C)

    emb_pad = jnp.zeros((EMB_PAD, E), jnp.float32).at[:N].set(emb)       # (8, E)

    vspec = lambda: pl.BlockSpec(memory_space=pltpu.MemorySpace.VMEM)

    out_flat = pl.pallas_call(
        _resblock_kernel,
        out_shape=jax.ShapeDtypeStruct((NHW, C), jnp.float32),
        in_specs=[vspec() for _ in range(5)],
        out_specs=vspec(),
        scratch_shapes=[pltpu.VMEM((NHW, K_IM2COL), jnp.float32)],       # im2col
    )(x_flat, emb_pad, vecs, w_stack, we)

    return jnp.transpose(out_flat.reshape(N, H, W, C), (0, 3, 1, 2))     # NCHW


# -------------------------- deterministic parameter init ------------------------
def make_params(key):
    ks = jax.random.split(key, 12)
    conv_std = (C * 9) ** -0.5
    lin_std = E ** -0.5
    return {
        "gn1_g": 1.0 + 0.1 * jax.random.normal(ks[0], (C,), jnp.float32),
        "gn1_b": 0.1 * jax.random.normal(ks[1], (C,), jnp.float32),
        "w1":   conv_std * jax.random.normal(ks[2], (C, C, 3, 3), jnp.float32),
        "b1":   0.05 * jax.random.normal(ks[3], (C,), jnp.float32),
        "w_emb": lin_std * jax.random.normal(ks[4], (C, E), jnp.float32),
        "b_emb": 0.05 * jax.random.normal(ks[5], (C,), jnp.float32),
        "gn2_g": 1.0 + 0.1 * jax.random.normal(ks[6], (C,), jnp.float32),
        "gn2_b": 0.1 * jax.random.normal(ks[7], (C,), jnp.float32),
        "w2":   conv_std * jax.random.normal(ks[8], (C, C, 3, 3), jnp.float32),
        "b2":   0.05 * jax.random.normal(ks[9], (C,), jnp.float32),
    }


# -------------------------------- pure-JAX reference -----------------------------
def _ref_silu(z):
    return z * jax.nn.sigmoid(z)


def _ref_groupnorm(h, gamma, beta):
    n, c, hh, ww = h.shape
    hg = h.reshape(n, GROUPS, c // GROUPS, hh, ww)
    mean = jnp.mean(hg, axis=(2, 3, 4), keepdims=True)
    d = hg - mean
    var = jnp.mean(d * d, axis=(2, 3, 4), keepdims=True)
    hg = d * jax.lax.rsqrt(var + EPS)
    h = hg.reshape(n, c, hh, ww)
    return h * gamma[None, :, None, None] + beta[None, :, None, None]


def _ref_conv3x3(h, w, b):
    out = jax.lax.conv_general_dilated(
        h, w, window_strides=(1, 1), padding=((1, 1), (1, 1)),
        dimension_numbers=("NCHW", "OIHW", "NCHW"))
    return out + b[None, :, None, None]


def ref_resblock(x, emb, p):
    h = _ref_conv3x3(_ref_silu(_ref_groupnorm(x, p["gn1_g"], p["gn1_b"])),
                     p["w1"], p["b1"])
    e = _ref_silu(emb) @ p["w_emb"].T + p["b_emb"]
    h = h + e[:, :, None, None]
    h = _ref_conv3x3(_ref_silu(_ref_groupnorm(h, p["gn2_g"], p["gn2_b"])),
                     p["w2"], p["b2"])
    return x + h                                              # skip = Identity


if __name__ == "__main__":
    key = jax.random.PRNGKey(0)
    kp, kx, ke = jax.random.split(key, 3)
    params = make_params(kp)
    x = jax.random.normal(kx, (N, C, H, W), jnp.float32)
    emb = jax.random.normal(ke, (N, E), jnp.float32)

    out = jax.jit(resblock_forward)(x, emb, params)
    out = jax.block_until_ready(out)

    ref = ref_resblock(x, emb, params)
    np.testing.assert_allclose(np.asarray(out), np.asarray(ref),
                               atol=1e-4, rtol=1e-4)
    print("KERNEL_OK")
</pallas_src>

<mosaic_0001>
module attributes {stable_mosaic.version = 11 : i64} {
  func.func @_resblock_kernel(%arg0: memref<128x32xf32, #tpu.memory_space<vmem>>, %arg1: memref<8x16xf32, #tpu.memory_space<vmem>>, %arg2: memref<8x32xf32, #tpu.memory_space<vmem>>, %arg3: memref<2x288x32xf32, #tpu.memory_space<vmem>>, %arg4: memref<16x32xf32, #tpu.memory_space<vmem>>, %arg5: memref<128x32xf32, #tpu.memory_space<vmem>>, %arg6: memref<128x288xf32, #tpu.memory_space<vmem>>) attributes {dimension_semantics = [], scalar_prefetch = 0 : i64, scratch_operands = 1 : i64, tpu.core_type = #tpu.core_type<tc>} {
    %c0 = arith.constant 0 : index
    %c0_0 = arith.constant 0 : index
    %0 = vector.load %arg0[%c0, %c0_0] : memref<128x32xf32, #tpu.memory_space<vmem>>, vector<128x32xf32>
    %c0_1 = arith.constant 0 : index
    %c0_2 = arith.constant 0 : index
    %1 = vector.load %arg2[%c0_1, %c0_2] : memref<8x32xf32, #tpu.memory_space<vmem>>, vector<8x32xf32>
    %2 = vector.extract_strided_slice %1 {offsets = [0, 0], sizes = [1, 32], strides = [1, 1]} : vector<8x32xf32> to vector<1x32xf32>
    %3 = vector.extract_strided_slice %1 {offsets = [1, 0], sizes = [1, 32], strides = [1, 1]} : vector<8x32xf32> to vector<1x32xf32>
    %4 = vector.extract_strided_slice %1 {offsets = [2, 0], sizes = [1, 32], strides = [1, 1]} : vector<8x32xf32> to vector<1x32xf32>
    %5 = vector.extract_strided_slice %1 {offsets = [3, 0], sizes = [1, 32], strides = [1, 1]} : vector<8x32xf32> to vector<1x32xf32>
    %6 = vector.extract_strided_slice %1 {offsets = [4, 0], sizes = [1, 32], strides = [1, 1]} : vector<8x32xf32> to vector<1x32xf32>
    %7 = vector.extract_strided_slice %1 {offsets = [5, 0], sizes = [1, 32], strides = [1, 1]} : vector<8x32xf32> to vector<1x32xf32>
    %8 = vector.extract_strided_slice %1 {offsets = [6, 0], sizes = [1, 32], strides = [1, 1]} : vector<8x32xf32> to vector<1x32xf32>
    %9 = tpu.iota {dimensions = array<i32: 0>} : vector<128x32xi32>
    %c3_i32 = arith.constant 3 : i32
    %10 = vector.broadcast %c3_i32 : i32 to vector<128x32xi32>
    %11 = arith.shrsi %9, %10 : vector<128x32xi32>
    %c7_i32 = arith.constant 7 : i32
    %12 = vector.broadcast %c7_i32 : i32 to vector<128x32xi32>
    %13 = arith.andi %11, %12 : vector<128x32xi32>
    %c7_i32_3 = arith.constant 7 : i32
    %14 = vector.broadcast %c7_i32_3 : i32 to vector<128x32xi32>
    %15 = arith.andi %9, %14 : vector<128x32xi32>
    %c1_i32 = arith.constant 1 : i32
    %16 = vector.broadcast %c1_i32 : i32 to vector<128x32xi32>
    %17 = arith.cmpi sge, %13, %16 : vector<128x32xi32>
    %c1_i32_4 = arith.constant 1 : i32
    %18 = vector.broadcast %c1_i32_4 : i32 to vector<128x32xi32>
    %19 = arith.cmpi sge, %15, %18 : vector<128x32xi32>
    %20 = arith.andi %17, %19 : vector<128x32xi1>
    %c1_i32_5 = arith.constant 1 : i32
    %21 = vector.broadcast %c1_i32_5 : i32 to vector<128x32xi32>
    %22 = arith.cmpi sge, %13, %21 : vector<128x32xi32>
    %c1_i32_6 = arith.constant 1 : i32
    %23 = vector.broadcast %c1_i32_6 : i32 to vector<128x32xi32>
    %24 = arith.cmpi sge, %13, %23 : vector<128x32xi32>
    %c7_i32_7 = arith.constant 7 : i32
    %25 = vector.broadcast %c7_i32_7 : i32 to vector<128x32xi32>
    %26 = arith.cmpi slt, %15, %25 : vector<128x32xi32>
    %27 = arith.andi %24, %26 : vector<128x32xi1>
    %c1_i32_8 = arith.constant 1 : i32
    %28 = vector.broadcast %c1_i32_8 : i32 to vector<128x32xi32>
    %29 = arith.cmpi sge, %15, %28 : vector<128x32xi32>
    %c7_i32_9 = arith.constant 7 : i32
    %30 = vector.broadcast %c7_i32_9 : i32 to vector<128x32xi32>
    %31 = arith.cmpi slt, %15, %30 : vector<128x32xi32>
    %c7_i32_10 = arith.constant 7 : i32
    %32 = vector.broadcast %c7_i32_10 : i32 to vector<128x32xi32>
    %33 = arith.cmpi slt, %13, %32 : vector<128x32xi32>
    %c1_i32_11 = arith.constant 1 : i32
    %34 = vector.broadcast %c1_i32_11 : i32 to vector<128x32xi32>
    %35 = arith.cmpi sge, %15, %34 : vector<128x32xi32>
    %36 = arith.andi %33, %35 : vector<128x32xi1>
    %c7_i32_12 = arith.constant 7 : i32
    %37 = vector.broadcast %c7_i32_12 : i32 to vector<128x32xi32>
    %38 = arith.cmpi slt, %13, %37 : vector<128x32xi32>
    %c7_i32_13 = arith.constant 7 : i32
    %39 = vector.broadcast %c7_i32_13 : i32 to vector<128x32xi32>
    %40 = arith.cmpi slt, %13, %39 : vector<128x32xi32>
    %c7_i32_14 = arith.constant 7 : i32
    %41 = vector.broadcast %c7_i32_14 : i32 to vector<128x32xi32>
    %42 = arith.cmpi slt, %15, %41 : vector<128x32xi32>
    %43 = arith.andi %40, %42 : vector<128x32xi1>
    %44 = vector.shape_cast %0 : vector<128x32xf32> to vector<2x64x32xf32>
    %cst = arith.constant dense<0.000000e+00> : vector<2x32xf32>
    %45 = vector.multi_reduction <add>, %44, %cst [1] : vector<2x64x32xf32> to vector<2x32xf32>
    %46 = vector.shape_cast %45 : vector<2x32xf32> to vector<2x1x32xf32>
    %47 = arith.mulf %44, %44 : vector<2x64x32xf32>
    %cst_15 = arith.constant dense<0.000000e+00> : vector<2x32xf32>
    %48 = vector.multi_reduction <add>, %47, %cst_15 [1] : vector<2x64x32xf32> to vector<2x32xf32>
    %49 = vector.shape_cast %48 : vector<2x32xf32> to vector<2x1x32xf32>
    %cst_16 = arith.constant 1.562500e-02 : f32
    %50 = vector.broadcast %cst_16 : f32 to vector<2x1x32xf32>
    %51 = arith.mulf %46, %50 : vector<2x1x32xf32>
    %cst_17 = arith.constant 1.562500e-02 : f32
    %52 = vector.broadcast %cst_17 : f32 to vector<2x1x32xf32>
    %53 = arith.mulf %49, %52 : vector<2x1x32xf32>
    %54 = arith.mulf %51, %51 : vector<2x1x32xf32>
    %55 = arith.subf %53, %54 : vector<2x1x32xf32>
    %cst_18 = arith.constant 9.99999974E-6 : f32
    %56 = vector.broadcast %cst_18 : f32 to vector<2x1x32xf32>
    %57 = arith.addf %55, %56 : vector<2x1x32xf32>
    %58 = math.rsqrt %57 : vector<2x1x32xf32>
    %59 = vector.broadcast %51 : vector<2x1x32xf32> to vector<2x64x32xf32>
    %60 = arith.subf %44, %59 : vector<2x64x32xf32>
    %61 = vector.broadcast %58 : vector<2x1x32xf32> to vector<2x64x32xf32>
    %62 = arith.mulf %60, %61 : vector<2x64x32xf32>
    %63 = vector.shape_cast %2 : vector<1x32xf32> to vector<1x1x32xf32>
    %64 = vector.broadcast %63 : vector<1x1x32xf32> to vector<2x64x32xf32>
    %65 = arith.mulf %62, %64 : vector<2x64x32xf32>
    %66 = vector.shape_cast %3 : vector<1x32xf32> to vector<1x1x32xf32>
    %67 = vector.broadcast %66 : vector<1x1x32xf32> to vector<2x64x32xf32>
    %68 = arith.addf %65, %67 : vector<2x64x32xf32>
    %69 = vector.shape_cast %68 : vector<2x64x32xf32> to vector<128x32xf32>
    %cst_19 = arith.constant 5.000000e-01 : f32
    %70 = vector.broadcast %cst_19 : f32 to vector<128x32xf32>
    %71 = arith.mulf %70, %69 : vector<128x32xf32>
    %72 = math.tanh %71 : vector<128x32xf32>
    %cst_20 = arith.constant 5.000000e-01 : f32
    %73 = vector.broadcast %cst_20 : f32 to vector<128x32xf32>
    %74 = arith.mulf %73, %72 : vector<128x32xf32>
    %cst_21 = arith.constant 5.000000e-01 : f32
    %75 = vector.broadcast %cst_21 : f32 to vector<128x32xf32>
    %76 = arith.addf %74, %75 : vector<128x32xf32>
    %77 = arith.mulf %69, %76 : vector<128x32xf32>
    %c0_22 = arith.constant 0 : index
    %c0_23 = arith.constant 0 : index
    %c0_24 = arith.constant 0 : index
    %78 = vector.load %arg3[%c0_22, %c0_23, %c0_24] : memref<2x288x32xf32, #tpu.memory_space<vmem>>, vector<1x288x32xf32>
    %79 = vector.shape_cast %78 : vector<1x288x32xf32> to vector<288x32xf32>
    %c9_i32 = arith.constant 9 : i32
    %80 = tpu.dynamic_rotate %77 by %c9_i32 dim 0 : vector<128x32xf32>, i32 -> vector<128x32xf32>
    %cst_25 = arith.constant 0.000000e+00 : f32
    %81 = vector.broadcast %cst_25 : f32 to vector<128x32xf32>
    %82 = arith.select %20, %80, %81 : vector<128x32xi1>, vector<128x32xf32>
    %c0_26 = arith.constant 0 : index
    %c0_27 = arith.constant 0 : index
    %83 = vector.load %arg6[%c0_26, %c0_27] : memref<128x288xf32, #tpu.memory_space<vmem>>, vector<128x32xf32>
    tpu.vector_store %arg6[%c0_26, %c0_27], %82 {strides = array<i32>} : memref<128x288xf32, #tpu.memory_space<vmem>>, vector<128x32xf32>,
    %c8_i32 = arith.constant 8 : i32
    %84 = tpu.dynamic_rotate %77 by %c8_i32 dim 0 : vector<128x32xf32>, i32 -> vector<128x32xf32>
    %cst_28 = arith.constant 0.000000e+00 : f32
    %85 = vector.broadcast %cst_28 : f32 to vector<128x32xf32>
    %86 = arith.select %22, %84, %85 : vector<128x32xi1>, vector<128x32xf32>
    %c0_29 = arith.constant 0 : index
    %c32 = arith.constant 32 : index
    %87 = vector.load %arg6[%c0_29, %c32] : memref<128x288xf32, #tpu.memory_space<vmem>>, vector<128x32xf32>
    tpu.vector_store %arg6[%c0_29, %c32], %86 {strides = array<i32>} : memref<128x288xf32, #tpu.memory_space<vmem>>, vector<128x32xf32>,
    %c7_i32_30 = arith.constant 7 : i32
    %88 = tpu.dynamic_rotate %77 by %c7_i32_30 dim 0 : vector<128x32xf32>, i32 -> vector<128x32xf32>
    %cst_31 = arith.constant 0.000000e+00 : f32
    %89 = vector.broadcast %cst_31 : f32 to vector<128x32xf32>
    %90 = arith.select %27, %88, %89 : vector<128x32xi1>, vector<128x32xf32>
    %c0_32 = arith.constant 0 : index
    %c64 = arith.constant 64 : index
    %91 = vector.load %arg6[%c0_32, %c64] : memref<128x288xf32, #tpu.memory_space<vmem>>, vector<128x32xf32>
    tpu.vector_store %arg6[%c0_32, %c64], %90 {strides = array<i32>} : memref<128x288xf32, #tpu.memory_space<vmem>>, vector<128x32xf32>,
    %c1_i32_33 = arith.constant 1 : i32
    %92 = tpu.dynamic_rotate %77 by %c1_i32_33 dim 0 : vector<128x32xf32>, i32 -> vector<128x32xf32>
    %cst_34 = arith.constant 0.000000e+00 : f32
    %93 = vector.broadcast %cst_34 : f32 to vector<128x32xf32>
    %94 = arith.select %29, %92, %93 : vector<128x32xi1>, vector<128x32xf32>
    %c0_35 = arith.constant 0 : index
    %c96 = arith.constant 96 : index
    %95 = vector.load %arg6[%c0_35, %c96] : memref<128x288xf32, #tpu.memory_space<vmem>>, vector<128x32xf32>
    tpu.vector_store %arg6[%c0_35, %c96], %94 {strides = array<i32>} : memref<128x288xf32, #tpu.memory_space<vmem>>, vector<128x32xf32>,
    %c0_36 = arith.constant 0 : index
    %c128 = arith.constant 128 : index
    %96 = vector.load %arg6[%c0_36, %c128] : memref<128x288xf32, #tpu.memory_space<vmem>>, vector<128x32xf32>
    tpu.vector_store %arg6[%c0_36, %c128], %77 {strides = array<i32>} : memref<128x288xf32, #tpu.memory_space<vmem>>, vector<128x32xf32>,
    %c127_i32 = arith.constant 127 : i32
    %97 = tpu.dynamic_rotate %77 by %c127_i32 dim 0 : vector<128x32xf32>, i32 -> vector<128x32xf32>
    %cst_37 = arith.constant 0.000000e+00 : f32
    %98 = vector.broadcast %cst_37 : f32 to vector<128x32xf32>
    %99 = arith.select %31, %97, %98 : vector<128x32xi1>, vector<128x32xf32>
    %c0_38 = arith.constant 0 : index
    %c160 = arith.constant 160 : index
    %100 = vector.load %arg6[%c0_38, %c160] : memref<128x288xf32, #tpu.memory_space<vmem>>, vector<128x32xf32>
    tpu.vector_store %arg6[%c0_38, %c160], %99 {strides = array<i32>} : memref<128x288xf32, #tpu.memory_space<vmem>>, vector<128x32xf32>,
    %c121_i32 = arith.constant 121 : i32
    %101 = tpu.dynamic_rotate %77 by %c121_i32 dim 0 : vector<128x32xf32>, i32 -> vector<128x32xf32>
    %cst_39 = arith.constant 0.000000e+00 : f32
    %102 = vector.broadcast %cst_39 : f32 to vector<128x32xf32>
    %103 = arith.select %36, %101, %102 : vector<128x32xi1>, vector<128x32xf32>
    %c0_40 = arith.constant 0 : index
    %c192 = arith.constant 192 : index
    %104 = vector.load %arg6[%c0_40, %c192] : memref<128x288xf32, #tpu.memory_space<vmem>>, vector<128x32xf32>
    tpu.vector_store %arg6[%c0_40, %c192], %103 {strides = array<i32>} : memref<128x288xf32, #tpu.memory_space<vmem>>, vector<128x32xf32>,
    %c120_i32 = arith.constant 120 : i32
    %105 = tpu.dynamic_rotate %77 by %c120_i32 dim 0 : vector<128x32xf32>, i32 -> vector<128x32xf32>
    %cst_41 = arith.constant 0.000000e+00 : f32
    %106 = vector.broadcast %cst_41 : f32 to vector<128x32xf32>
    %107 = arith.select %38, %105, %106 : vector<128x32xi1>, vector<128x32xf32>
    %c0_42 = arith.constant 0 : index
    %c224 = arith.constant 224 : index
    %108 = vector.load %arg6[%c0_42, %c224] : memref<128x288xf32, #tpu.memory_space<vmem>>, vector<128x32xf32>
    tpu.vector_store %arg6[%c0_42, %c224], %107 {strides = array<i32>} : memref<128x288xf32, #tpu.memory_space<vmem>>, vector<128x32xf32>,
    %c119_i32 = arith.constant 119 : i32
    %109 = tpu.dynamic_rotate %77 by %c119_i32 dim 0 : vector<128x32xf32>, i32 -> vector<128x32xf32>
    %cst_43 = arith.constant 0.000000e+00 : f32
    %110 = vector.broadcast %cst_43 : f32 to vector<128x32xf32>
    %111 = arith.select %43, %109, %110 : vector<128x32xi1>, vector<128x32xf32>
    %c0_44 = arith.constant 0 : index
    %c256 = arith.constant 256 : index
    %112 = vector.load %arg6[%c0_44, %c256] : memref<128x288xf32, #tpu.memory_space<vmem>>, vector<128x32xf32>
    tpu.vector_store %arg6[%c0_44, %c256], %111 {strides = array<i32>} : memref<128x288xf32, #tpu.memory_space<vmem>>, vector<128x32xf32>,
    %c0_45 = arith.constant 0 : index
    %c0_46 = arith.constant 0 : index
    %113 = vector.load %arg6[%c0_45, %c0_46] : memref<128x288xf32, #tpu.memory_space<vmem>>, vector<128x288xf32>
    %cst_47 = arith.constant dense<0.000000e+00> : vector<128x32xf32>
    %114 = tpu.matmul %113, %79, %cst_47 {dimension_numbers = #tpu.dot_dimension_numbers<[1], [0], [0], [1], [0, 0, 1, 1], [], []>} : vector<128x288xf32>, vector<288x32xf32>, vector<128x32xf32> -> vector<128x32xf32>
    %115 = vector.broadcast %4 : vector<1x32xf32> to vector<128x32xf32>
    %116 = arith.addf %114, %115 : vector<128x32xf32>
    %c0_48 = arith.constant 0 : index
    %c0_49 = arith.constant 0 : index
    %117 = vector.load %arg1[%c0_48, %c0_49] : memref<8x16xf32, #tpu.memory_space<vmem>>, vector<8x16xf32>
    %cst_50 = arith.constant 5.000000e-01 : f32
    %118 = vector.broadcast %cst_50 : f32 to vector<8x16xf32>
    %119 = arith.mulf %118, %117 : vector<8x16xf32>
    %120 = math.tanh %119 : vector<8x16xf32>
    %cst_51 = arith.constant 5.000000e-01 : f32
    %121 = vector.broadcast %cst_51 : f32 to vector<8x16xf32>
    %122 = arith.mulf %121, %120 : vector<8x16xf32>
    %cst_52 = arith.constant 5.000000e-01 : f32
    %123 = vector.broadcast %cst_52 : f32 to vector<8x16xf32>
    %124 = arith.addf %122, %123 : vector<8x16xf32>
    %125 = arith.mulf %117, %124 : vector<8x16xf32>
    %c0_53 = arith.constant 0 : index
    %c0_54 = arith.constant 0 : index
    %126 = vector.load %arg4[%c0_53, %c0_54] : memref<16x32xf32, #tpu.memory_space<vmem>>, vector<16x32xf32>
    %cst_55 = arith.constant dense<0.000000e+00> : vector<8x32xf32>
    %127 = tpu.matmul %125, %126, %cst_55 {dimension_numbers = #tpu.dot_dimension_numbers<[1], [0], [0], [1], [0, 0, 1, 1], [], []>} : vector<8x16xf32>, vector<16x32xf32>, vector<8x32xf32> -> vector<8x32xf32>
    %128 = vector.broadcast %5 : vector<1x32xf32> to vector<8x32xf32>
    %129 = arith.addf %127, %128 : vector<8x32xf32>
    %130 = vector.extract_strided_slice %129 {offsets = [0, 0], sizes = [1, 32], strides = [1, 1]} : vector<8x32xf32> to vector<1x32xf32>
    %131 = vector.shape_cast %130 : vector<1x32xf32> to vector<1x32xf32>
    %132 = vector.broadcast %131 : vector<1x32xf32> to vector<64x32xf32>
    %133 = vector.extract_strided_slice %129 {offsets = [1, 0], sizes = [1, 32], strides = [1, 1]} : vector<8x32xf32> to vector<1x32xf32>
    %134 = vector.shape_cast %133 : vector<1x32xf32> to vector<1x32xf32>
    %135 = vector.broadcast %134 : vector<1x32xf32> to vector<64x32xf32>
    %136 = tpu.concatenate %132, %135 in 0 : vector<64x32xf32>, vector<64x32xf32> -> vector<128x32xf32>
    %137 = arith.addf %116, %136 : vector<128x32xf32>
    %138 = vector.shape_cast %137 : vector<128x32xf32> to vector<2x64x32xf32>
    %cst_56 = arith.constant dense<0.000000e+00> : vector<2x32xf32>
    %139 = vector.multi_reduction <add>, %138, %cst_56 [1] : vector<2x64x32xf32> to vector<2x32xf32>
    %140 = vector.shape_cast %139 : vector<2x32xf32> to vector<2x1x32xf32>
    %141 = arith.mulf %138, %138 : vector<2x64x32xf32>
    %cst_57 = arith.constant dense<0.000000e+00> : vector<2x32xf32>
    %142 = vector.multi_reduction <add>, %141, %cst_57 [1] : vector<2x64x32xf32> to vector<2x32xf32>
    %143 = vector.shape_cast %142 : vector<2x32xf32> to vector<2x1x32xf32>
    %cst_58 = arith.constant 1.562500e-02 : f32
    %144 = vector.broadcast %cst_58 : f32 to vector<2x1x32xf32>
    %145 = arith.mulf %140, %144 : vector<2x1x32xf32>
    %cst_59 = arith.constant 1.562500e-02 : f32
    %146 = vector.broadcast %cst_59 : f32 to vector<2x1x32xf32>
    %147 = arith.mulf %143, %146 : vector<2x1x32xf32>
    %148 = arith.mulf %145, %145 : vector<2x1x32xf32>
    %149 = arith.subf %147, %148 : vector<2x1x32xf32>
    %cst_60 = arith.constant 9.99999974E-6 : f32
    %150 = vector.broadcast %cst_60 : f32 to vector<2x1x32xf32>
    %151 = arith.addf %149, %150 : vector<2x1x32xf32>
    %152 = math.rsqrt %151 : vector<2x1x32xf32>
    %153 = vector.broadcast %145 : vector<2x1x32xf32> to vector<2x64x32xf32>
    %154 = arith.subf %138, %153 : vector<2x64x32xf32>
    %155 = vector.broadcast %152 : vector<2x1x32xf32> to vector<2x64x32xf32>
    %156 = arith.mulf %154, %155 : vector<2x64x32xf32>
    %157 = vector.shape_cast %6 : vector<1x32xf32> to vector<1x1x32xf32>
    %158 = vector.broadcast %157 : vector<1x1x32xf32> to vector<2x64x32xf32>
    %159 = arith.mulf %156, %158 : vector<2x64x32xf32>
    %160 = vector.shape_cast %7 : vector<1x32xf32> to vector<1x1x32xf32>
    %161 = vector.broadcast %160 : vector<1x1x32xf32> to vector<2x64x32xf32>
    %162 = arith.addf %159, %161 : vector<2x64x32xf32>
    %163 = vector.shape_cast %162 : vector<2x64x32xf32> to vector<128x32xf32>
    %cst_61 = arith.constant 5.000000e-01 : f32
    %164 = vector.broadcast %cst_61 : f32 to vector<128x32xf32>
    %165 = arith.mulf %164, %163 : vector<128x32xf32>
    %166 = math.tanh %165 : vector<128x32xf32>
    %cst_62 = arith.constant 5.000000e-01 : f32
    %167 = vector.broadcast %cst_62 : f32 to vector<128x32xf32>
    %168 = arith.mulf %167, %166 : vector<128x32xf32>
    %cst_63 = arith.constant 5.000000e-01 : f32
    %169 = vector.broadcast %cst_63 : f32 to vector<128x32xf32>
    %170 = arith.addf %168, %169 : vector<128x32xf32>
    %171 = arith.mulf %163, %170 : vector<128x32xf32>
    %c1 = arith.constant 1 : index
    %c0_64 = arith.constant 0 : index
    %c0_65 = arith.constant 0 : index
    %172 = vector.load %arg3[%c1, %c0_64, %c0_65] : memref<2x288x32xf32, #tpu.memory_space<vmem>>, vector<1x288x32xf32>
    %173 = vector.shape_cast %172 : vector<1x288x32xf32> to vector<288x32xf32>
    %c9_i32_66 = arith.constant 9 : i32
    %174 = tpu.dynamic_rotate %171 by %c9_i32_66 dim 0 : vector<128x32xf32>, i32 -> vector<128x32xf32>
    %cst_67 = arith.constant 0.000000e+00 : f32
    %175 = vector.broadcast %cst_67 : f32 to vector<128x32xf32>
    %176 = arith.select %20, %174, %175 : vector<128x32xi1>, vector<128x32xf32>
    %c0_68 = arith.constant 0 : index
    %c0_69 = arith.constant 0 : index
    %177 = vector.load %arg6[%c0_68, %c0_69] : memref<128x288xf32, #tpu.memory_space<vmem>>, vector<128x32xf32>
    tpu.vector_store %arg6[%c0_68, %c0_69], %176 {strides = array<i32>} : memref<128x288xf32, #tpu.memory_space<vmem>>, vector<128x32xf32>,
    %c8_i32_70 = arith.constant 8 : i32
    %178 = tpu.dynamic_rotate %171 by %c8_i32_70 dim 0 : vector<128x32xf32>, i32 -> vector<128x32xf32>
    %cst_71 = arith.constant 0.000000e+00 : f32
    %179 = vector.broadcast %cst_71 : f32 to vector<128x32xf32>
    %180 = arith.select %22, %178, %179 : vector<128x32xi1>, vector<128x32xf32>
    %c0_72 = arith.constant 0 : index
    %c32_73 = arith.constant 32 : index
    %181 = vector.load %arg6[%c0_72, %c32_73] : memref<128x288xf32, #tpu.memory_space<vmem>>, vector<128x32xf32>
    tpu.vector_store %arg6[%c0_72, %c32_73], %180 {strides = array<i32>} : memref<128x288xf32, #tpu.memory_space<vmem>>, vector<128x32xf32>,
    %c7_i32_74 = arith.constant 7 : i32
    %182 = tpu.dynamic_rotate %171 by %c7_i32_74 dim 0 : vector<128x32xf32>, i32 -> vector<128x32xf32>
    %cst_75 = arith.constant 0.000000e+00 : f32
    %183 = vector.broadcast %cst_75 : f32 to vector<128x32xf32>
    %184 = arith.select %27, %182, %183 : vector<128x32xi1>, vector<128x32xf32>
    %c0_76 = arith.constant 0 : index
    %c64_77 = arith.constant 64 : index
    %185 = vector.load %arg6[%c0_76, %c64_77] : memref<128x288xf32, #tpu.memory_space<vmem>>, vector<128x32xf32>
    tpu.vector_store %arg6[%c0_76, %c64_77], %184 {strides = array<i32>} : memref<128x288xf32, #tpu.memory_space<vmem>>, vector<128x32xf32>,
    %c1_i32_78 = arith.constant 1 : i32
    %186 = tpu.dynamic_rotate %171 by %c1_i32_78 dim 0 : vector<128x32xf32>, i32 -> vector<128x32xf32>
    %cst_79 = arith.constant 0.000000e+00 : f32
    %187 = vector.broadcast %cst_79 : f32 to vector<128x32xf32>
    %188 = arith.select %29, %186, %187 : vector<128x32xi1>, vector<128x32xf32>
    %c0_80 = arith.constant 0 : index
    %c96_81 = arith.constant 96 : index
    %189 = vector.load %arg6[%c0_80, %c96_81] : memref<128x288xf32, #tpu.memory_space<vmem>>, vector<128x32xf32>
    tpu.vector_store %arg6[%c0_80, %c96_81], %188 {strides = array<i32>} : memref<128x288xf32, #tpu.memory_space<vmem>>, vector<128x32xf32>,
    %c0_82 = arith.constant 0 : index
    %c128_83 = arith.constant 128 : index
    %190 = vector.load %arg6[%c0_82, %c128_83] : memref<128x288xf32, #tpu.memory_space<vmem>>, vector<128x32xf32>
    tpu.vector_store %arg6[%c0_82, %c128_83], %171 {strides = array<i32>} : memref<128x288xf32, #tpu.memory_space<vmem>>, vector<128x32xf32>,
    %c127_i32_84 = arith.constant 127 : i32
    %191 = tpu.dynamic_rotate %171 by %c127_i32_84 dim 0 : vector<128x32xf32>, i32 -> vector<128x32xf32>
    %cst_85 = arith.constant 0.000000e+00 : f32
    %192 = vector.broadcast %cst_85 : f32 to vector<128x32xf32>
    %193 = arith.select %31, %191, %192 : vector<128x32xi1>, vector<128x32xf32>
    %c0_86 = arith.constant 0 : index
    %c160_87 = arith.constant 160 : index
    %194 = vector.load %arg6[%c0_86, %c160_87] : memref<128x288xf32, #tpu.memory_space<vmem>>, vector<128x32xf32>
    tpu.vector_store %arg6[%c0_86, %c160_87], %193 {strides = array<i32>} : memref<128x288xf32, #tpu.memory_space<vmem>>, vector<128x32xf32>,
    %c121_i32_88 = arith.constant 121 : i32
    %195 = tpu.dynamic_rotate %171 by %c121_i32_88 dim 0 : vector<128x32xf32>, i32 -> vector<128x32xf32>
    %cst_89 = arith.constant 0.000000e+00 : f32
    %196 = vector.broadcast %cst_89 : f32 to vector<128x32xf32>
    %197 = arith.select %36, %195, %196 : vector<128x32xi1>, vector<128x32xf32>
    %c0_90 = arith.constant 0 : index
    %c192_91 = arith.constant 192 : index
    %198 = vector.load %arg6[%c0_90, %c192_91] : memref<128x288xf32, #tpu.memory_space<vmem>>, vector<128x32xf32>
    tpu.vector_store %arg6[%c0_90, %c192_91], %197 {strides = array<i32>} : memref<128x288xf32, #tpu.memory_space<vmem>>, vector<128x32xf32>,
    %c120_i32_92 = arith.constant 120 : i32
    %199 = tpu.dynamic_rotate %171 by %c120_i32_92 dim 0 : vector<128x32xf32>, i32 -> vector<128x32xf32>
    %cst_93 = arith.constant 0.000000e+00 : f32
    %200 = vector.broadcast %cst_93 : f32 to vector<128x32xf32>
    %201 = arith.select %38, %199, %200 : vector<128x32xi1>, vector<128x32xf32>
    %c0_94 = arith.constant 0 : index
    %c224_95 = arith.constant 224 : index
    %202 = vector.load %arg6[%c0_94, %c224_95] : memref<128x288xf32, #tpu.memory_space<vmem>>, vector<128x32xf32>
    tpu.vector_store %arg6[%c0_94, %c224_95], %201 {strides = array<i32>} : memref<128x288xf32, #tpu.memory_space<vmem>>, vector<128x32xf32>,
    %c119_i32_96 = arith.constant 119 : i32
    %203 = tpu.dynamic_rotate %171 by %c119_i32_96 dim 0 : vector<128x32xf32>, i32 -> vector<128x32xf32>
    %cst_97 = arith.constant 0.000000e+00 : f32
    %204 = vector.broadcast %cst_97 : f32 to vector<128x32xf32>
    %205 = arith.select %43, %203, %204 : vector<128x32xi1>, vector<128x32xf32>
    %c0_98 = arith.constant 0 : index
    %c256_99 = arith.constant 256 : index
    %206 = vector.load %arg6[%c0_98, %c256_99] : memref<128x288xf32, #tpu.memory_space<vmem>>, vector<128x32xf32>
    tpu.vector_store %arg6[%c0_98, %c256_99], %205 {strides = array<i32>} : memref<128x288xf32, #tpu.memory_space<vmem>>, vector<128x32xf32>,
    %c0_100 = arith.constant 0 : index
    %c0_101 = arith.constant 0 : index
    %207 = vector.load %arg6[%c0_100, %c0_101] : memref<128x288xf32, #tpu.memory_space<vmem>>, vector<128x288xf32>
    %cst_102 = arith.constant dense<0.000000e+00> : vector<128x32xf32>
    %208 = tpu.matmul %207, %173, %cst_102 {dimension_numbers = #tpu.dot_dimension_numbers<[1], [0], [0], [1], [0, 0, 1, 1], [], []>} : vector<128x288xf32>, vector<288x32xf32>, vector<128x32xf32> -> vector<128x32xf32>
    %209 = vector.broadcast %8 : vector<1x32xf32> to vector<128x32xf32>
    %210 = arith.addf %208, %209 : vector<128x32xf32>
    %211 = arith.addf %0, %210 : vector<128x32xf32>
    %c0_103 = arith.constant 0 : index
    %c0_104 = arith.constant 0 : index
    %212 = vector.load %arg5[%c0_103, %c0_104] : memref<128x32xf32, #tpu.memory_space<vmem>>, vector<128x32xf32>
    tpu.vector_store %arg5[%c0_103, %c0_104], %211 {strides = array<i32>} : memref<128x32xf32, #tpu.memory_space<vmem>>, vector<128x32xf32>,
    return
  }
}

</mosaic_0001>

<bundles_post_ra>
// kernel: resblock_forward.1
= control target key start
LH: loop header
LB: loop body
LE: loop exit
PB: predicated region body
PF: predicated region fallthrough
CT: control target
= control target key end

     0   :  { %vm7500_vm0 = vcmask 261120   ;;  %s7474_s0 = inlined_call_operand.vmem [shape: f32[128,32], index: 0, kind: input, shape index: {}]   ;;  %s7475_s1 = inlined_call_operand.vmem [shape: f32[8,16], index: 1, kind: input, shape index: {}]   ;;  %s7476_s2 = inlined_call_operand.vmem [shape: f32[8,32], index: 2, kind: input, shape index: {}]   ;;  %s7477_s3 = inlined_call_operand.vmem [shape: f32[2,288,32], index: 3, kind: input, shape index: {}]   ;;  %s7478_s4 = inlined_call_operand.vmem [shape: f32[16,32], index: 4, kind: input, shape index: {}]   ;;  %s7479_s5 = inlined_call_operand.hbm [shape: f32[128,32], index: 5, kind: output, shape index: {}]  }
   0x1   :  { %v3811_v0 = vld [vmem:[%s7474_s0 + $0x40] sm:$0xff]  ;;  %v3816_v1 = vld [vmem:[%s7474_s0 + $0x48] sm:$0xff]  ;;  %v3821_v2 = vld [vmem:[%s7474_s0 + $0x50] sm:$0xff] }
   0x2   :  { %v3826_v3 = vld [vmem:[%s7474_s0 + $0x58] sm:$0xff]  ;;  %v253_v4 = vsel %vm7500_vm0, %v3811_v0, 0.0  ;;  %v254_v5 = vsel %vm7500_vm0, %v3816_v1, 0.0  ;;  %v256_v6 = vsel %vm7500_vm0, %v3821_v2, 0.0  ;;  %v33_v7 = vld [vmem:[%s7474_s0 + $0x60] sm:$0xff]  ;;  %v282_v9 = vmul.f32 %v3811_v0, %v3811_v0  ;;  %v34_v12 = vld [vmem:[%s7474_s0 + $0x68] sm:$0xff] }
   0x3   :  { %v255_v8 = vadd.f32 %v254_v5, %v253_v4  ;;  %v258_v10 = vsel %vm7500_vm0, %v3826_v3, 0.0  ;;  %v283_v11 = vmul.f32 %v3816_v1, %v3816_v1  ;;  %v284_v14 = vmul.f32 %v3821_v2, %v3821_v2 }
   0x4   :  { %v285_v15 = vmul.f32 %v3826_v3, %v3826_v3  ;;  %v260_v16 = vsel %vm7500_vm0, %v33_v7, 0.0 }
   0x5   :  { %v257_v13 = vadd.f32 %v256_v6, %v255_v8 }
   0x6   :  { %10 = vsyncpa [#allocation4], 0  ;;  %v3854_v17 = vld [vmem:[%s7474_s0 + $0x70] sm:$0xff]  ;;  %v286_v19 = vmul.f32 %v33_v7, %v33_v7  ;;  %v311_v20 = vsel %vm7500_vm0, %v282_v9, 0.0  ;;  %v312_v21 = vsel %vm7500_vm0, %v283_v11, 0.0  ;;  %v262_v22 = vsel %vm7500_vm0, %v34_v12, 0.0 }
   0x7   :  { %v259_v18 = vadd.f32 %v258_v10, %v257_v13  ;;  %v313_v23 = vadd.f32 %v312_v21, %v311_v20  ;;  %v314_v24 = vsel %vm7500_vm0, %v284_v14, 0.0  ;;  %v3863_v25 = vld [vmem:[%s7474_s0] sm:$0xff]  ;;  %v3868_v26 = vld [vmem:[%s7474_s0 + $0x8] sm:$0xff]  ;;  %v3873_v27 = vld [vmem:[%s7474_s0 + $0x78] sm:$0xff]  ;;  %v287_v29 = vmul.f32 %v34_v12, %v34_v12  ;;  %s3769_s27 = smov 32   ;;  %s3770_s19 = smov 96  }
   0x8   :  { %v316_v30 = vsel %vm7500_vm0, %v285_v15, 0.0  ;;  %v264_v31 = vsel %vm7500_vm0, %v3854_v17, 0.0  ;;  %v288_v32 = vmul.f32 %v3854_v17, %v3854_v17  ;;  %v3883_v34 = vld [vmem:[%s7474_s0 + $0x10] sm:$0xff]  ;;  %v3888_v35 = vld [vmem:[%s7474_s0 + $0x18] sm:$0xff]  ;;  %v318_v37 = vsel %vm7500_vm0, %v286_v19, 0.0  ;;  %v3902_v43 = vld [vmem:[%s7474_s0 + $0x20] sm:$0xff] }
   0x9   :  { %v261_v28 = vadd.f32 %v260_v16, %v259_v18  ;;  %v315_v33 = vadd.f32 %v314_v24, %v313_v23  ;;  %v232_v38 = vsel %vm7500_vm0, %v3863_v25, 0.0  ;;  %v233_v39 = vsel %vm7500_vm0, %v3868_v26, 0.0  ;;  %v3912_v50 = vld [vmem:[%s7474_s0 + $0x28] sm:$0xff]  ;;  %v3920_v56 = vld [vmem:[%s7474_s0 + $0x30] sm:$0xff]  ;;  %v3934_v5 = vld [vmem:[%s7474_s0 + $0x38] sm:$0xff]  ;;  %s3771_s29 = smov 64  }
   0xa   :  { %v266_v40 = vsel %vm7500_vm0, %v3873_v27, 0.0  ;;  %v289_v41 = vmul.f32 %v3873_v27, %v3873_v27  ;;  %v234_v44 = vadd.f32 %v233_v39, %v232_v38  ;;  %v320_v46 = vsel %vm7500_vm0, %v287_v29, 0.0 }
   0xb   :  { %v263_v36 = vadd.f32 %v262_v22, %v261_v28  ;;  %v317_v42 = vadd.f32 %v316_v30, %v315_v33  ;;  %v235_v47 = vsel %vm7500_vm0, %v3883_v34, 0.0  ;;  %v237_v48 = vsel %vm7500_vm0, %v3888_v35, 0.0 }
   0xc   :  { %v236_v51 = vadd.f32 %v235_v47, %v234_v44  ;;  %v322_v53 = vsel %vm7500_vm0, %v288_v32, 0.0  ;;  %v239_v54 = vsel %vm7500_vm0, %v3902_v43, 0.0  ;;  %v274_v58 = vmul.f32 %v3863_v25, %v3863_v25 }
   0xd   :  { %v265_v45 = vadd.f32 %v264_v31, %v263_v36  ;;  %v319_v49 = vadd.f32 %v318_v37, %v317_v42  ;;  %v275_v59 = vmul.f32 %v3868_v26, %v3868_v26  ;;  %v324_v61 = vsel %vm7500_vm0, %v289_v41, 0.0 }
   0xe   :  { %v238_v57 = vadd.f32 %v237_v48, %v236_v51  ;;  %v241_v62 = vsel %vm7500_vm0, %v3912_v50, 0.0  ;;  %v276_v63 = vmul.f32 %v3883_v34, %v3883_v34  ;;  %v277_v7 = vmul.f32 %v3888_v35, %v3888_v35 }
   0xf   :  { %v267_v52 = vadd.f32 %v266_v40, %v265_v45  ;;  %v321_v55 = vadd.f32 %v320_v46, %v319_v49  ;;  %v243_v9 = vsel %vm7500_vm0, %v3920_v56, 0.0  ;;  %v278_v10 = vmul.f32 %v3902_v43, %v3902_v43 }
  0x10   :  { %v240_v6 = vadd.f32 %v239_v54, %v238_v57  ;;  %v290_v11 = vsel %vm7500_vm0, %v274_v58, 0.0  ;;  %v291_v14 = vsel %vm7500_vm0, %v275_v59, 0.0  ;;  %v293_v15 = vsel %vm7500_vm0, %v276_v63, 0.0 }
  0x11   :  { %v268_v60 = vrot.slane %v267_v52, 4  ;;  %v323_v4 = vadd.f32 %v322_v53, %v321_v55  ;;  %v245_v18 = vsel %vm7500_vm0, %v3934_v5, 0.0  ;;  %v292_v19 = vadd.f32 %v291_v14, %v290_v11 }
  0x12   :  { %v242_v13 = vadd.f32 %v241_v62, %v240_v6  ;;  %v279_v22 = vmul.f32 %v3912_v50, %v3912_v50  ;;  %v295_v23 = vsel %vm7500_vm0, %v277_v7, 0.0  ;;  %v280_v31 = vmul.f32 %v3920_v56, %v3920_v56 }
  0x13   :  { %v269_v8 = vadd.f32 %v268_v60, %v267_v52  ;;  %v325_v12 = vadd.f32 %v324_v61, %v323_v4  ;;  %v294_v28 = vadd.f32 %v293_v15, %v292_v19  ;;  %v297_v32 = vsel %vm7500_vm0, %v278_v10, 0.0 }
  0x14   :  { %v244_v21 = vadd.f32 %v243_v9, %v242_v13  ;;  %v281_v39 = vmul.f32 %v3934_v5, %v3934_v5  ;;  %v299_v40 = vsel %vm7500_vm0, %v279_v22, 0.0  ;;  %v301_v46 = vsel %vm7500_vm0, %v280_v31, 0.0 }
  0x15   :  { %v270_v16 = vrot.slane %v269_v8, 2  ;;  %v326_v20 = vrot.slane %v325_v12, 4  ;;  %v296_v36 = vadd.f32 %v295_v23, %v294_v28  ;;  %v38_v63 = vlaneseq }
  0x16   :  { %v246_v30 = vadd.f32 %v245_v18, %v244_v21  ;;  %v303_v52 = vsel %vm7500_vm0, %v281_v39, 0.0 }
  0x17   :  { %v271_v24 = vadd.f32 %v270_v16, %v269_v8  ;;  %v327_v29 = vadd.f32 %v326_v20, %v325_v12  ;;  %v298_v42 = vadd.f32 %v297_v32, %v296_v36  ;;  %v3962_v9 = vshrl.u32 %v38_v63, 7  ;;  %v37_v16 = vld [vmem:[%s7476_s2] sm:$0xff] }
  0x18   :  { %v247_v38 = vrot.slane %v246_v30, 4 }
  0x19   :  { %v272_v33 = vrot.slane %v271_v24, 1  ;;  %v328_v37 = vrot.slane %v327_v29, 2  ;;  %v300_v48 = vadd.f32 %v299_v40, %v298_v42  ;;  %v7481_v13 = vsub.s32 0, %v3962_v9 }
  0x1a   :  { %v248_v45 = vadd.f32 %v247_v38, %v246_v30  ;;  %v7480_v19 = vsub.s32 1, %v3962_v9  ;;  %v3978_v22 = vadd.s32 8, %v3962_v9  ;;  %v3999_v38 = vadd.s32 16, %v3962_v9 }
  0x1b   :  { %v273_v41 = vadd.f32 %v272_v33, %v271_v24  ;;  %v329_v44 = vadd.f32 %v328_v37, %v327_v29  ;;  %v302_v53 = vadd.f32 %v301_v46, %v300_v48  ;;  %v3982_v23 = vrot.slane %v37_v16, %v7481_v13 }
  0x1c   :  { %v249_v51 = vrot.slane %v248_v45, 2  ;;  %v56_v32 = vshra.s32 %v3978_v22, 3  ;;  %v4002_v39 = vadd.s32 24, %v3962_v9  ;;  %v4005_v40 = vadd.s32 32, %v3962_v9 }
  0x1d   :  { %v3957_v47 = vmul.f32 0.015625, %v273_v41  ;;  %v330_v49 = vrot.slane %v329_v44, 1  ;;  %v304_v58 = vadd.f32 %v303_v52, %v302_v53  ;;  %v4008_v41 = vadd.s32 40, %v3962_v9 }
  0x1e   :  { %v250_v57 = vadd.f32 %v249_v51, %v248_v45  ;;  %v4020_v48 = vand.u32 7, %v56_v32  ;;  %v57_v52 = vshra.s32 %v3999_v38, 3  ;;  %v58_v53 = vshra.s32 %v4002_v39, 3 }
  0x1f   :  { %v331_v54 = vadd.f32 %v330_v49, %v329_v44  ;;  %v337_v55 = vmul.f32 %v3957_v47, %v3957_v47  ;;  %v305_v61 = vrot.slane %v304_v58, 4  ;;  %v359_v18 = vsub.f32 %v3873_v27, %v3957_v47 }
  0x20   :  { %v251_v60 = vrot.slane %v250_v57, 1  ;;  %v358_v21 = vsub.f32 %v3854_v17, %v3957_v47  ;;  %v3989_v27 = vrot.slane %v37_v16, %v7480_v19  ;;  %v55_v17 = vshra.s32 %v3962_v9, 3  ;;  %7765 = vst [vmem:[#allocation7_spill] sm:$0xff] %v4020_v48 }
  0x21   :  { %v335_v59 = vmul.f32 0.015625, %v331_v54  ;;  %v306_v6 = vadd.f32 %v305_v61, %v304_v58  ;;  %v352_v37 = vsub.f32 %v3811_v0, %v3957_v47  ;;  %v59_v54 = vshra.s32 %v4005_v40, 3 }
  0x22   :  { %v252_v4 = vadd.f32 %v251_v60, %v250_v57  ;;  %v4017_v45 = vand.u32 7, %v55_v17  ;;  %v4031_v58 = vadd.s32 120, %v3962_v9  ;;  %vm7491_vm3 = vcmp.lt.s32.totalorder %v3962_v9, 1 }
  0x23   :  { %v339_v62 = vsub.f32 %v335_v59, %v337_v55  ;;  %v307_v8 = vrot.slane %v306_v6, 2  ;;  %v60_v55 = vshra.s32 %v4008_v41, 3  ;;  %vm7494_vm6 = vcmp.ge.s32.totalorder %v4020_v48, 1 }
  0x24   :  { %v3964_v11 = vmul.f32 0.015625, %v252_v4  ;;  %7764 = vst [vmem:[#allocation6_spill] sm:$0xff] %v4017_v45  ;;  %7766 = vst [vmem:[#allocation8_spill] sm:$0xff] %v4031_v58  ;;  %vm7489_vm1 = vcmp.ge.s32.totalorder %v4017_v45, 1  ;;  %vm7501_vm8 = vcmp.lt.s32.totalorder %v4017_v45, 7  ;;  %vm7493_vm9 = vcmp.lt.s32.totalorder %v3962_v9, 7 }
  0x25   :  { %v341_v7 = vadd.f32 1e-05, %v339_v62  ;;  %v308_v10 = vadd.f32 %v307_v8, %v306_v6  ;;  %v4055_v8 = vand.u32 7, %v60_v55  ;;  %v7482_v55 = vand.u32 7, %v4031_v58 }
  0x26   :  { %v336_v15 = vmul.f32 %v3964_v11, %v3964_v11  ;;  %v344_v57 = vsub.f32 %v3863_v25, %v3964_v11  ;;  %v345_v60 = vsub.f32 %v3868_v26, %v3964_v11  ;;  %v346_v61 = vsub.f32 %v3883_v34, %v3964_v11 }
  0x27   :  { %3651 = vrsqrt.f32 %v341_v7  ;;  %v309_v12 = vrot.slane %v308_v10, 1  ;;  %v347_v62 = vsub.f32 %v3888_v35, %v3964_v11  ;;  %v348_v63 = vsub.f32 %v3902_v43, %v3964_v11 }
  0x28   :  { %v349_v25 = vsub.f32 %v3912_v50, %v3964_v11  ;;  %v350_v4 = vsub.f32 %v3920_v56, %v3964_v11  ;;  %v4049_v7 = vand.u32 7, %v57_v52  ;;  %v4051_v26 = vand.u32 7, %v58_v53 }
  0x29   :  { %v310_v14 = vadd.f32 %v309_v12, %v308_v10  ;;  %v4053_v34 = vand.u32 7, %v59_v54  ;;  %v4060_v43 = vadd.s32 48, %v3962_v9  ;;  %v7490_v50 = vand.u32 7, %v3962_v9 }
  0x2a   :  { %v4064_v10 = vadd.s32 104, %v3962_v9  ;;  %vm7495_vm10 = vcmp.ge.s32.totalorder %v4049_v7, 1  ;;  %vm7498_vm12 = vcmp.lt.s32.totalorder %v4020_v48, 7  ;;  %vm4217_vm13 = vcmp.lt.s32.totalorder %v7482_v55, 7  ;;  %v496_v55 = vld [vmem:[%s7477_s3] sm:$0xff] }
  0x2b   :  { %v334_v20 = vmul.f32 0.015625, %v310_v14  ;;  %vm4111_vm2 = vcmp.ge.s32.totalorder %v7490_v50, 1  ;;  %vm7499_vm15 = vcmp.ge.s32.totalorder %v4051_v26, 1  ;;  %v7791_v50 = vmov 0 }
  0x2c   :  { %7767 = vst [vmem:[#allocation9_spill] sm:$0xff] %v4064_v10  ;;  %vm4195_vm11 = vmand %vm7489_vm1, %vm4111_vm2 }
  0x2d   :  { %v338_v24 = vsub.f32 %v334_v20, %v336_v15 }
  0x2f   :  { %v340_v30 = vadd.f32 1e-05, %v338_v24 }
  0x31   :  { %v3984_v28 = vpop.eup %3651  ;;  %3653 = vrsqrt.f32 %v340_v30 }
  0x32   :  { %v375_v29 = vmul.f32 %v3984_v28, %v359_v18  ;;  %v374_v31 = vmul.f32 %v3984_v28, %v358_v21  ;;  %v368_v0 = vmul.f32 %v3984_v28, %v352_v37  ;;  %v70_v21 = vshra.s32 %v4031_v58, 3 }
  0x34   :  { %v395_v33 = vmul.f32 %v3982_v23, %v375_v29  ;;  %v394_v36 = vmul.f32 %v3982_v23, %v374_v31  ;;  %v388_v51 = vmul.f32 %v3982_v23, %v368_v0 }
  0x36   :  { %v4011_v42 = vadd.f32 %v3989_v27, %v395_v33  ;;  %v4014_v44 = vadd.f32 %v3989_v27, %v394_v36  ;;  %v4034_v59 = vadd.f32 %v3989_v27, %v388_v51  ;;  %v68_v36 = vshra.s32 %v4064_v10, 3 }
  0x38   :  { %v431_v46 = vmul.f32 0.5, %v4011_v42  ;;  %v430_v49 = vmul.f32 0.5, %v4014_v44  ;;  %v424_v6 = vmul.f32 0.5, %v4034_v59 }
  0x3a   :  { %3655 = vtanh.f32 %v431_v46 }
  0x3b   :  { %3657 = vtanh.f32 %v430_v49  ;;  %v4057_v35 = vpop.eup %3653 }
  0x3c   :  { %3659 = vtanh.f32 %v424_v6  ;;  %v360_v56 = vmul.f32 %v4057_v35, %v344_v57  ;;  %v361_v12 = vmul.f32 %v4057_v35, %v345_v60  ;;  %v362_v14 = vmul.f32 %v4057_v35, %v346_v61 }
  0x3d   :  { %v363_v15 = vmul.f32 %v4057_v35, %v347_v62  ;;  %v364_v16 = vmul.f32 %v4057_v35, %v348_v63  ;;  %v365_v18 = vmul.f32 %v4057_v35, %v349_v25  ;;  %v366_v20 = vmul.f32 %v4057_v35, %v350_v4 }
  0x3e   :  { %v380_v24 = vmul.f32 %v3982_v23, %v360_v56  ;;  %v381_v29 = vmul.f32 %v3982_v23, %v361_v12  ;;  %v382_v30 = vmul.f32 %v3982_v23, %v362_v14  ;;  %v7768_v4 = vmov 0 }
  0x3f   :  { %v383_v31 = vmul.f32 %v3982_v23, %v363_v15  ;;  %v384_v17 = vmul.f32 %v3982_v23, %v364_v16  ;;  %v385_v32 = vmul.f32 %v3982_v23, %v365_v18  ;;  %v386_v33 = vmul.f32 %v3982_v23, %v366_v20 }
  0x40   :  { %v4084_v37 = vadd.f32 %v3989_v27, %v380_v24  ;;  %v4087_v0 = vadd.f32 %v3989_v27, %v381_v29  ;;  %v4090_v46 = vadd.f32 %v3989_v27, %v382_v30  ;;  %v7769_v4 = vsel %vm4111_vm2, 4294967295, %v7768_v4 }
  0x41   :  { %v4093_v49 = vadd.f32 %v3989_v27, %v383_v31  ;;  %v4096_v52 = vadd.f32 %v3989_v27, %v384_v17  ;;  %v4099_v53 = vadd.f32 %v3989_v27, %v385_v32  ;;  %v4102_v54 = vadd.f32 %v3989_v27, %v386_v33  ;;  %7770 = vst [vmem:[#allocation10_spill] sm:$0xff] %v7769_v4 }
  0x42   :  { %v416_v61 = vmul.f32 0.5, %v4084_v37  ;;  %v417_v62 = vmul.f32 0.5, %v4087_v0  ;;  %v418_v63 = vmul.f32 0.5, %v4090_v46  ;;  %v4116_v6 = vadd.s32 112, %v3962_v9 }
  0x43   :  { %v419_v25 = vmul.f32 0.5, %v4093_v49  ;;  %v4118_v56 = vand.u32 7, %v68_v36  ;;  %v7484_v12 = vand.u32 7, %v4064_v10  ;;  %v420_v15 = vmul.f32 0.5, %v4096_v52 }
  0x44   :  { %v3656_v51 = vpop.eup %3655  ;;  %7771 = vst [vmem:[#allocation11_spill] sm:$0xff] %v4116_v6  ;;  %3661 = vtanh.f32 %v416_v61  ;;  %v421_v20 = vmul.f32 0.5, %v4099_v53  ;;  %v422_v24 = vmul.f32 0.5, %v4102_v54  ;;  %v351_v29 = vsub.f32 %v3934_v5, %v3964_v11 }
  0x45   :  { %v3658_v57 = vpop.eup %3657  ;;  %v463_v60 = vmul.f32 0.5, %v3656_v51  ;;  %7772 = vst [vmem:[#allocation12_spill] sm:$0xff] %v4118_v56  ;;  %3663 = vtanh.f32 %v417_v62  ;;  %vm4132_vm4 = vcmp.lt.s32.totalorder %v7484_v12, 7  ;;  %v7774_v32 = vmov 0 }
  0x46   :  { %v462_v16 = vmul.f32 0.5, %v3658_v57  ;;  %v3660_v18 = vpop.eup %3659  ;;  %3665 = vtanh.f32 %v418_v63  ;;  %v7775_v32 = vsel %vm4132_vm4, 4294967295, %v7774_v32  ;;  %vm7488_vm5 = vcmp.lt.s32.totalorder %v4118_v56, 7  ;;  %v528_v57 = vld [vmem:[%s7477_s3 + $0x100] sm:$0xff] }
  0x47   :  { %v479_v14 = vadd.f32 0.5, %v463_v60  ;;  %v456_v17 = vmul.f32 0.5, %v3660_v18  ;;  %3667 = vtanh.f32 %v419_v25  ;;  %7776 = vst [vmem:[#allocation14_spill] sm:$0xff] %v7775_v32  ;;  %v353_v33 = vsub.f32 %v3816_v1, %v3957_v47  ;;  %vm4164_vm7 = vmand %vm7488_vm5, %vm4132_vm4 }
  0x48   :  { %v478_v31 = vadd.f32 0.5, %v462_v16  ;;  %3669 = vtanh.f32 %v420_v15  ;;  %v4150_v36 = vand.u32 7, %v70_v21  ;;  %v69_v1 = vshra.s32 %v4116_v6, 3 }
  0x49   :  { %v4128_v30 = vmul.f32 %v479_v14, %v4011_v42  ;;  %v354_v42 = vsub.f32 %v3821_v2, %v3957_v47  ;;  %3671 = vtanh.f32 %v421_v20  ;;  %v472_v51 = vadd.f32 0.5, %v456_v17  ;;  %v531_v17 = vld [vmem:[%s7477_s3 + $0x118] sm:$0xff] }
  0x4a   :  { %v4145_v11 = vmul.f32 %v478_v31, %v4014_v44  ;;  %7778 = vst [vmem:[#allocation16_spill] sm:$0xff] %v4150_v36  ;;  %v529_v44 = vld [vmem:[%s7477_s3 + $0x108] sm:$0xff]  ;;  %3673 = vtanh.f32 %v422_v24  ;;  %v7779_v2 = vmov 0  ;;  %v367_v61 = vmul.f32 %v4057_v35, %v351_v29  ;;  %v530_v31 = vld [vmem:[%s7477_s3 + $0x110] sm:$0xff] }
  0x4b   :  { %7773 = vst [vmem:[#allocation13_spill] sm:$0xff] %v4128_v30  ;;  %v597_v5 = vsel %vm7489_vm1, %v4128_v30, 0.0  ;;  %936 = vst.msk [vmem:[#allocation2 + $0x170] sm:$0xff] %vm7500_vm0, %v4128_v30  ;;  %v7780_v2 = vsel %vm4164_vm7, 4294967295, %v7779_v2  ;;  %v7487_v60 = vrot.slane %v4128_v30, 1  ;;  %v4176_v62 = vmul.f32 %v472_v51, %v4034_v59  ;;  %v512_v51 = vld [vmem:[%s7477_s3 + $0x80] sm:$0xff] }
  0x4c   :  { %7777 = vst [vmem:[#allocation15_spill] sm:$0xff] %v4145_v11  ;;  %629 = vrot.lane.b32.xlu0 %v597_v5, %s3769_s27  ;;  %7781 = vst [vmem:[#allocation17_spill] sm:$0xff] %v7780_v2  ;;  %v7485_v21 = vrot.slane %v4145_v11, 1  ;;  %v369_v63 = vmul.f32 %v3984_v28, %v353_v33  ;;  %v7483_v25 = vrot.slane %v4145_v11, 7  ;;  %v7486_v14 = vrot.slane %v4128_v30, 7 }
  0x4d   :  { %935 = vst.msk [vmem:[#allocation2 + $0x158] sm:$0xff] %vm7500_vm0, %v4145_v11  ;;  %v370_v15 = vmul.f32 %v3984_v28, %v354_v42  ;;  %v7783_v59 = vmov 0  ;;  %v3591_v16 = vpack.c.bf16 %v529_v44, %v528_v57  ;;  %v4201_v20 = vand.u32 7, %v69_v1  ;;  %929 = vst.msk [vmem:[#allocation2 + $0xc8] sm:$0xff] %vm7500_vm0, %v4176_v62  ;;  %v513_v57 = vld [vmem:[%s7477_s3 + $0x88] sm:$0xff] }
  0x4e   :  { %v4187_v35 = vsel %vm7493_vm9, %v7485_v21, %v7487_v60  ;;  %v7784_v59 = vsel %vm4195_vm11, 4294967295, %v7783_v59  ;;  %v7492_v24 = vand.u32 7, %v4116_v6  ;;  %v3662_v33 = vpop.eup %3661  ;;  %v7787_v5 = vmov 0 }
  0x4f   :  { %7782 = vst [vmem:[#allocation18_spill] sm:$0xff] %v4187_v35  ;;  %7785 = vst [vmem:[#allocation19_spill] sm:$0xff] %v7784_v59  ;;  %v1238_v29 = vsel %vm4164_vm7, %v4187_v35, 0.0  ;;  %v7788_v5 = vsel %vm4217_vm13, 4294967295, %v7787_v5  ;;  %vm7496_vm14 = vcmp.lt.s32.totalorder %v4150_v36, 7  ;;  %v387_v42 = vmul.f32 %v3982_v23, %v367_v61  ;;  %3592 = vmatprep.subr.bf16.mxu1 %v3591_v16  ;;  %v3664_v44 = vpop.eup %3663 }
  0x50   :  { %7786 = vst [vmem:[#allocation20_spill] sm:$0xff] %v4201_v20  ;;  %7789 = vst [vmem:[#allocation21_spill] sm:$0xff] %v7788_v5  ;;  %v4230_v1 = vsel %vm7491_vm3, %v7483_v25, %v7486_v14  ;;  %v389_v19 = vmul.f32 %v3982_v23, %v369_v63  ;;  %3594 = vmatpush3.bf16.msra.mxu1 %v3591_v16  ;;  %v497_v25 = vld [vmem:[%s7477_s3 + $0x8] sm:$0xff]  ;;  %v3666_v12 = vpop.eup %3665  ;;  %v449_v21 = vmul.f32 0.5, %v3664_v44  ;;  %vm4255_vm1 = vcmp.lt.s32.totalorder %v7492_v24, 7 }
  0x51   :  { %1254 = vst.msk [vmem:[#allocation2 + $0x148] sm:$0xff] %vm7500_vm0, %v1238_v29  ;;  %7790 = vst [vmem:[#allocation22_spill] sm:$0xff] %v4230_v1  ;;  %v448_v29 = vmul.f32 0.5, %v3662_v33  ;;  %v565_v13 = vsel %vm4195_vm11, %v4230_v1, 0.0  ;;  %v390_v33 = vmul.f32 %v3982_v23, %v370_v15  ;;  %v3595_v63 = vpack.c.bf16 %v531_v17, %v530_v31  ;;  %v3668_v60 = vpop.eup %3667 }
  0x52   :  { %581 = vst.msk [vmem:[#allocation2] sm:$0xff] %vm7500_vm0, %v565_v13  ;;  %v3559_v14 = vpack.c.bf16 %v513_v57, %v512_v51  ;;  %v450_v61 = vmul.f32 0.5, %v3666_v12  ;;  %v7792_v50 = vsel %vm4255_vm1, 4294967295, %v7791_v50  ;;  %vm7497_vm3 = vcmp.lt.s32.totalorder %v4201_v20, 7  ;;  %v3670_v44 = vpop.eup %3669  ;;  %vm4336_vm5 = vmand %vm7496_vm14, %vm4217_vm13 }
  0x53   :  { %v464_v16 = vadd.f32 0.5, %v448_v29  ;;  %7793 = vst [vmem:[#allocation23_spill] sm:$0xff] %v7792_v50  ;;  %v465_v18 = vadd.f32 0.5, %v449_v21  ;;  %v451_v15 = vmul.f32 0.5, %v3668_v60  ;;  %v4261_v13 = vadd.f32 %v3989_v27, %v387_v42  ;;  %3596 = vmatprep.subr.bf16.mxu1 %v3595_v63  ;;  %v3672_v12 = vpop.eup %3671  ;;  %vm4351_vm14 = vmand %vm7497_vm3, %vm4255_vm1 }
  0x54   :  { %3560 = vmatprep.subr.bf16.mxu0 %v3559_v14  ;;  %v3561_v31 = vpack.c.bf16 %v497_v25, %v496_v55  ;;  %v466_v51 = vadd.f32 0.5, %v450_v61  ;;  %v452_v57 = vmul.f32 0.5, %v3670_v44  ;;  %v4267_v29 = vadd.f32 %v3989_v27, %v389_v19  ;;  %3598 = vmatpush3.bf16.msra.mxu1 %v3595_v63  ;;  %v3674_v24 = vpop.eup %3673 }
  0x55   :  { %v4264_v17 = vmul.f32 %v464_v16, %v4084_v37  ;;  %v4270_v21 = vmul.f32 %v465_v18, %v4087_v0  ;;  %v467_v60 = vadd.f32 0.5, %v451_v15  ;;  %v453_v42 = vmul.f32 0.5, %v3672_v12 }
  0x56   :  { %v4274_v55 = vadd.f32 %v3989_v27, %v390_v33  ;;  %3562 = vmatpush3.bf16.msra.mxu0 %v3561_v31  ;;  %v4282_v19 = vmul.f32 %v466_v51, %v4090_v46  ;;  %v468_v0 = vadd.f32 0.5, %v452_v57  ;;  %v454_v25 = vmul.f32 0.5, %v3674_v24 }
  0x57   :  { %7794 = vst [vmem:[#allocation24_spill] sm:$0xff] %v4264_v17  ;;  %v598_v37 = vsel %vm7494_vm6, %v4264_v17, 0.0  ;;  %921 = vst.msk [vmem:[#allocation2 + $0x8] sm:$0xff] %vm7500_vm0, %v4264_v17  ;;  %v1129_v14 = vsel %vm7501_vm8, %v4270_v21, 0.0  ;;  %v4292_v18 = vmul.f32 %v467_v60, %v4093_v49  ;;  %v469_v61 = vadd.f32 0.5, %v453_v42 }
  0x58   :  { %631 = vrot.lane.b32.xlu1 %v598_v37, %s3769_s27  ;;  %922 = vst.msk [vmem:[#allocation2 + $0x20] sm:$0xff] %vm7500_vm0, %v4270_v21  ;;  %v423_v46 = vmul.f32 0.5, %v4261_v13  ;;  %1161 = vrot.lane.b32.xlu0 %v1129_v14, %s3770_s19  ;;  %v599_v24 = vsel %vm7495_vm10, %v4270_v21, 0.0  ;;  %923 = vst.msk [vmem:[#allocation2 + $0x38] sm:$0xff] %vm7500_vm0, %v4282_v19  ;;  %v4302_v33 = vmul.f32 %v468_v0, %v4096_v52  ;;  %v470_v63 = vadd.f32 0.5, %v454_v25 }
  0x59   :  { %v355_v49 = vsub.f32 %v3826_v3, %v3957_v47  ;;  %v1130_v16 = vsel %vm7498_vm12, %v4282_v19, 0.0  ;;  %924 = vst.msk [vmem:[#allocation2 + $0x50] sm:$0xff] %vm7500_vm0, %v4292_v18  ;;  %v4313_v44 = vmul.f32 %v469_v61, %v4099_v53  ;;  %v7795_v15 = vshra.s32 %v4060_v43, 3 }
  0x5a   :  { %v425_v31 = vmul.f32 0.5, %v4267_v29  ;;  %925 = vst.msk [vmem:[#allocation2 + $0x68] sm:$0xff] %vm7500_vm0, %v4302_v33  ;;  %v4324_v3 = vmul.f32 %v470_v63, %v4102_v54  ;;  %v7796_v12 = vand.u32 7, %v3962_v9  ;;  %v7797_v51 = vmov 0 }
  0x5b   :  { %v4317_v52 = vand.u32 7, %v7795_v15  ;;  %v7800_v53 = vmov 0  ;;  %v89_v57 = vand.u32 7, %v3999_v38  ;;  %v426_v60 = vmul.f32 0.5, %v4274_v55  ;;  %926 = vst.msk [vmem:[#allocation2 + $0x80] sm:$0xff] %vm7500_vm0, %v4313_v44 }
  0x5c   :  { %vm4328_vm6 = vcmp.lt.s32.totalorder %v7796_v12, 7  ;;  %v7801_v53 = vsel %vm4336_vm5, 4294967295, %v7800_v53  ;;  %633 = vrot.lane.b32.xlu1 %v599_v24, %s3769_s27  ;;  %v694_v54 = vrot.slane %v4264_v17, 1  ;;  %v695_v42 = vrot.slane %v4270_v21, 1  ;;  %1163 = vrot.lane.b32.xlu0 %v1130_v16, %s3770_s19  ;;  %927 = vst.msk [vmem:[#allocation2 + $0x98] sm:$0xff] %vm7500_vm0, %v4324_v3 }
  0x5d   :  { %v7798_v51 = vsel %vm4328_vm6, 4294967295, %v7797_v51  ;;  %7802 = vst [vmem:[#allocation26_spill] sm:$0xff] %v7801_v53  ;;  %v7803_v37 = vmov 0  ;;  %v7806_v38 = vand.u32 7, %v3978_v22  ;;  %v7807_v0 = vmov 0  ;;  %vm4388_vm0 = vmand %vm7501_vm8, %vm4328_vm6 }
  0x5e   :  { %7799 = vst [vmem:[#allocation25_spill] sm:$0xff] %v7798_v51  ;;  %v7804_v37 = vsel %vm4351_vm14, 4294967295, %v7803_v37  ;;  %3675 = vtanh.f32 %v423_v46  ;;  %v600_v25 = vsel %vm7499_vm15, %v4282_v19, 0.0  ;;  %v696_v14 = vrot.slane %v4282_v19, 1 }
  0x5f   :  { %7805 = vst [vmem:[#allocation27_spill] sm:$0xff] %v7804_v37  ;;  %vm4357_vm10 = vcmp.lt.s32.totalorder %v7806_v38, 7  ;;  %v90_v61 = vand.u32 7, %v4002_v39  ;;  %v371_v24 = vmul.f32 %v3984_v28, %v355_v49  ;;  %vm7810_vm3 = vcmp.lt.s32.totalorder %v4049_v7, 7 }
  0x60   :  { %v7808_v0 = vsel %vm4357_vm10, 4294967295, %v7807_v0  ;;  %v1131_v63 = vsel %vm7810_vm3, %v4292_v18, 0.0  ;;  %vm7811_vm12 = vcmp.lt.s32.totalorder %v3962_v9, 7  ;;  %v7812_v16 = vrot.slane %v4128_v30, 1  ;;  %635 = vrot.lane.b32.xlu1 %v600_v25, %s3769_s27 }
  0x61   :  { %7809 = vst [vmem:[#allocation28_spill] sm:$0xff] %v7808_v0  ;;  %v4376_v46 = vsel %vm7811_vm12, %v694_v54, %v695_v42  ;;  %vm7813_vm15 = vmmov %vm7811_vm12  ;;  %v7815_v39 = vmov 0  ;;  %3677 = vtanh.f32 %v425_v31  ;;  %vm7824_vm3 = vcmask 261120   ;;  %1165 = vrot.lane.b32.xlu0 %v1131_v63, %s3770_s19 }
  0x62   :  { %v4382_v15 = vsel %vm7813_vm15, %v7812_v16, %v694_v54  ;;  %v7816_v39 = vsel %vm4388_vm0, 4294967295, %v7815_v39  ;;  %v1240_v49 = vsel %vm4336_vm5, %v4376_v46, 0.0  ;;  %v7818_v54 = vmov %v7806_v38  ;;  %vm7825_vm9 = vmmov %vm7824_vm3 }
  0x63   :  { %7814 = vst [vmem:[#allocation29_spill] sm:$0xff] %v4382_v15  ;;  %7817 = vst [vmem:[#allocation30_spill] sm:$0xff] %v7816_v39  ;;  %v1239_v12 = vsel %vm4351_vm14, %v4382_v15, 0.0  ;;  %vm4401_vm12 = vcmp.ge.s32.totalorder %v7818_v54, 1  ;;  %v7819_v38 = vmov 0  ;;  %vm4405_vm15 = vcmp.lt.s32.totalorder %v89_v57, 7 }
  0x64   :  { %v7820_v38 = vsel %vm4401_vm12, 4294967295, %v7819_v38  ;;  %v7821_v16 = vmov 0  ;;  %3679 = vtanh.f32 %v426_v60  ;;  %1256 = vst.msk [vmem:[#allocation2 + $0x178] sm:$0xff] %vm7824_vm3, %v1240_v49  ;;  %vm7826_vm8 = vcmp.lt.s32.totalorder %v3962_v9, 7 }
  0x65   :  { %v7822_v16 = vsel %vm4405_vm15, 4294967295, %v7821_v16  ;;  %1255 = vst.msk [vmem:[#allocation2 + $0x160] sm:$0xff] %vm7825_vm9, %v1239_v12  ;;  %v4414_v31 = vsel %vm7826_vm8, %v695_v42, %v696_v14  ;;  %vm7827_vm11 = vcmp.lt.s32.totalorder %v4020_v48, 7  ;;  %v7828_v22 = vmov 0 }
  0x66   :  { %7823 = vst [vmem:[#allocation31_spill] sm:$0xff] %v7822_v16  ;;  %vm4420_vm7 = vmand %vm7827_vm11, %vm4357_vm10  ;;  %v697_v60 = vrot.slane %v4292_v18, 1  ;;  %vm4425_vm14 = vcmp.ge.s32.totalorder %v89_v57, 1  ;;  %v7831_v25 = vmov 0  ;;  %v91_v49 = vand.u32 7, %v4005_v40 }
  0x67   :  { %v7829_v22 = vsel %vm4420_vm7, 4294967295, %v7828_v22  ;;  %v7832_v25 = vsel %vm4425_vm14, 4294967295, %v7831_v25  ;;  %vm7833_vm8 = vcmp.ge.s32.totalorder %v4053_v34, 1  ;;  %v1225_v12 = vsel %vm4388_vm0, %v4414_v31, 0.0  ;;  %vm7835_vm11 = vmmov %vm7824_vm3 }
  0x68   :  { %7830 = vst [vmem:[#allocation32_spill] sm:$0xff] %v7829_v22  ;;  %v601_v42 = vsel %vm7833_vm8, %v4292_v18, 0.0  ;;  %v92_v54 = vand.u32 7, %v4008_v41  ;;  %v391_v59 = vmul.f32 %v3982_v23, %v371_v24  ;;  %vm7834_vm9 = vcmp.lt.s32.totalorder %v4051_v26, 7  ;;  %1241 = vst.msk [vmem:[#allocation2 + $0x10] sm:$0xff] %vm7835_vm11, %v1225_v12  ;;  %v3676_v2 = vpop.eup %3675 }
  0x69   :  { %v1132_v57 = vsel %vm7834_vm9, %v4302_v33, 0.0  ;;  %vm7836_vm3 = vcmp.lt.s32.totalorder %v3962_v9, 7  ;;  %vm4447_vm5 = vcmp.lt.s32.totalorder %v90_v61, 7  ;;  %v7837_v63 = vmov 0  ;;  %637 = vrot.lane.b32.xlu1 %v601_v42, %s3769_s27 }
  0x6a   :  { %v4445_v40 = vsel %vm7836_vm3, %v696_v14, %v697_v60  ;;  %v7838_v63 = vsel %vm4447_vm5, 4294967295, %v7837_v63  ;;  %vm7840_vm8 = vcmp.lt.s32.totalorder %v4049_v7, 7  ;;  %v7841_v41 = vmov 0  ;;  %1167 = vrot.lane.b32.xlu0 %v1132_v57, %s3770_s19 }
  0x6b   :  { %7839 = vst [vmem:[#allocation33_spill] sm:$0xff] %v7838_v63  ;;  %vm4455_vm0 = vmand %vm7840_vm8, %vm4405_vm15  ;;  %v698_v24 = vrot.slane %v4302_v33, 1  ;;  %v1226_v12 = vsel %vm4420_vm7, %v4445_v40, 0.0  ;;  %vm4463_vm9 = vcmp.ge.s32.totalorder %v90_v61, 1  ;;  %v7844_v14 = vmov 0 }
  0x6c   :  { %v7842_v41 = vsel %vm4455_vm0, 4294967295, %v7841_v41  ;;  %v7845_v14 = vsel %vm4463_vm9, 4294967295, %v7844_v14  ;;  %v4469_v37 = vadd.s32 56, %v3962_v9  ;;  %v532_v53 = vrot.slane %v4264_v17, 7  ;;  %1242 = vst.msk [vmem:[#allocation2 + $0x28] sm:$0xff] %vm7835_vm11, %v1226_v12 }
  0x6d   :  { %7843 = vst [vmem:[#allocation34_spill] sm:$0xff] %v7842_v41  ;;  %7846 = vst [vmem:[#allocation35_spill] sm:$0xff] %v7845_v14  ;;  %v533_v39 = vrot.slane %v4270_v21, 7  ;;  %v4477_v22 = vsel %vm7836_vm3, %v697_v60, %v698_v24  ;;  %vm4479_vm8 = vcmp.lt.s32.totalorder %v91_v49, 7  ;;  %v7848_v61 = vmov 0 }
  0x6e   :  { %7847 = vst [vmem:[#allocation36_spill] sm:$0xff] %v4477_v22  ;;  %v7849_v61 = vsel %vm4479_vm8, 4294967295, %v7848_v61  ;;  %vm7851_vm7 = vcmp.ge.s32.totalorder %v4055_v8, 1  ;;  %v1227_v21 = vsel %vm4455_vm0, %v4477_v22, 0.0  ;;  %vm7852_vm11 = vcmp.lt.s32.totalorder %v4051_v26, 7 }
  0x6f   :  { %7850 = vst [vmem:[#allocation37_spill] sm:$0xff] %v7849_v61  ;;  %v602_v42 = vsel %vm7851_vm7, %v4302_v33, 0.0  ;;  %vm4494_vm3 = vmand %vm7852_vm11, %vm4447_vm5  ;;  %v7853_v60 = vmov 0  ;;  %v699_v12 = vrot.slane %v4313_v44, 1  ;;  %v4500_v57 = vadd.f32 %v3989_v27, %v391_v59  ;;  %v1259_v11 = vld [vmem:[#allocation2 + $0x10] sm:$0xff] }
  0x70   :  { %v7854_v60 = vsel %vm4494_vm3, 4294967295, %v7853_v60  ;;  %vm7856_vm7 = vcmp.lt.s32.totalorder %v4053_v34, 7  ;;  %vm7857_vm0 = vcmp.lt.s32.totalorder %v4017_v45, 7  ;;  %v7858_v41 = vmov 0  ;;  %639 = vrot.lane.b32.xlu1 %v602_v42, %s3769_s27 }
  0x71   :  { %7855 = vst [vmem:[#allocation38_spill] sm:$0xff] %v7854_v60  ;;  %v1133_v17 = vsel %vm7856_vm7, %v4313_v44, 0.0  ;;  %vm4509_vm13 = vmand %vm7857_vm0, %vm4111_vm2  ;;  %vm7861_vm11 = vcmask 261120   ;;  %vm4514_vm1 = vcmp.ge.s32.totalorder %v91_v49, 1  ;;  %v7862_v5 = vmov 0 }
  0x72   :  { %v7859_v41 = vsel %vm4509_vm13, 4294967295, %v7858_v41  ;;  %1243 = vst.msk [vmem:[#allocation2 + $0x40] sm:$0xff] %vm7861_vm11, %v1227_v21  ;;  %v7863_v5 = vsel %vm4514_vm1, 4294967295, %v7862_v5  ;;  %vm4518_vm4 = vcmp.lt.s32.totalorder %v92_v54, 7  ;;  %v7865_v59 = vmov 0  ;;  %vm4534_vm11 = vmand %vm7856_vm7, %vm4479_vm8  ;;  %1169 = vrot.lane.b32.xlu0 %v1133_v17, %s3770_s19 }
  0x73   :  { %7860 = vst [vmem:[#allocation39_spill] sm:$0xff] %v7859_v41  ;;  %7864 = vst [vmem:[#allocation40_spill] sm:$0xff] %v7863_v5  ;;  %v7866_v59 = vsel %vm4518_vm4, 4294967295, %v7865_v59  ;;  %v4523_v1 = vadd.s32 64, %v3962_v9  ;;  %v534_v58 = vrot.slane %v4282_v19, 7  ;;  %vm7868_vm0 = vcmp.lt.s32.totalorder %v3962_v9, 7 }
  0x74   :  { %7867 = vst [vmem:[#allocation41_spill] sm:$0xff] %v7866_v59  ;;  %v4528_v36 = vsel %vm7868_vm0, %v698_v24, %v699_v12  ;;  %v7870_v49 = vmov 0  ;;  %v7873_v50 = vand.u32 7, %v4060_v43  ;;  %v7874_v35 = vmov 0  ;;  %v3678_v24 = vpop.eup %3677  ;;  %v1262_v41 = vld [vmem:[#allocation2 + $0x28] sm:$0xff]  ;;  %v5222_v59 = vld [vmem:[%s7475_s1] sm:$0xff] }
  0x75   :  { %7869 = vst [vmem:[#allocation42_spill] sm:$0xff] %v4528_v36  ;;  %v7871_v49 = vsel %vm4534_vm11, 4294967295, %v7870_v49  ;;  %vm7877_vm0 = vcmp.lt.s32.totalorder %v3962_v9, 1  ;;  %v62_v21 = vshra.s32 %v4469_v37, 3  ;;  %vm7878_vm7 = vcmp.ge.s32.totalorder %v4020_v48, 1  ;;  %v3680_v42 = vpop.eup %3679 }
  0x76   :  { %7872 = vst [vmem:[#allocation43_spill] sm:$0xff] %v7871_v49  ;;  %vm4541_vm5 = vcmp.lt.s32.totalorder %v7873_v50, 7  ;;  %v4550_v6 = vsel %vm7877_vm0, %v532_v53, %v533_v39  ;;  %v1228_v50 = vsel %vm4494_vm3, %v4528_v36, 0.0  ;;  %vm4561_vm15 = vmand %vm7878_vm7, %vm4401_vm12  ;;  %v7879_v19 = vmov 0 }
  0x77   :  { %v7875_v35 = vsel %vm4541_vm5, 4294967295, %v7874_v35  ;;  %v7880_v19 = vsel %vm4561_vm15, 4294967295, %v7879_v19  ;;  %vm7882_vm0 = vcmp.ge.s32.totalorder %v4317_v52, 1  ;;  %vm7883_vm8 = vcmask 261120  }
  0x78   :  { %7876 = vst [vmem:[#allocation44_spill] sm:$0xff] %v7875_v35  ;;  %7881 = vst [vmem:[#allocation45_spill] sm:$0xff] %v7880_v19  ;;  %v603_v20 = vsel %vm7882_vm0, %v4313_v44, 0.0  ;;  %v7884_v60 = vrot.slane %v4324_v3, 1  ;;  %vm7885_vm3 = vcmp.lt.s32.totalorder %v3962_v9, 7  ;;  %v455_v10 = vmul.f32 0.5, %v3676_v2 }
  0x79   :  { %1244 = vst.msk [vmem:[#allocation2 + $0x58] sm:$0xff] %vm7883_vm8, %v1228_v50  ;;  %vm7887_vm7 = vcmp.ge.s32.totalorder %v4049_v7, 1  ;;  %v7888_v56 = vmov 0  ;;  %v427_v17 = vmul.f32 0.5, %v4500_v57  ;;  %vm7891_vm8 = vcmp.lt.s32.totalorder %v4055_v8, 7  ;;  %641 = vrot.lane.b32.xlu1 %v603_v20, %s3769_s27  ;;  %v515_v20 = vld [vmem:[%s7477_s3 + $0x98] sm:$0xff] }
  0x7a   :  { %v4574_v32 = vsel %vm7885_vm3, %v699_v12, %v7884_v60  ;;  %vm4580_vm2 = vmand %vm7887_vm7, %vm4425_vm14  ;;  %v1134_v50 = vsel %vm7891_vm8, %v4324_v3, 0.0  ;;  %vm4591_vm3 = vcmp.ge.s32.totalorder %v92_v54, 1  ;;  %v7892_v2 = vmov 0 }
  0x7b   :  { %7886 = vst [vmem:[#allocation46_spill] sm:$0xff] %v4574_v32  ;;  %v7889_v56 = vsel %vm4580_vm2, 4294967295, %v7888_v56  ;;  %v1229_v60 = vsel %vm4534_vm11, %v4574_v32, 0.0  ;;  %v7893_v2 = vsel %vm4591_vm3, 4294967295, %v7892_v2  ;;  %v63_v61 = vshra.s32 %v4523_v1, 3  ;;  %1171 = vrot.lane.b32.xlu0 %v1134_v50, %s3770_s19 }
  0x7c   :  { %7890 = vst [vmem:[#allocation47_spill] sm:$0xff] %v7889_v56  ;;  %7894 = vst [vmem:[#allocation48_spill] sm:$0xff] %v7893_v2  ;;  %vm7895_vm0 = vcmp.ge.s32.totalorder %v4051_v26, 1  ;;  %v7896_v36 = vmov 0  ;;  %vm7899_vm8 = vcmask 261120   ;;  %v1033_v54 = vsel %vm4509_vm13, %v4550_v6, 0.0 }
  0x7d   :  { %vm4601_vm7 = vmand %vm7895_vm0, %vm4463_vm9  ;;  %3496 = vmatprep.mubr.msk.f32.mxu1 %vm7899_vm8, %v1259_v11  ;;  %v7900_v49 = vrot.slane %v4128_v30, 7  ;;  %vm7901_vm11 = vcmp.lt.s32.totalorder %v3962_v9, 1  ;;  %v471_v63 = vadd.f32 0.5, %v455_v10  ;;  %v7905_v22 = vand.u32 7, %v4469_v37  ;;  %v514_v30 = vld [vmem:[%s7477_s3 + $0x90] sm:$0xff]  ;;  %1065 = vrot.lane.b32.xlu1 %v1033_v54, %s3771_s29 }
  0x7e   :  { %v7897_v36 = vsel %vm4601_vm7, 4294967295, %v7896_v36  ;;  %vm7903_vm14 = vmmov %vm7901_vm11  ;;  %v7906_v11 = vmov 0  ;;  %vm7909_vm13 = vcmp.ge.s32.totalorder %v4053_v34, 1  ;;  %3681 = vtanh.f32 %v427_v17 }
  0x7f   :  { %7898 = vst [vmem:[#allocation49_spill] sm:$0xff] %v7897_v36  ;;  %v4613_v12 = vsel %vm7901_vm11, %v7900_v49, %v532_v53  ;;  %v4617_v32 = vsel %vm7903_vm14, %v533_v39, %v534_v58  ;;  %vm7904_vm0 = vmmov %vm7899_vm8  ;;  %vm4622_vm8 = vcmp.lt.s32.totalorder %v7905_v22, 7  ;;  %v7910_v53 = vmov 0 }
  0x80   :  { %7902 = vst [vmem:[#allocation50_spill] sm:$0xff] %v4613_v12  ;;  %1245 = vst.msk [vmem:[#allocation2 + $0x70] sm:$0xff] %vm7904_vm0, %v1229_v60  ;;  %v7907_v11 = vsel %vm4622_vm8, 4294967295, %v7906_v11  ;;  %v7913_v39 = vrot.slane %v4292_v18, 7  ;;  %v457_v22 = vmul.f32 0.5, %v3678_v24  ;;  %v458_v49 = vmul.f32 0.5, %v3680_v42  ;;  %3497 = vmatmul.mubr.msk.f32.vlgmr.msra.gmra.mrb[0].mxu1 %vm7904_vm0, %v1262_v41 }
  0x81   :  { %7908 = vst [vmem:[#allocation51_spill] sm:$0xff] %v7907_v11  ;;  %vm4630_vm11 = vmand %vm7909_vm13, %vm4514_vm1  ;;  %v566_v60 = vsel %vm4561_vm15, %v4613_v12, 0.0  ;;  %v567_v24 = vsel %vm4580_vm2, %v4550_v6, 0.0  ;;  %v568_v41 = vsel %vm4601_vm7, %v4617_v32, 0.0  ;;  %v498_v42 = vld [vmem:[%s7477_s3 + $0x10] sm:$0xff]  ;;  %v937_v50 = vsel %vm4328_vm6, %v4376_v46, 0.0 }
  0x82   :  { %v7911_v53 = vsel %vm4630_vm11, 4294967295, %v7910_v53  ;;  %v4639_v10 = vsel %vm7903_vm14, %v534_v58, %v7913_v39  ;;  %v4653_v58 = vmul.f32 %v471_v63, %v4261_v13  ;;  %vm7914_vm13 = vmmov %vm7904_vm0  ;;  %v499_v13 = vld [vmem:[%s7477_s3 + $0x18] sm:$0xff]  ;;  %v1265_v63 = vld [vmem:[#allocation2 + $0x40] sm:$0xff]  ;;  %vm7915_vm14 = vcmp.ge.s32.totalorder %v4017_v45, 1  ;;  %969 = vrot.lane.b32.xlu0 %v937_v50, %s3769_s27 }
  0x83   :  { %7912 = vst [vmem:[#allocation52_spill] sm:$0xff] %v7911_v53  ;;  %582 = vst.msk [vmem:[#allocation2 + $0x18] sm:$0xff] %vm7914_vm13, %v566_v60  ;;  %v7916_v17 = vmov 0  ;;  %v473_v39 = vadd.f32 0.5, %v457_v22  ;;  %v474_v60 = vadd.f32 0.5, %v458_v49  ;;  %v569_v19 = vsel %vm4630_vm11, %v4639_v10, 0.0 }
  0x84   :  { %vm4675_vm0 = vmand %vm7915_vm14, %vm4328_vm6  ;;  %583 = vst.msk [vmem:[#allocation2 + $0x30] sm:$0xff] %vm7914_vm13, %v567_v24  ;;  %vm7921_vm2 = vcmp.lt.s32.totalorder %v4055_v8, 7  ;;  %v7922_v51 = vmov 0  ;;  %v701_v22 = vrot.slane %v4653_v58, 1  ;;  %v4696_v49 = vand.u32 7, %v62_v21 }
  0x85   :  { %v7917_v17 = vsel %vm4675_vm0, 4294967295, %v7916_v17  ;;  %vm7919_vm15 = vmmov %vm7914_vm13  ;;  %v4713_v21 = vmul.f32 %v473_v39, %v4267_v29  ;;  %v4716_v24 = vmul.f32 %v474_v60, %v4274_v55  ;;  %v3563_v53 = vpack.c.bf16 %v515_v20, %v514_v30 }
  0x86   :  { %7918 = vst [vmem:[#allocation53_spill] sm:$0xff] %v7917_v17  ;;  %584 = vst.msk [vmem:[#allocation2 + $0x48] sm:$0xff] %vm7919_vm15, %v568_v41  ;;  %v4700_v41 = vadd.s32 72, %v3962_v9  ;;  %v3565_v36 = vpack.c.bf16 %v499_v13, %v498_v42  ;;  %v727_v54 = vsel %vm4675_vm0, %v4382_v15, 0.0  ;;  %v7589_v56 = vrot.slane %v4302_v33, 7 }
  0x87   :  { %vm7920_vm7 = vmmov %vm7914_vm13  ;;  %7931 = vst [vmem:[#allocation56_spill] sm:$0xff] %v4713_v21  ;;  %v7932_v45 = vrot.slane %v4324_v3, 1  ;;  %v4729_v39 = vand.u32 7, %v63_v61  ;;  %v938_v30 = vsel %vm4357_vm10, %v4414_v31, 0.0  ;;  %v7935_v55 = vmov 0  ;;  %3564 = vmatprep.subr.bf16.mxu0 %v3563_v53  ;;  %v1271_v42 = vld [vmem:[#allocation2 + $0x70] sm:$0xff]  ;;  %759 = vrot.lane.b32.xlu1 %v727_v54, %s3771_s29 }
  0x88   :  { %3499 = vmatprep.mubr.msk.f32.mxu1 %vm7920_vm7, %v1265_v63  ;;  %vm4689_vm14 = vmand %vm7921_vm2, %vm4518_vm4  ;;  %vm7927_vm2 = vcmp.lt.s32.totalorder %v4317_v52, 7  ;;  %v7928_v63 = vmov 0  ;;  %vm7939_vm6 = vcmask 261120   ;;  %v7943_v50 = vand.u32 7, %v4523_v1  ;;  %3566 = vmatpush3.bf16.msra.mxu0 %v3565_v36 }
  0x89   :  { %v7923_v51 = vsel %vm4689_vm14, 4294967295, %v7922_v51  ;;  %vm7925_vm13 = vmmov %vm7920_vm7  ;;  %930 = vst.msk [vmem:[#allocation2 + $0xe0] sm:$0xff] %vm7939_vm6, %v4713_v21  ;;  %v7944_v60 = vmov 0  ;;  %v7948_v53 = vmov 0  ;;  %vm7952_vm0 = vnez %v7769_v4  ;;  %971 = vrot.lane.b32.xlu0 %v938_v30, %s3769_s27 }
  0x8a   :  { %7924 = vst [vmem:[#allocation54_spill] sm:$0xff] %v7923_v51  ;;  %928 = vst.msk [vmem:[#allocation2 + $0xb0] sm:$0xff] %vm7925_vm13, %v4653_v58  ;;  %vm7933_vm13 = vcmp.lt.s32.totalorder %v3962_v9, 7  ;;  %v541_v54 = vrot.slane %v4713_v21, 7  ;;  %v7960_v36 = vmov 0  ;;  %v7969_v30 = vrot.slane %v4176_v62, 7 }
  0x8b   :  { %vm7926_vm15 = vmmov %vm7920_vm7  ;;  %v4727_v29 = vsel %vm7933_vm13, %v7932_v45, %v701_v22  ;;  %v7938_v45 = vrot.slane %v4176_v62, 1  ;;  %v7972_v0 = vand.u32 7, %v4060_v43  ;;  %v7975_v51 = vrot.slane %v4716_v24, 1  ;;  %v517_v43 = vld [vmem:[%s7477_s3 + $0xa8] sm:$0xff] }
  0x8c   :  { %585 = vst.msk [vmem:[#allocation2 + $0x60] sm:$0xff] %vm7926_vm15, %v569_v19  ;;  %vm4708_vm7 = vmand %vm7927_vm2, %vm4541_vm5  ;;  %v1268_v19 = vld [vmem:[#allocation2 + $0x58] sm:$0xff]  ;;  %vm7934_vm15 = vcmp.lt.s32.totalorder %v4020_v48, 7  ;;  %v1230_v20 = vsel %vm4689_vm14, %v4727_v29, 0.0  ;;  %v539_v5 = vrot.slane %v4653_v58, 7 }
  0x8d   :  { %v7929_v63 = vsel %vm4708_vm7, 4294967295, %v7928_v63  ;;  %vm4738_vm2 = vmand %vm7934_vm15, %vm4401_vm12  ;;  %v4749_v61 = vsel %vm7933_vm13, %v701_v22, %v7938_v45  ;;  %vm4763_vm13 = vcmp.lt.s32.totalorder %v7943_v50, 7  ;;  %v64_v22 = vshra.s32 %v4700_v41, 3 }
  0x8e   :  { %7930 = vst [vmem:[#allocation55_spill] sm:$0xff] %v7929_v63  ;;  %v7936_v55 = vsel %vm4738_vm2, 4294967295, %v7935_v55  ;;  %vm7940_vm15 = vmmov %vm7939_vm6  ;;  %v1231_v13 = vsel %vm4708_vm7, %v4749_v61, 0.0  ;;  %v7945_v60 = vsel %vm4763_vm13, 4294967295, %v7944_v60  ;;  %vm7953_vm7 = vcmp.lt.s32.totalorder %v4696_v49, 7 }
  0x8f   :  { %7937 = vst [vmem:[#allocation57_spill] sm:$0xff] %v7936_v55  ;;  %931 = vst.msk [vmem:[#allocation2 + $0xf8] sm:$0xff] %vm7940_vm15, %v4716_v24  ;;  %v703_v45 = vrot.slane %v4713_v21, 1  ;;  %v3682_v55 = vpop.eup %3681 }
  0x90   :  { %vm7941_vm11 = vmmov %vm7939_vm6  ;;  %7946 = vst [vmem:[#allocation58_spill] sm:$0xff] %v7945_v60 }
  0x91   :  { %3500 = vmatmul.mubr.msk.f32.gmra.mrb[2].mxu1 %vm7941_vm11, %v1268_v19  ;;  %vm7942_vm5 = vmmov %vm7939_vm6  ;;  %vm7947_vm11 = vcmp.ge.s32.totalorder %v4055_v8, 1  ;;  %v824_v19 = vsel %vm7952_vm0, %v4613_v12, 0.0  ;;  %1247 = vst.msk [vmem:[#allocation2 + $0xa0] sm:$0xff] %vm7939_vm6, %v1231_v13  ;;  %v7957_v13 = vrot.slane %v4292_v18, 7  ;;  %vm7963_vm0 = vcmp.ge.s32.totalorder %v4020_v48, 1  ;;  %v3725_v48 = vld [vmem:[%s7474_s0 + $0x60] sm:$0xff] }
  0x92   :  { %1246 = vst.msk [vmem:[#allocation2 + $0x88] sm:$0xff] %vm7942_vm5, %v1230_v20  ;;  %vm4773_vm5 = vmand %vm7947_vm11, %vm4591_vm3  ;;  %v7954_v20 = vmov 0  ;;  %v7964_v18 = vmov 0  ;;  %856 = vrot.lane.b32.xlu1 %v824_v19, %s3770_s19  ;;  %v7979_v12 = vrot.slane %v4716_v24, 7  ;;  %v518_v19 = vld [vmem:[%s7477_s3 + $0xb0] sm:$0xff] }
  0x93   :  { %v7949_v53 = vsel %vm4773_vm5, 4294967295, %v7948_v53  ;;  %vm7951_vm15 = vmmov %vm7939_vm6  ;;  %vm7958_vm6 = vcmp.lt.s32.totalorder %v3962_v9, 1 }
  0x94   :  { %7950 = vst [vmem:[#allocation59_spill] sm:$0xff] %v7949_v53  ;;  %3502 = vmatprep.mubr.msk.f32.mxu1 %vm7951_vm15, %v1271_v42  ;;  %vm4788_vm11 = vmand %vm7953_vm7, %vm4622_vm8  ;;  %v1034_v42 = vsel %vm4738_vm2, %v4617_v32, 0.0  ;;  %v4804_v50 = vsel %vm7958_vm6, %v7957_v13, %v7589_v56  ;;  %vm7959_vm7 = vcmp.lt.s32.totalorder %v4729_v39, 7  ;;  %v7967_v56 = vrot.slane %v4176_v62, 1  ;;  %v516_v13 = vld [vmem:[%s7477_s3 + $0xa0] sm:$0xff] }
  0x95   :  { %v7955_v20 = vsel %vm4788_vm11, 4294967295, %v7954_v20  ;;  %vm4810_vm15 = vmand %vm7959_vm7, %vm4763_vm13  ;;  %vm7968_vm6 = vcmp.lt.s32.totalorder %v3962_v9, 7  ;;  %vm7970_vm7 = vcmp.lt.s32.totalorder %v3962_v9, 1  ;;  %v570_v63 = vsel %vm4773_vm5, %v4804_v50, 0.0  ;;  %1067 = vrot.lane.b32.xlu0 %v1034_v42, %s3771_s29 }
  0x96   :  { %7956 = vst [vmem:[#allocation60_spill] sm:$0xff] %v7955_v20  ;;  %v7961_v36 = vsel %vm4810_vm15, 4294967295, %v7960_v36  ;;  %vm4820_vm2 = vmand %vm7963_vm0, %vm4357_vm10  ;;  %v4829_v17 = vsel %vm7968_vm6, %v7967_v56, %v703_v45  ;;  %v4835_v4 = vsel %vm7970_vm7, %v7969_v30, %v541_v54  ;;  %vm4845_vm0 = vcmp.ge.s32.totalorder %v7972_v0, 1  ;;  %v500_v0 = vld [vmem:[%s7477_s3 + $0x20] sm:$0xff]  ;;  %v501_v20 = vld [vmem:[%s7477_s3 + $0x28] sm:$0xff] }
  0x97   :  { %7962 = vst [vmem:[#allocation61_spill] sm:$0xff] %v7961_v36  ;;  %v7965_v18 = vsel %vm4820_vm2, 4294967295, %v7964_v18  ;;  %7971 = vst [vmem:[#allocation63_spill] sm:$0xff] %v4835_v4  ;;  %v7973_v56 = vmov 0  ;;  %v1232_v30 = vsel %vm4788_vm11, %v4829_v17, 0.0  ;;  %v4856_v53 = vsel %vm7968_vm6, %v703_v45, %v7975_v51 }
  0x98   :  { %7966 = vst [vmem:[#allocation62_spill] sm:$0xff] %v7965_v18  ;;  %v7974_v56 = vsel %vm4845_vm0, 4294967295, %v7973_v56  ;;  %7976 = vst [vmem:[#allocation64_spill] sm:$0xff] %v4856_v53  ;;  %vm7977_vm7 = vcmask 261120   ;;  %v356_v51 = vsub.f32 %v3725_v48, %v3957_v47  ;;  %v1233_v45 = vsel %vm4810_vm15, %v4856_v53, 0.0 }
  0x99   :  { %586 = vst.msk [vmem:[#allocation2 + $0x78] sm:$0xff] %vm7977_vm7, %v570_v63  ;;  %vm7978_vm6 = vmmov %vm7977_vm7  ;;  %vm7980_vm7 = vcmp.lt.s32.totalorder %v3962_v9, 1  ;;  %vm7982_vm11 = vcmp.ge.s32.totalorder %v4317_v52, 1  ;;  %v7983_v48 = vmov 0  ;;  %vm7990_vm15 = vcmask 261120   ;;  %v1274_v4 = vld [vmem:[#allocation2 + $0x88] sm:$0xff] }
  0x9a   :  { %1248 = vst.msk [vmem:[#allocation2 + $0xb8] sm:$0xff] %vm7978_vm6, %v1232_v30  ;;  %v4882_v15 = vsel %vm7980_vm7, %v541_v54, %v7979_v12  ;;  %vm4888_vm10 = vmand %vm7982_vm11, %vm4845_vm0  ;;  %v519_v30 = vld [vmem:[%s7477_s3 + $0xb8] sm:$0xff]  ;;  %v728_v12 = vsel %vm4820_vm2, %v4376_v46, 0.0  ;;  %vm7985_vm6 = vnez %v7832_v25  ;;  %vm7986_vm11 = vcmp.lt.s32.totalorder %v4049_v7, 7  ;;  %3503 = vmatmul.mubr.msk.f32.gmra.mrb[4].mxu1 %vm7990_vm15, %v1274_v4 }
  0x9b   :  { %7981 = vst [vmem:[#allocation65_spill] sm:$0xff] %v4882_v15  ;;  %v7984_v48 = vsel %vm4888_vm10, 4294967295, %v7983_v48  ;;  %vm4906_vm7 = vmand %vm7986_vm11, %vm7985_vm6  ;;  %v7987_v54 = vmov 0  ;;  %v4911_v63 = vand.u32 7, %v64_v22  ;;  %v459_v36 = vmul.f32 0.5, %v3682_v55  ;;  %v502_v22 = vld [vmem:[%s7477_s3 + $0x30] sm:$0xff]  ;;  %761 = vrot.lane.b32.xlu1 %v728_v12, %s3771_s29 }
  0x9c   :  { %v7988_v54 = vsel %vm4906_vm7, 4294967295, %v7987_v54  ;;  %1249 = vst.msk [vmem:[#allocation2 + $0xd0] sm:$0xff] %vm7990_vm15, %v1233_v45  ;;  %vm7991_vm5 = vnez %v7822_v16  ;;  %v7992_v18 = vrot.slane %v4313_v44, 7  ;;  %v7993_v46 = vrot.slane %v4302_v33, 7  ;;  %v503_v55 = vld [vmem:[%s7477_s3 + $0x38] sm:$0xff] }
  0x9d   :  { %7989 = vst [vmem:[#allocation66_spill] sm:$0xff] %v7988_v54  ;;  %v939_v42 = vsel %vm7991_vm5, %v4445_v40, 0.0  ;;  %vm7994_vm2 = vcmp.lt.s32.totalorder %v3962_v9, 1  ;;  %v3567_v53 = vpack.c.bf16 %v517_v43, %v516_v13  ;;  %v3569_v21 = vpack.c.bf16 %v501_v20, %v500_v0  ;;  %v1277_v20 = vld [vmem:[#allocation2 + $0xa0] sm:$0xff]  ;;  %v521_v43 = vld [vmem:[%s7477_s3 + $0xc8] sm:$0xff]  ;;  %v8016_v54 = vld [vmem:[#allocation33_spill] sm:$0xff] }
  0x9e   :  { %v4922_v15 = vsel %vm7994_vm2, %v7993_v46, %v7992_v18  ;;  %v475_v45 = vadd.f32 0.5, %v459_v36  ;;  %v372_v60 = vmul.f32 %v3984_v28, %v356_v51  ;;  %v3571_v18 = vpack.c.bf16 %v519_v30, %v518_v19  ;;  %v520_v13 = vld [vmem:[%s7477_s3 + $0xc0] sm:$0xff]  ;;  %973 = vrot.lane.b32.xlu0 %v939_v42, %s3769_s27 }
  0x9f   :  { %v571_v33 = vsel %vm4888_vm10, %v4922_v15, 0.0  ;;  %v7995_v36 = vand.u32 7, %v4700_v41  ;;  %v7996_v4 = vmov 0  ;;  %vm7619_vm11 = vcmp.lt.s32.totalorder %v4911_v63, 7  ;;  %3568 = vmatprep.subr.bf16.mxu0 %v3567_v53 }
  0xa0   :  { %587 = vst.msk [vmem:[#allocation2 + $0x90] sm:$0xff] %vm7990_vm15, %v571_v33  ;;  %v825_v0 = vsel %vm4401_vm12, %v4550_v6, 0.0  ;;  %vm7999_vm10 = vcmp.ge.s32.totalorder %v4049_v7, 1  ;;  %v8000_v51 = vmov 0  ;;  %v4963_v19 = vmul.f32 %v475_v45, %v4500_v57  ;;  %3570 = vmatpush3.bf16.msra.mxu0 %v3569_v21  ;;  %v504_v21 = vld [vmem:[%s7477_s3 + $0x40] sm:$0xff]  ;;  %v522_v45 = vld [vmem:[%s7477_s3 + $0xd0] sm:$0xff] }
  0xa1   :  { %vm4944_vm2 = vcmp.lt.s32.totalorder %v7995_v36, 7  ;;  %vm4958_vm14 = vmand %vm7999_vm10, %vm7991_vm5  ;;  %v392_v53 = vmul.f32 %v3982_v23, %v372_v60  ;;  %v3573_v30 = vpack.c.bf16 %v503_v55, %v502_v22  ;;  %v1035_v12 = vsel %vm4906_vm7, %v4639_v10, 0.0  ;;  %3572 = vmatprep.subr.bf16.mxu0 %v3571_v18  ;;  %v505_v60 = vld [vmem:[%s7477_s3 + $0x48] sm:$0xff]  ;;  %v1280_v55 = vld [vmem:[#allocation2 + $0xb8] sm:$0xff]  ;;  %858 = vrot.lane.b32.xlu1 %v825_v0, %s3770_s19 }
  0xa2   :  { %v7997_v4 = vsel %vm4944_vm2, 4294967295, %v7996_v4  ;;  %v8001_v51 = vsel %vm4958_vm14, 4294967295, %v8000_v51  ;;  %vm4973_vm15 = vmand %vm7619_vm11, %vm4944_vm2  ;;  %v8002_v6 = vmov 0  ;;  %vm8005_vm10 = vcmask 261120   ;;  %v523_v33 = vld [vmem:[%s7477_s3 + $0xd8] sm:$0xff]  ;;  %1069 = vrot.lane.b32.xlu0 %v1035_v12, %s3771_s29 }
  0xa3   :  { %7998 = vst [vmem:[#allocation67_spill] sm:$0xff] %v7997_v4  ;;  %v8003_v6 = vsel %vm4973_vm15, 4294967295, %v8002_v6  ;;  %3505 = vmatprep.mubr.msk.f32.mxu1 %vm8005_vm10, %v1277_v20  ;;  %v3575_v57 = vpack.c.bf16 %v521_v43, %v520_v13  ;;  %v7623_v42 = vrot.slane %v4963_v19, 1  ;;  %vm8006_vm7 = vmmov %vm8005_vm10  ;;  %v7627_v46 = vrot.slane %v4963_v19, 7  ;;  %v1283_v20 = vld [vmem:[#allocation2 + $0xd0] sm:$0xff] }
  0xa4   :  { %8004 = vst [vmem:[#allocation68_spill] sm:$0xff] %v8003_v6  ;;  %932 = vst.msk [vmem:[#allocation2 + $0x110] sm:$0xff] %vm8006_vm7, %v4963_v19  ;;  %v4989_v22 = vadd.f32 %v3989_v27, %v392_v53  ;;  %v729_v18 = vsel %vm4958_vm14, %v4414_v31, 0.0  ;;  %3506 = vmatmul.mubr.msk.f32.gmra.mrb[6].mxu1 %vm8006_vm7, %v1280_v55  ;;  %vm8007_vm10 = vcmp.lt.s32.totalorder %v4051_v26, 7  ;;  %v8008_v13 = vmov 0  ;;  %3574 = vmatpush3.bf16.msra.mxu0 %v3573_v30  ;;  %v8015_v55 = vld [vmem:[#allocation36_spill] sm:$0xff] }
  0xa5   :  { %vm5007_vm11 = vmand %vm8007_vm10, %vm4463_vm9  ;;  %v8011_v43 = vrot.slane %v4716_v24, 1  ;;  %vm8012_vm5 = vcmp.lt.s32.totalorder %v3962_v9, 7  ;;  %v8013_v36 = vrot.slane %v4716_v24, 7  ;;  %vm8014_vm7 = vcmp.lt.s32.totalorder %v3962_v9, 1  ;;  %3576 = vmatprep.subr.bf16.mxu0 %v3575_v57  ;;  %v507_v30 = vld [vmem:[%s7477_s3 + $0x58] sm:$0xff]  ;;  %v3726_v57 = vld [vmem:[%s7474_s0 + $0x68] sm:$0xff]  ;;  %763 = vrot.lane.b32.xlu1 %v729_v18, %s3771_s29 }
  0xa6   :  { %v8009_v13 = vsel %vm5007_vm11, 4294967295, %v8008_v13  ;;  %v428_v53 = vmul.f32 0.5, %v4989_v22  ;;  %v3577_v12 = vpack.c.bf16 %v505_v60, %v504_v21  ;;  %vm8017_vm10 = vnez %v8016_v54  ;;  %v524_v21 = vld [vmem:[%s7477_s3 + $0xe0] sm:$0xff] }
  0xa7   :  { %8010 = vst [vmem:[#allocation69_spill] sm:$0xff] %v8009_v13  ;;  %v5017_v31 = vsel %vm8012_vm5, %v8011_v43, %v7623_v42  ;;  %v5025_v0 = vsel %vm8014_vm7, %v8013_v36, %v7627_v46  ;;  %v940_v16 = vsel %vm8017_vm10, %v8015_v55, 0.0  ;;  %vm8018_vm5 = vcmask 261120   ;;  %v506_v36 = vld [vmem:[%s7477_s3 + $0x50] sm:$0xff] }
  0xa8   :  { %v1234_v43 = vsel %vm4973_vm15, %v5017_v31, 0.0  ;;  %3508 = vmatprep.mubr.msk.f32.mxu1 %vm8018_vm5, %v1283_v20  ;;  %v3579_v42 = vpack.c.bf16 %v523_v33, %v522_v45  ;;  %vm8019_vm7 = vmmov %vm8018_vm5  ;;  %3683 = vtanh.f32 %v428_v53  ;;  %v357_v60 = vsub.f32 %v3726_v57, %v3957_v47  ;;  %v525_v45 = vld [vmem:[%s7477_s3 + $0xe8] sm:$0xff]  ;;  %v1653_v33 = vld [vmem:[%s7478_s4] sm:$0xff]  ;;  %975 = vrot.lane.b32.xlu0 %v940_v16, %s3769_s27 }
  0xa9   :  { %1250 = vst.msk [vmem:[#allocation2 + $0xe8] sm:$0xff] %vm8019_vm7, %v1234_v43  ;;  %v1654_v20 = vld [vmem:[%s7478_s4 + $0x8] sm:$0xff]  ;;  %v826_v47 = vsel %vm7985_vm6, %v4617_v32, 0.0  ;;  %3578 = vmatpush3.bf16.msra.mxu0 %v3577_v12  ;;  %v3581_v53 = vpack.c.bf16 %v507_v30, %v506_v36  ;;  %v1036_v57 = vsel %vm5007_vm11, %v4804_v50, 0.0  ;;  %vm8020_vm5 = vcmp.ge.s32.totalorder %v4051_v26, 1  ;;  %v508_v32 = vld [vmem:[%s7477_s3 + $0x60] sm:$0xff] }
  0xaa   :  { %v373_v43 = vmul.f32 %v3984_v28, %v357_v60  ;;  %vm5071_vm7 = vmand %vm8020_vm5, %vm8017_vm10  ;;  %v8021_v18 = vmov 0  ;;  %3580 = vmatprep.subr.bf16.mxu0 %v3579_v42  ;;  %v3583_v16 = vpack.c.bf16 %v525_v45, %v524_v21  ;;  %v509_v28 = vld [vmem:[%s7477_s3 + $0x68] sm:$0xff]  ;;  %v3772_v12 = vmov 0.0|0.0   ;;  %v526_v60 = vld [vmem:[%s7477_s3 + $0xf0] sm:$0xff]  ;;  %860 = vrot.lane.b32.xlu1 %v826_v47, %s3770_s19 }
  0xab   :  { %v8022_v18 = vsel %vm5071_vm7, 4294967295, %v8021_v18  ;;  %3599 = vmatprep.subr.bf16.mxu1 %v3772_v12  ;;  %v3600_v36 = vpack.c.bf16 %v1654_v20, %v1653_v33  ;;  %v527_v42 = vld [vmem:[%s7477_s3 + $0xf8] sm:$0xff]  ;;  %v730_v21 = vsel %vm5071_vm7, %v4445_v40, 0.0  ;;  %v5094_v45 = vadd.s32 80, %v3962_v9  ;;  %v8023_v20 = vld [vmem:[#allocation42_spill] sm:$0xff] }
  0xac   :  { %v393_v30 = vmul.f32 %v3982_v23, %v373_v43  ;;  %1071 = vrot.lane.b32.xlu0 %v1036_v57, %s3771_s29  ;;  %v3585_v33 = vpack.c.bf16 %v509_v28, %v508_v32  ;;  %v8024_v43 = vld [vmem:[#allocation37_spill] sm:$0xff]  ;;  %v510_v57 = vld [vmem:[%s7477_s3 + $0x70] sm:$0xff]  ;;  %vm8026_vm15 = vcmp.lt.s32.totalorder %v4053_v34, 7  ;;  %vm8030_vm10 = vcmask 261120  }
  0xad   :  { %3601 = vmatpush3.bf16.msra.mxu1 %v3600_v36  ;;  %3582 = vmatpush3.bf16.msra.mxu0 %v3581_v53  ;;  %vm8025_vm5 = vnez %v8024_v43  ;;  %v3587_v36 = vpack.c.bf16 %v527_v42, %v526_v60  ;;  %v511_v40 = vld [vmem:[%s7477_s3 + $0x78] sm:$0xff]  ;;  %vm5112_vm11 = vmand %vm8026_vm15, %vm4514_vm1  ;;  %v827_v32 = vsel %vm4463_vm9, %v4639_v10, 0.0  ;;  %v65_v28 = vshra.s32 %v5094_v45, 3 }
  0xae   :  { %v5097_v23 = vadd.f32 %v3989_v27, %v393_v30  ;;  %v941_v12 = vsel %vm8025_vm5, %v8023_v20, 0.0  ;;  %3584 = vmatprep.subr.bf16.mxu0 %v3583_v16  ;;  %v8027_v27 = vmov 0  ;;  %765 = vrot.lane.b32.xlu1 %v730_v21, %s3771_s29  ;;  %v3589_v30 = vpack.c.bf16 %v511_v40, %v510_v57 }
  0xaf   :  { %v8028_v27 = vsel %vm5112_vm11, 4294967295, %v8027_v27  ;;  %v1037_v60 = vsel %vm5112_vm11, %v4922_v15, 0.0  ;;  %vm8031_vm15 = vcmp.ge.s32.totalorder %v4053_v34, 1  ;;  %v8032_v42 = vmov 0 }
  0xb0   :  { %v1286_v47 = vld [vmem:[#allocation2 + $0xe8] sm:$0xff]  ;;  %8029 = vst [vmem:[#allocation36_spill] sm:$0xff] %v8028_v27  ;;  %v429_v53 = vmul.f32 0.5, %v5097_v23  ;;  %977 = vrot.lane.b32.xlu0 %v941_v12, %s3769_s27  ;;  %v538_v10 = vrot.slane %v4324_v3, 7  ;;  %v7634_v12 = vand.u32 7, %v5094_v45  ;;  %v5145_v40 = vand.u32 7, %v65_v28 }
  0xb1   :  { %3509 = vmatmul.mubr.msk.f32.gmra.mrb[8].mxu1 %vm8030_vm10, %v1286_v47  ;;  %3586 = vmatpush3.bf16.msra.mxu0 %v3585_v33  ;;  %vm5131_vm10 = vmand %vm8031_vm15, %vm8025_vm5  ;;  %v5138_v33 = vadd.s32 96, %v3962_v9  ;;  %vm8036_vm15 = vcmp.lt.s32.totalorder %v4055_v8, 7  ;;  %vm8041_vm5 = vcmp.lt.s32.totalorder %v3962_v9, 1  ;;  %v8055_v6 = vrot.slane %v4963_v19, 7 }
  0xb2   :  { %v3684_v16 = vpop.eup %3683  ;;  %3685 = vtanh.f32 %v429_v53  ;;  %v8033_v42 = vsel %vm5131_vm10, 4294967295, %v8032_v42  ;;  %3588 = vmatprep.subr.bf16.mxu0 %v3587_v36  ;;  %862 = vrot.lane.b32.xlu1 %v827_v32, %s3770_s19  ;;  %v731_v57 = vsel %vm5131_vm10, %v8015_v55, 0.0  ;;  %v8035_v36 = vld [vmem:[#allocation46_spill] sm:$0xff]  ;;  %vm5160_vm11 = vmand %vm8036_vm15, %vm4591_vm3  ;;  %v8037_v32 = vmov 0 }
  0xb3   :  { %8034 = vst [vmem:[#allocation42_spill] sm:$0xff] %v8033_v42  ;;  %v460_v21 = vmul.f32 0.5, %v3684_v16  ;;  %v942_v53 = vsel %vm4518_vm4, %v8035_v36, 0.0  ;;  %v5151_v16 = vadd.s32 88, %v3962_v9  ;;  %v8038_v32 = vsel %vm5160_vm11, 4294967295, %v8037_v32 }
  0xb4   :  { %1073 = vrot.lane.b32.xlu0 %v1037_v60, %s3771_s29  ;;  %8039 = vst [vmem:[#allocation46_spill] sm:$0xff] %v8038_v32  ;;  %v8040_v55 = vrot.slane %v4313_v44, 7  ;;  %vm5172_vm10 = vcmp.lt.s32.totalorder %v7634_v12, 7  ;;  %vm7632_vm9 = vcmp.lt.s32.totalorder %v5145_v40, 7  ;;  %v8045_v44 = vmov 0 }
  0xb5   :  { %v476_v47 = vadd.f32 0.5, %v460_v21  ;;  %3590 = vmatpush3.bf16.msra.mxu0 %v3589_v30  ;;  %v8042_v30 = vmov 0  ;;  %vm5183_vm15 = vmand %vm7632_vm9, %vm5172_vm10  ;;  %vm8049_vm9 = vcmp.ge.s32.totalorder %v4055_v8, 1  ;;  %v8053_v12 = vrot.slane %v4963_v19, 1 }
  0xb6   :  { %v5168_v28 = vsel %vm8041_vm5, %v8040_v55, %v538_v10  ;;  %v8043_v30 = vsel %vm5172_vm10, 4294967295, %v8042_v30  ;;  %767 = vrot.lane.b32.xlu1 %v731_v57, %s3771_s29  ;;  %v8046_v44 = vsel %vm5183_vm15, 4294967295, %v8045_v44  ;;  %vm8048_vm5 = vcmask 261120   ;;  %vm5202_vm7 = vmand %vm8049_vm9, %vm4518_vm4 }
  0xb7   :  { %v5154_v46 = vmul.f32 %v476_v47, %v4989_v22  ;;  %8044 = vst [vmem:[#allocation70_spill] sm:$0xff] %v8043_v30  ;;  %v67_v22 = vshra.s32 %v5138_v33, 3  ;;  %8047 = vst [vmem:[#allocation71_spill] sm:$0xff] %v8046_v44  ;;  %v828_v47 = vsel %vm4514_vm1, %v4804_v50, 0.0  ;;  %v1038_v57 = vsel %vm5160_vm11, %v5168_v28, 0.0 }
  0xb8   :  { %979 = vrot.lane.b32.xlu0 %v942_v53, %s3769_s27  ;;  %v8050_v55 = vmov 0  ;;  %v66_v50 = vshra.s32 %v5151_v16, 3  ;;  %vm8056_vm11 = vcmp.lt.s32.totalorder %v3962_v9, 1  ;;  %vm8058_vm9 = vcmask 261120  }
  0xb9   :  { %v706_v60 = vrot.slane %v5154_v46, 1  ;;  %933 = vst.msk [vmem:[#allocation2 + $0x128] sm:$0xff] %vm8048_vm5, %v5154_v46  ;;  %v544_v21 = vrot.slane %v5154_v46, 7  ;;  %v8051_v55 = vsel %vm5202_vm7, 4294967295, %v8050_v55  ;;  %vm8054_vm5 = vcmp.lt.s32.totalorder %v3962_v9, 7 }
  0xba   :  { %8052 = vst [vmem:[#allocation72_spill] sm:$0xff] %v8051_v55  ;;  %v5229_v42 = vand.u32 7, %v67_v22  ;;  %864 = vrot.lane.b32.xlu1 %v828_v47, %s3770_s19  ;;  %v732_v14 = vsel %vm5202_vm7, %v8023_v20, 0.0  ;;  %v1648_v44 = vmul.f32 0.5, %v5222_v59  ;;  %v8061_v47 = vmov 0 }
  0xbb   :  { %v5210_v53 = vsel %vm8054_vm5, %v8053_v12, %v706_v60  ;;  %v5217_v32 = vsel %vm8056_vm11, %v8055_v6, %v544_v21  ;;  %vm8059_vm11 = vnez %v7875_v35  ;;  %vm8060_vm5 = vcmp.lt.s32.totalorder %v4317_v52, 7 }
  0xbc   :  { %v3686_v27 = vpop.eup %3685  ;;  %v1235_v12 = vsel %vm5183_vm15, %v5210_v53, 0.0  ;;  %8057 = vst [vmem:[#allocation73_spill] sm:$0xff] %v5229_v42  ;;  %1075 = vrot.lane.b32.xlu0 %v1038_v57, %s3771_s29  ;;  %v943_v22 = vsel %vm8059_vm11, %v4727_v29, 0.0  ;;  %vm5246_vm15 = vmand %vm8060_vm5, %vm4845_vm0  ;;  %v8065_v57 = vmov 0  ;;  %v5256_v20 = vand.u32 7, %v66_v50 }
  0xbd   :  { %1251 = vst.msk [vmem:[#allocation2 + $0x100] sm:$0xff] %vm8058_vm9, %v1235_v12  ;;  %v461_v13 = vmul.f32 0.5, %v3686_v27  ;;  %v8062_v47 = vsel %vm5246_vm15, 4294967295, %v8061_v47  ;;  %v8064_v27 = vand.u32 7, %v4469_v37  ;;  %vm8068_vm4 = vcmp.lt.s32.totalorder %v3962_v9, 1 }
  0xbe   :  { %8063 = vst [vmem:[#allocation74_spill] sm:$0xff] %v8062_v47  ;;  %8067 = vst [vmem:[#allocation75_spill] sm:$0xff] %v5256_v20  ;;  %v5260_v6 = vsel %vm8068_vm4, %v538_v10, %v539_v5  ;;  %vm8069_vm5 = vcmp.ge.s32.totalorder %v4317_v52, 1  ;;  %vm7653_vm1 = vcmp.ge.s32.totalorder %v4696_v49, 1  ;;  %v8072_v37 = vand.u32 7, %v5138_v33  ;;  %769 = vrot.lane.b32.xlu1 %v732_v14, %s3771_s29  ;;  %v8090_v47 = vld [vmem:[#allocation15_spill] sm:$0xff] }
  0xbf   :  { %vm5252_vm9 = vcmp.ge.s32.totalorder %v8064_v27, 1  ;;  %v477_v12 = vadd.f32 0.5, %v461_v13  ;;  %vm5266_vm7 = vmand %vm8069_vm5, %vm8059_vm11  ;;  %v8073_v50 = vmov 0  ;;  %v8076_v13 = vand.u32 7, %v5151_v16 }
  0xc0   :  { %v8066_v57 = vsel %vm5252_vm9, 4294967295, %v8065_v57  ;;  %vm5273_vm6 = vcmp.lt.s32.totalorder %v8072_v37, 7  ;;  %v8077_v10 = vmov 0  ;;  %vm7654_vm5 = vcmp.lt.s32.totalorder %v5256_v20, 7  ;;  %vm5293_vm11 = vmand %vm7653_vm1, %vm5252_vm9  ;;  %981 = vrot.lane.b32.xlu0 %v943_v22, %s3769_s27 }
  0xc1   :  { %v8074_v50 = vsel %vm5273_vm6, 4294967295, %v8073_v50  ;;  %vm5281_vm4 = vcmp.lt.s32.totalorder %v8076_v13, 7  ;;  %v5287_v27 = vmul.f32 %v477_v12, %v5097_v23  ;;  %v8080_v37 = vmov 0 }
  0xc2   :  { %8075 = vst [vmem:[#allocation76_spill] sm:$0xff] %v8074_v50  ;;  %v8078_v10 = vsel %vm5281_vm4, 4294967295, %v8077_v10  ;;  %v8081_v37 = vsel %vm5293_vm11, 4294967295, %v8080_v37  ;;  %v829_v14 = vsel %vm4591_vm3, %v4922_v15, 0.0  ;;  %vm5305_vm14 = vmand %vm7654_vm5, %vm5281_vm4  ;;  %v8082_v23 = vmov 0 }
  0xc3   :  { %8079 = vst [vmem:[#allocation77_spill] sm:$0xff] %v8078_v10  ;;  %v8083_v23 = vsel %vm5305_vm14, 4294967295, %v8082_v23  ;;  %3687 = vtanh.f32 %v1648_v44  ;;  %v572_v12 = vsel %vm5293_vm11, %v5168_v28, 0.0  ;;  %v1039_v22 = vsel %vm5246_vm15, %v5260_v6, 0.0  ;;  %866 = vrot.lane.b32.xlu1 %v829_v14, %s3770_s19 }
  0xc4   :  { %8084 = vst [vmem:[#allocation78_spill] sm:$0xff] %v8083_v23  ;;  %v707_v13 = vrot.slane %v5287_v27, 1  ;;  %vm8085_vm1 = vcmask 261120   ;;  %vm8086_vm5 = vcmp.lt.s32.totalorder %v5229_v42, 7  ;;  %v8087_v15 = vmov 0  ;;  %v1289_v35 = vld [vmem:[#allocation2 + $0x100] sm:$0xff]  ;;  %1077 = vrot.lane.b32.xlu0 %v1039_v22, %s3771_s29 }
  0xc5   :  { %934 = vst.msk [vmem:[#allocation2 + $0x140] sm:$0xff] %vm8085_vm1, %v5287_v27  ;;  %vm5322_vm3 = vmand %vm8086_vm5, %vm5273_vm6  ;;  %v7666_v44 = vrot.slane %v5287_v27, 7  ;;  %v8091_v2 = vrot.slane %v8090_v47, 1  ;;  %vm8092_vm15 = vcmp.lt.s32.totalorder %v3962_v9, 7  ;;  %vm8095_vm11 = vcmp.lt.s32.totalorder %v3962_v9, 1 }
  0xc6   :  { %v8088_v15 = vsel %vm5322_vm3, 4294967295, %v8087_v15  ;;  %vm8089_vm12 = vmmov %vm8085_vm1  ;;  %v733_v14 = vsel %vm5266_vm7, %v8035_v36, 0.0  ;;  %v830_v36 = vsel %vm4845_vm0, %v5168_v28, 0.0  ;;  %v8105_v28 = vand.u32 7, %v4523_v1 }
  0xc7   :  { %588 = vst.msk [vmem:[#allocation2 + $0xa8] sm:$0xff] %vm8089_vm12, %v572_v12  ;;  %v5333_v55 = vsel %vm8092_vm15, %v707_v13, %v8091_v2  ;;  %vm8093_vm1 = vmmov %vm8092_vm15  ;;  %v5344_v12 = vsel %vm8095_vm11, %v544_v21, %v7666_v44  ;;  %771 = vrot.lane.b32.xlu1 %v733_v14, %s3771_s29  ;;  %v944_v21 = vsel %vm4622_vm8, %v4749_v61, 0.0  ;;  %v8103_v14 = vrot.slane %v4176_v62, 7 }
  0xc8   :  { %v5337_v54 = vsel %vm8093_vm1, %v706_v60, %v707_v13  ;;  %vm8094_vm5 = vmmov %vm8089_vm12  ;;  %vm8096_vm12 = vcmp.lt.s32.totalorder %v4317_v52, 7  ;;  %vm8099_vm1 = vcmp.lt.s32.totalorder %v4696_v49, 7  ;;  %v8100_v13 = vmov 0 }
  0xc9   :  { %3511 = vmatprep.mubr.msk.f32.mxu1 %vm8094_vm5, %v1289_v35  ;;  %v1236_v2 = vsel %vm5305_vm14, %v5337_v54, 0.0  ;;  %v1237_v35 = vsel %vm5322_vm3, %v5333_v55, 0.0  ;;  %v1135_v60 = vsel %vm8096_vm12, %v4653_v58, 0.0  ;;  %vm8097_vm15 = vmmov %vm8094_vm5  ;;  %vm8104_vm12 = vcmp.lt.s32.totalorder %v3962_v9, 1 }
  0xca   :  { %1252 = vst.msk [vmem:[#allocation2 + $0x118] sm:$0xff] %vm8097_vm15, %v1236_v2  ;;  %vm8098_vm11 = vmmov %vm8094_vm5  ;;  %1173 = vrot.lane.b32.xlu0 %v1135_v60, %s3770_s19  ;;  %v556_v2 = vsel %vm8104_vm12, %v539_v5, %v8103_v14  ;;  %vm7664_vm15 = vcmp.ge.s32.totalorder %v4729_v39, 1  ;;  %vm8111_vm12 = vcmp.ge.s32.totalorder %v4696_v49, 1  ;;  %v8113_v44 = vmov 0 }
  0xcb   :  { %1253 = vst.msk [vmem:[#allocation2 + $0x130] sm:$0xff] %vm8098_vm11, %v1237_v35  ;;  %vm5373_vm5 = vmand %vm8099_vm1, %vm5252_vm9  ;;  %vm5384_vm11 = vcmp.ge.s32.totalorder %v8105_v28, 1  ;;  %v8106_v35 = vmov 0  ;;  %868 = vrot.lane.b32.xlu1 %v830_v36, %s3770_s19  ;;  %v604_v5 = vsel %vm8111_vm12, %v4324_v3, 0.0  ;;  %vm8115_vm3 = vcmask 261120  }
  0xcc   :  { %v8101_v13 = vsel %vm5373_vm5, 4294967295, %v8100_v13  ;;  %v8107_v35 = vsel %vm5384_vm11, 4294967295, %v8106_v35  ;;  %vm5393_vm1 = vmand %vm7664_vm15, %vm5384_vm11  ;;  %v1040_v28 = vsel %vm5373_vm5, %v556_v2, 0.0  ;;  %v8246_v50 = vmov 0 }
  0xcd   :  { %v3688_v22 = vpop.eup %3687  ;;  %8102 = vst [vmem:[#allocation15_spill] sm:$0xff] %v8101_v13  ;;  %8108 = vst [vmem:[#allocation79_spill] sm:$0xff] %v8107_v35  ;;  %v573_v36 = vsel %vm5393_vm1, %v5260_v6, 0.0  ;;  %v1301_v13 = vld [vmem:[#allocation2 + $0x160] sm:$0xff]  ;;  %v1657_v4 = vsub.s32 3, %v3962_v9  ;;  %v8345_v35 = vsub.s32 0, %v3962_v9 }
  0xce   :  { %983 = vrot.lane.b32.xlu0 %v944_v21, %s3769_s27  ;;  %vm8112_vm15 = vmmov %vm8111_vm12  ;;  %v1650_v3 = vmul.f32 0.5, %v3688_v22  ;;  %v1298_v21 = vld [vmem:[#allocation2 + $0x148] sm:$0xff] }
  0xcf   :  { %vm5410_vm14 = vmand %vm8112_vm15, %vm4622_vm8  ;;  %643 = vrot.lane.b32.xlu1 %v604_v5, %s3769_s27  ;;  %vm8118_vm15 = vcmp.lt.s32.totalorder %v4696_v49, 7  ;;  %v831_v5 = vsel %vm5252_vm9, %v5260_v6, 0.0  ;;  %v8126_v6 = vand.u32 7, %v4700_v41  ;;  %vm3773_vm8 = vmmov 0  }
  0xd0   :  { %v8114_v44 = vsel %vm5410_vm14, 4294967295, %v8113_v44  ;;  %vm8116_vm12 = vmmov %vm8115_vm3  ;;  %v734_v11 = vsel %vm5410_vm14, %v4727_v29, 0.0  ;;  %v1136_v23 = vsel %vm8118_vm15, %v4176_v62, 0.0  ;;  %v1651_v22 = vadd.f32 0.5, %v1650_v3  ;;  %v8134_v3 = vld [vmem:[#allocation63_spill] sm:$0xff] }
  0xd1   :  { %v1292_v1 = vld [vmem:[#allocation2 + $0x118] sm:$0xff]  ;;  %589 = vst.msk [vmem:[#allocation2 + $0xc0] sm:$0xff] %vm8116_vm12, %v573_v36  ;;  %vm8117_vm0 = vmmov %vm8115_vm3  ;;  %vm8122_vm15 = vcmp.lt.s32.totalorder %v4729_v39, 7  ;;  %vm5448_vm5 = vcmp.ge.s32.totalorder %v8126_v6, 1  ;;  %vm8133_vm9 = vcmp.ge.s32.totalorder %v4729_v39, 1  ;;  %vm8139_vm14 = vcmask 261120  }
  0xd2   :  { %v1295_v14 = vld [vmem:[#allocation2 + $0x130] sm:$0xff]  ;;  %3512 = vmatmul.mubr.msk.f32.gmra.mrb[10].mxu1 %vm8115_vm3, %v1292_v1  ;;  %1079 = vrot.lane.b32.xlu0 %v1040_v28, %s3771_s29  ;;  %vm8119_vm3 = vmmov %vm8117_vm0  ;;  %v1304_v1 = vld [vmem:[#allocation2 + $0x178] sm:$0xff]  ;;  %v1652_v36 = vmul.f32 %v1651_v22, %v5222_v59  ;;  %v8130_v59 = vmov 0  ;;  %v605_v41 = vsel %vm8133_vm9, %v4653_v58, 0.0  ;;  %v8136_v22 = vmov 0 }
  0xd3   :  { %3514 = vmatprep.mubr.msk.f32.mxu1 %vm8117_vm0, %v1295_v14  ;;  %vm8120_vm12 = vmmov %vm8117_vm0  ;;  %773 = vrot.lane.b32.xlu1 %v734_v11, %s3771_s29  ;;  %v945_v14 = vsel %vm4763_vm13, %v4829_v17, 0.0  ;;  %v8123_v11 = vmov 0  ;;  %v8142_v6 = vld [vmem:[#allocation64_spill] sm:$0xff] }
  0xd6   :  { %3515 = vmatmul.mubr.msk.f32.gmra.mrb[12].mxu1 %vm8119_vm3, %v1298_v21  ;;  %1175 = vrot.lane.b32.xlu0 %v1136_v23, %s3770_s19  ;;  %vm5441_vm3 = vmand %vm8122_vm15, %vm5384_vm11  ;;  %v8127_v23 = vmov 0 }
  0xd7   :  { %3517 = vmatprep.mubr.msk.f32.mxu1 %vm8120_vm12, %v1301_v13  ;;  %v8124_v11 = vsel %vm5441_vm3, 4294967295, %v8123_v11  ;;  %vm7675_vm12 = vcmp.ge.s32.totalorder %v4911_v63, 1  ;;  %v8128_v23 = vsel %vm5448_vm5, 4294967295, %v8127_v23  ;;  %v3774_v13 = vmov 0.0   ;;  %870 = vrot.lane.b32.xlu1 %v831_v5, %s3770_s19 }
  0xd8   :  { %8125 = vst [vmem:[#allocation80_spill] sm:$0xff] %v8124_v11  ;;  %8129 = vst [vmem:[#allocation81_spill] sm:$0xff] %v8128_v23  ;;  %v1041_v21 = vsel %vm5441_vm3, %v8134_v3, 0.0  ;;  %vm7678_vm3 = vcmask 523520  }
  0xd9   :  { %vm5457_vm15 = vmand %vm7675_vm12, %vm5448_vm5 }
  0xda   :  { %3518 = vmatmul.mubr.msk.f32.gmra.mrb[14].mxu1 %vm8117_vm0, %v1304_v1  ;;  %vm1659_vm0 = vcmask 130048   ;;  %v8131_v59 = vsel %vm5457_vm15, 4294967295, %v8130_v59  ;;  %985 = vrot.lane.b32.xlu0 %v945_v14, %s3769_s27  ;;  %v574_v28 = vsel %vm5457_vm15, %v556_v2, 0.0  ;;  %v8140_v1 = vld [vmem:[#allocation56_spill] sm:$0xff]  ;;  %v832_v14 = vsel %vm5384_vm11, %v556_v2, 0.0 }
  0xdb   :  { %3524 = vmatprep.mubr.msk.f32.mxu1 %vm3773_vm8, %v3774_v13  ;;  %8132 = vst [vmem:[#allocation82_spill] sm:$0xff] %v8131_v59  ;;  %vm8135_vm8 = vmmov %vm8133_vm9  ;;  %645 = vrot.lane.b32.xlu1 %v605_v41, %s3769_s27  ;;  %vm8141_vm9 = vcmp.lt.s32.totalorder %v4729_v39, 7  ;;  %v946_v13 = vsel %vm4944_vm2, %v8142_v6, 0.0  ;;  %v8147_v41 = vand.u32 7, %v5094_v45  ;;  %v8148_v2 = vmov 0 }
  0xdc   :  { %vm5474_vm12 = vmand %vm8135_vm8, %vm4763_vm13  ;;  %590 = vst.msk [vmem:[#allocation2 + $0xd8] sm:$0xff] %vm8139_vm14, %v574_v28  ;;  %v1137_v5 = vsel %vm8141_vm9, %v8140_v1, 0.0  ;;  %vm8143_vm14 = vcmp.lt.s32.totalorder %v4911_v63, 7  ;;  %vm7679_vm8 = vcmp.ge.s32.totalorder %v5145_v40, 1  ;;  %v8151_v28 = vmov 0 }
  0xdd   :  { %v8137_v22 = vsel %vm5474_vm12, 4294967295, %v8136_v22  ;;  %v735_v58 = vsel %vm5474_vm12, %v4749_v61, 0.0  ;;  %v8144_v61 = vmov 0  ;;  %vm5506_vm9 = vcmp.ge.s32.totalorder %v8147_v41, 1  ;;  %v632_v41 = vpop.permute.xlu1 %631 }
  0xde   :  { %8138 = vst [vmem:[#allocation63_spill] sm:$0xff] %v8137_v22  ;;  %3525 = vmatmul.mubr.msk.f32.vlgmr.msra.gmra.mrb[16].mxu1 %vm1659_vm0, %v1652_v36  ;;  %1081 = vrot.lane.b32.xlu0 %v1041_v21, %s3771_s29  ;;  %v630_v36 = vpop.permute.xlu0 %629  ;;  %vm5499_vm0 = vmand %vm8143_vm14, %vm5448_vm5  ;;  %v8149_v2 = vsel %vm5506_vm9, 4294967295, %v8148_v2  ;;  %vm8154_vm14 = vcmp.ge.s32.totalorder %v4911_v63, 1  ;;  %vm8160_vm13 = vcmask 261120   ;;  %vm8224_vm12 = vcmask 785920  }
  0xdf   :  { %775 = vrot.lane.b32.xlu1 %v735_v58, %s3771_s29  ;;  %678 = vst.msk [vmem:[#allocation2] sm:$0xff] %vm7678_vm3, %v630_v36  ;;  %v8145_v61 = vsel %vm5499_vm0, 4294967295, %v8144_v61  ;;  %8150 = vst [vmem:[#allocation64_spill] sm:$0xff] %v8149_v2  ;;  %v606_v45 = vsel %vm8154_vm14, %v4176_v62, 0.0  ;;  %v8155_v58 = vld [vmem:[#allocation65_spill] sm:$0xff]  ;;  %v8197_v2 = vmov 0 }
  0xe0   :  { %8146 = vst [vmem:[#allocation56_spill] sm:$0xff] %v8145_v61  ;;  %vm5515_vm3 = vmand %vm7679_vm8, %vm5506_vm9 }
  0xe1   :  { %v8152_v28 = vsel %vm5515_vm3, 4294967295, %v8151_v28  ;;  %v575_v21 = vsel %vm5515_vm3, %v8134_v3, 0.0  ;;  %vm8156_vm8 = vmmov %vm8154_vm14  ;;  %vm8161_vm14 = vcmp.lt.s32.totalorder %v4911_v63, 7 }
  0xe2   :  { %1177 = vrot.lane.b32.xlu0 %v1137_v5, %s3770_s19  ;;  %8153 = vst [vmem:[#allocation83_spill] sm:$0xff] %v8152_v28  ;;  %v1042_v5 = vsel %vm5499_vm0, %v8155_v58, 0.0  ;;  %vm5533_vm11 = vmand %vm8156_vm8, %vm4944_vm2  ;;  %v1138_v36 = vsel %vm8161_vm14, %v4716_v24, 0.0  ;;  %vm8163_vm8 = vcmp.lt.s32.totalorder %v5145_v40, 7  ;;  %vm7684_vm0 = vcmp.ge.s32.totalorder %v5256_v20, 1 }
  0xe3   :  { %872 = vrot.lane.b32.xlu1 %v832_v14, %s3770_s19  ;;  %v8157_v14 = vmov 0  ;;  %591 = vst.msk [vmem:[#allocation2 + $0xf0] sm:$0xff] %vm8160_vm13, %v575_v21  ;;  %v736_v62 = vsel %vm5533_vm11, %v4829_v17, 0.0  ;;  %vm8162_vm13 = vcmask 523520   ;;  %v5555_v17 = vpop.permute.xlu0 %1161  ;;  %vm5561_vm14 = vmand %vm8163_vm8, %vm5506_vm9  ;;  %v8164_v21 = vmov 0 }
  0xe4   :  { %v8158_v14 = vsel %vm5533_vm11, 4294967295, %v8157_v14  ;;  %679 = vst.msk [vmem:[#allocation2 + $0x18] sm:$0xff] %vm8162_vm13, %v632_v41  ;;  %v8165_v21 = vsel %vm5561_vm14, 4294967295, %v8164_v21  ;;  %vm8174_vm8 = vcmp.ge.s32.totalorder %v5145_v40, 1  ;;  %v634_v41 = vpop.permute.xlu1 %633  ;;  %vm8179_vm11 = vcmask 261120  }
  0xe5   :  { %8159 = vst [vmem:[#allocation65_spill] sm:$0xff] %v8158_v14  ;;  %8166 = vst [vmem:[#allocation84_spill] sm:$0xff] %v8165_v21 }
  0xe6   :  { %987 = vrot.lane.b32.xlu0 %v946_v13, %s3769_s27  ;;  %v833_v13 = vsel %vm5448_vm5, %v8134_v3, 0.0  ;;  %v8167_v3 = vand.u32 7, %v5151_v16  ;;  %v607_v16 = vsel %vm8174_vm8, %v8140_v1, 0.0 }
  0xe7   :  { %647 = vrot.lane.b32.xlu1 %v606_v45, %s3769_s27  ;;  %v947_v45 = vsel %vm5172_vm10, %v5017_v31, 0.0  ;;  %v5601_v1 = vpop.permute.xlu0 %1163 }
  0xe8   :  { %vm5568_vm5 = vcmp.ge.s32.totalorder %v8167_v3, 1  ;;  %v8176_v3 = vmov 0  ;;  %v636_v21 = vpop.permute.xlu1 %635 }
  0xe9   :  { %vm5577_vm13 = vmand %vm7684_vm0, %vm5568_vm5 }
  0xea   :  { %1083 = vrot.lane.b32.xlu0 %v1042_v5, %s3771_s29  ;;  %v8168_v5 = vmov 0  ;;  %vm8175_vm0 = vmmov %vm8174_vm8  ;;  %vm8180_vm8 = vcmask 523520  }
  0xeb   :  { %777 = vrot.lane.b32.xlu1 %v736_v62, %s3771_s29  ;;  %v8169_v5 = vsel %vm5568_vm5, 4294967295, %v8168_v5  ;;  %v8171_v62 = vmov 0  ;;  %vm5595_vm2 = vmand %vm8175_vm0, %vm5172_vm10  ;;  %680 = vst.msk [vmem:[#allocation2 + $0x30] sm:$0xff] %vm8180_vm8, %v634_v41  ;;  %vm8181_vm0 = vcmp.lt.s32.totalorder %v5145_v40, 7 }
  0xec   :  { %8170 = vst [vmem:[#allocation85_spill] sm:$0xff] %v8169_v5  ;;  %v8172_v62 = vsel %vm5577_vm13, 4294967295, %v8171_v62  ;;  %v8177_v3 = vsel %vm5595_vm2, 4294967295, %v8176_v3  ;;  %v1139_v30 = vsel %vm8181_vm0, %v4963_v19, 0.0  ;;  %v638_v41 = vpop.permute.xlu1 %637  ;;  %vm7691_vm0 = vcmp.ge.s32.totalorder %v5229_v42, 1 }
  0xed   :  { %8173 = vst [vmem:[#allocation86_spill] sm:$0xff] %v8172_v62  ;;  %8178 = vst [vmem:[#allocation87_spill] sm:$0xff] %v8177_v3  ;;  %v8211_v5 = vmov 0 }
  0xee   :  { %1179 = vrot.lane.b32.xlu0 %v1138_v36, %s3770_s19  ;;  %v576_v36 = vsel %vm5577_vm13, %v8155_v58, 0.0 }
  0xef   :  { %874 = vrot.lane.b32.xlu1 %v833_v13, %s3770_s19  ;;  %v1043_v13 = vsel %vm5561_vm14, %v5025_v0, 0.0  ;;  %592 = vst.msk [vmem:[#allocation2 + $0x108] sm:$0xff] %vm8179_vm11, %v576_v36  ;;  %vm8182_vm14 = vmmov %vm8180_vm8  ;;  %v5612_v36 = vpop.permute.xlu0 %1165 }
  0xf0   :  { %681 = vst.msk [vmem:[#allocation2 + $0x48] sm:$0xff] %vm8182_vm14, %v636_v21  ;;  %vm8183_vm11 = vmmov %vm8180_vm8  ;;  %vm8184_vm14 = vcmp.lt.s32.totalorder %v5256_v20, 7  ;;  %v8185_v21 = vmov 0 }
  0xf1   :  { %682 = vst.msk [vmem:[#allocation2 + $0x60] sm:$0xff] %vm8183_vm11, %v638_v41  ;;  %vm5629_vm8 = vmand %vm8184_vm14, %vm5568_vm5  ;;  %vm8195_vm14 = vcmp.ge.s32.totalorder %v5256_v20, 1 }
  0xf2   :  { %989 = vrot.lane.b32.xlu0 %v947_v45, %s3769_s27  ;;  %v737_v45 = vsel %vm5595_vm2, %v8142_v6, 0.0  ;;  %v948_v6 = vsel %vm5281_vm4, %v5210_v53, 0.0  ;;  %v8186_v21 = vsel %vm5629_vm8, 4294967295, %v8185_v21  ;;  %vm8200_vm2 = vcmask 261120  }
  0xf3   :  { %649 = vrot.lane.b32.xlu1 %v607_v16, %s3769_s27  ;;  %v834_v16 = vsel %vm5506_vm9, %v8155_v58, 0.0  ;;  %8187 = vst [vmem:[#allocation88_spill] sm:$0xff] %v8186_v21  ;;  %v8189_v58 = vmov 0 }
  0xf6   :  { %1085 = vrot.lane.b32.xlu0 %v1043_v13, %s3771_s29  ;;  %v5623_v13 = vpop.permute.xlu0 %1167 }
  0xf7   :  { %779 = vrot.lane.b32.xlu1 %v737_v45, %s3771_s29  ;;  %v8192_v45 = vmov 0 }
  0xfa   :  { %1181 = vrot.lane.b32.xlu0 %v1139_v30, %s3770_s19  ;;  %v8188_v30 = vand.u32 7, %v5138_v33  ;;  %v608_v33 = vsel %vm8195_vm14, %v4716_v24, 0.0  ;;  %v5669_v24 = vpop.permute.xlu0 %1169 }
  0xfb   :  { %876 = vrot.lane.b32.xlu1 %v834_v16, %s3770_s19  ;;  %v1044_v16 = vsel %vm5629_vm8, %v5217_v32, 0.0 }
  0xfc   :  { %vm5636_vm9 = vcmp.ge.s32.totalorder %v8188_v30, 1  ;;  %v640_v30 = vpop.permute.xlu1 %639 }
  0xfd   :  { %v8190_v58 = vsel %vm5636_vm9, 4294967295, %v8189_v58  ;;  %vm5645_vm11 = vmand %vm7691_vm0, %vm5636_vm9 }
  0xfe   :  { %8191 = vst [vmem:[#allocation89_spill] sm:$0xff] %v8190_v58  ;;  %v8193_v45 = vsel %vm5645_vm11, 4294967295, %v8192_v45  ;;  %991 = vrot.lane.b32.xlu0 %v948_v6, %s3769_s27  ;;  %v577_v41 = vsel %vm5645_vm11, %v5025_v0, 0.0  ;;  %vm8196_vm0 = vmmov %vm8195_vm14  ;;  %vm8201_vm14 = vcmask 523520   ;;  %v8242_v58 = vmov 0 }
  0xff   :  { %8194 = vst [vmem:[#allocation90_spill] sm:$0xff] %v8193_v45  ;;  %vm5663_vm10 = vmand %vm8196_vm0, %vm5281_vm4  ;;  %651 = vrot.lane.b32.xlu1 %v608_v33, %s3769_s27  ;;  %vm8202_vm0 = vcmp.lt.s32.totalorder %v5256_v20, 7  ;;  %v835_v33 = vsel %vm5568_vm5, %v5025_v0, 0.0 }
 0x100   :  { %v8198_v2 = vsel %vm5663_vm10, 4294967295, %v8197_v2  ;;  %593 = vst.msk [vmem:[#allocation2 + $0x120] sm:$0xff] %vm8200_vm2, %v577_v41  ;;  %v738_v6 = vsel %vm5663_vm10, %v5017_v31, 0.0  ;;  %v642_v21 = vpop.permute.xlu1 %641  ;;  %v1140_v10 = vsel %vm8202_vm0, %v5154_v46, 0.0  ;;  %vm8203_vm8 = vmmov %vm8201_vm14  ;;  %v5680_v41 = vpop.permute.xlu0 %1171  ;;  %vm7704_vm2 = vcmask 785920  }
 0x101   :  { %8199 = vst [vmem:[#allocation91_spill] sm:$0xff] %v8198_v2  ;;  %683 = vst.msk [vmem:[#allocation2 + $0x78] sm:$0xff] %vm8201_vm14, %v640_v30  ;;  %v949_v31 = vsel %vm5273_vm6, %v5337_v54, 0.0  ;;  %v8214_v2 = vmov 0  ;;  %vm8217_vm10 = vcmp.ge.s32.totalorder %v5229_v42, 1 }
 0x102   :  { %1087 = vrot.lane.b32.xlu0 %v1044_v16, %s3771_s29  ;;  %684 = vst.msk [vmem:[#allocation2 + $0x90] sm:$0xff] %vm8203_vm8, %v642_v21  ;;  %vm8204_vm8 = vcmp.lt.s32.totalorder %v5229_v42, 7  ;;  %v8205_v21 = vmov 0 }
 0x103   :  { %781 = vrot.lane.b32.xlu1 %v738_v6, %s3771_s29  ;;  %vm5694_vm0 = vmand %vm8204_vm8, %vm5636_vm9  ;;  %v8209_v6 = vld [vmem:[#allocation9_spill] sm:$0xff] }
 0x104   :  { %v1066_v30 = vpop.permute.xlu1 %1065  ;;  %v970_v16 = vpop.permute.xlu0 %969  ;;  %v8206_v21 = vsel %vm5694_vm0, 4294967295, %v8205_v21  ;;  %v8210_v0 = vand.u32 7, %v8209_v6  ;;  %v609_v6 = vsel %vm8217_vm10, %v4963_v19, 0.0 }
 0x105   :  { %8207 = vst [vmem:[#allocation92_spill] sm:$0xff] %v8206_v21  ;;  %1017 = vst.msk [vmem:[#allocation2 + $0x8] sm:$0xff] %vm8201_vm14, %v970_v16  ;;  %vm8218_vm14 = vcmask 1048320  }
 0x106   :  { %1183 = vrot.lane.b32.xlu0 %v1140_v10, %s3770_s19  ;;  %v8208_v10 = vld [vmem:[#allocation12_spill] sm:$0xff]  ;;  %vm5701_vm5 = vcmp.ge.s32.totalorder %v8210_v0, 1  ;;  %1113 = vst.msk [vmem:[#allocation2 + $0x8] sm:$0xff] %vm7704_vm2, %v1066_v30  ;;  %v1045_v0 = vsel %vm5694_vm0, %v5344_v12, 0.0  ;;  %v8220_v30 = vmov 0  ;;  %vm8227_vm0 = vcmask 1048320  }
 0x107   :  { %vm7703_vm4 = vcmp.ge.s32.totalorder %v8208_v10, 1  ;;  %v8212_v5 = vsel %vm5701_vm5, 4294967295, %v8211_v5  ;;  %878 = vrot.lane.b32.xlu1 %v835_v33, %s3770_s19  ;;  %1209 = vst.msk [vmem:[#allocation2 + $0x8] sm:$0xff] %vm8218_vm14, %v5555_v17  ;;  %vm8225_vm14 = vcmask 523520  }
 0x108   :  { %8213 = vst [vmem:[#allocation9_spill] sm:$0xff] %v8212_v5  ;;  %vm5711_vm8 = vmand %vm7703_vm4, %vm5701_vm5  ;;  %v760_v16 = vpop.permute.xlu1 %759  ;;  %v972_v19 = vpop.permute.xlu0 %971  ;;  %v8271_v5 = vmov 0 }
 0x109   :  { %v8215_v2 = vsel %vm5711_vm8, 4294967295, %v8214_v2  ;;  %v578_v33 = vsel %vm5711_vm8, %v5217_v32, 0.0  ;;  %vm8219_vm4 = vmmov %vm8217_vm10  ;;  %vm8223_vm10 = vcmask 261120   ;;  %808 = vst.msk [vmem:[#allocation2] sm:$0xff] %vm8224_vm12, %v760_v16 }
 0x10a   :  { %8216 = vst [vmem:[#allocation93_spill] sm:$0xff] %v8215_v2  ;;  %993 = vrot.lane.b32.xlu0 %v949_v31, %s3769_s27  ;;  %vm5732_vm2 = vmand %vm8219_vm4, %vm5273_vm6  ;;  %vm8226_vm4 = vcmp.lt.s32.totalorder %v5229_v42, 7 }
 0x10b   :  { %v8221_v30 = vsel %vm5732_vm2, 4294967295, %v8220_v30  ;;  %594 = vst.msk [vmem:[#allocation2 + $0x138] sm:$0xff] %vm8223_vm10, %v578_v33  ;;  %653 = vrot.lane.b32.xlu1 %v609_v6, %s3769_s27  ;;  %v739_v17 = vsel %vm5732_vm2, %v5210_v53, 0.0  ;;  %v1141_v21 = vsel %vm8226_vm4, %v5287_v27, 0.0  ;;  %vm8228_vm10 = vmmov %vm8227_vm0  ;;  %v836_v53 = vsel %vm5636_vm9, %v5217_v32, 0.0 }
 0x10c   :  { %8222 = vst [vmem:[#allocation94_spill] sm:$0xff] %v8221_v30  ;;  %1018 = vst.msk [vmem:[#allocation2 + $0x20] sm:$0xff] %vm8225_vm14, %v972_v19  ;;  %v857_v31 = vpop.permute.xlu1 %856  ;;  %v1068_v33 = vpop.permute.xlu0 %1067  ;;  %vm8232_vm4 = vcmp.lt.s32.totalorder %v8208_v10, 7  ;;  %v8237_v32 = vrot.slane %v5287_v27, 7  ;;  %vm8254_vm2 = vcmask 261120  }
 0x10d   :  { %905 = vst.msk [vmem:[#allocation2] sm:$0xff] %vm8227_vm0, %v857_v31  ;;  %vm8231_vm14 = vmmov %vm8224_vm12 }
 0x10e   :  { %1089 = vrot.lane.b32.xlu0 %v1045_v0, %s3771_s29  ;;  %1114 = vst.msk [vmem:[#allocation2 + $0x20] sm:$0xff] %vm8224_vm12, %v1068_v33  ;;  %v1258_v6 = vld [vmem:[#allocation2 + $0x8] sm:$0xff]  ;;  %v8229_v0 = vld [vmem:[#allocation14_spill] sm:$0xff]  ;;  %vm5764_vm12 = vmand %vm8232_vm4, %vm5701_vm5  ;;  %vm8245_vm4 = vcmask 523520  }
 0x10f   :  { %783 = vrot.lane.b32.xlu1 %v739_v17, %s3771_s29  ;;  %1210 = vst.msk [vmem:[#allocation2 + $0x20] sm:$0xff] %vm8228_vm10, %v5601_v1  ;;  %1421 = vmatprep.mubr.f32.mxu0 %v1258_v6  ;;  %vm8230_vm0 = vnez %v8229_v0  ;;  %v8233_v1 = vmov 0  ;;  %vm8238_vm10 = vcmp.lt.s32.totalorder %v3962_v9, 1  ;;  %v8239_v33 = vld [vmem:[#allocation20_spill] sm:$0xff]  ;;  %v8240_v6 = vld [vmem:[#allocation11_spill] sm:$0xff] }
 0x110   :  { %v762_v16 = vpop.permute.xlu1 %761  ;;  %v950_v19 = vsel %vm8230_vm0, %v5333_v55, 0.0  ;;  %v974_v17 = vpop.permute.xlu0 %973  ;;  %v8234_v1 = vsel %vm5764_vm12, 4294967295, %v8233_v1  ;;  %vm7712_vm9 = vcmp.ge.s32.totalorder %v8239_v33, 1 }
 0x111   :  { %809 = vst.msk [vmem:[#allocation2 + $0x18] sm:$0xff] %vm8231_vm14, %v762_v16  ;;  %8235 = vst [vmem:[#allocation95_spill] sm:$0xff] %v8234_v1  ;;  %v8241_v16 = vand.u32 7, %v8240_v6 }
 0x112   :  { %1185 = vrot.lane.b32.xlu0 %v1141_v21, %s3770_s19  ;;  %v8236_v21 = vrot.slane %v8090_v47, 7  ;;  %1019 = vst.msk [vmem:[#allocation2 + $0x38] sm:$0xff] %vm8245_vm4, %v974_v17 }
 0x113   :  { %vm5779_vm14 = vcmp.ge.s32.totalorder %v8241_v16, 1  ;;  %880 = vrot.lane.b32.xlu1 %v836_v53, %s3770_s19 }
 0x114   :  { %v5774_v31 = vsel %vm8238_vm10, %v8237_v32, %v8236_v21  ;;  %v8243_v58 = vsel %vm5779_vm14, 4294967295, %v8242_v58  ;;  %vm5789_vm6 = vmand %vm7712_vm9, %vm5779_vm14  ;;  %vm8249_vm10 = vcmp.ge.s32.totalorder %v8208_v10, 1  ;;  %v859_v32 = vpop.permute.xlu1 %858  ;;  %v1257_v17 = vld [vmem:[#allocation2] sm:$0xff] }
 0x115   :  { %8244 = vst [vmem:[#allocation11_spill] sm:$0xff] %v8243_v58  ;;  %v8247_v50 = vsel %vm5789_vm6, 4294967295, %v8246_v50  ;;  %v610_v21 = vsel %vm8249_vm10, %v5154_v46, 0.0  ;;  %v579_v53 = vsel %vm5789_vm6, %v5344_v12, 0.0  ;;  %v1046_v6 = vsel %vm5764_vm12, %v5774_v31, 0.0  ;;  %vm8250_vm4 = vmmov %vm8249_vm10  ;;  %1422 = vmatmul.mubr.f32.vlgmr.msra.gmra.mrb[0].mxu0 %v1257_v17  ;;  %v1070_v46 = vpop.permute.xlu0 %1069 }
 0x116   :  { %8248 = vst [vmem:[#allocation96_spill] sm:$0xff] %v8247_v50  ;;  %995 = vrot.lane.b32.xlu0 %v950_v19, %s3769_s27  ;;  %vm5807_vm9 = vmand %vm8250_vm4, %vm8230_vm0  ;;  %v8251_v19 = vmov 0  ;;  %vm8255_vm10 = vcmask 1048320   ;;  %vm8256_vm6 = vcmask 785920   ;;  %v1261_v16 = vld [vmem:[#allocation2 + $0x20] sm:$0xff]  ;;  %vm8278_vm0 = vcmask 1048320  }
 0x117   :  { %v8252_v19 = vsel %vm5807_vm9, 4294967295, %v8251_v19  ;;  %595 = vst.msk [vmem:[#allocation2 + $0x150] sm:$0xff] %vm8254_vm2, %v579_v53  ;;  %655 = vrot.lane.b32.xlu1 %v610_v21, %s3769_s27  ;;  %vm8257_vm12 = vmmov %vm8255_vm10  ;;  %1426 = vmatprep.mubr.f32.mxu0 %v1261_v16  ;;  %v740_v1 = vsel %vm5807_vm9, %v5337_v54, 0.0  ;;  %vm8258_vm2 = vcmp.lt.s32.totalorder %v8208_v10, 7  ;;  %vm8279_vm9 = vcmp.ge.s32.totalorder %v8239_v33, 1 }
 0x118   :  { %8253 = vst [vmem:[#allocation97_spill] sm:$0xff] %v8252_v19  ;;  %906 = vst.msk [vmem:[#allocation2 + $0x18] sm:$0xff] %vm8255_vm10, %v859_v32  ;;  %v764_v53 = vpop.permute.xlu1 %763  ;;  %v1142_v32 = vsel %vm8258_vm2, %v8090_v47, 0.0  ;;  %vm8264_vm2 = vcmp.lt.s32.totalorder %v8239_v33, 7 }
 0x119   :  { %1115 = vst.msk [vmem:[#allocation2 + $0x38] sm:$0xff] %vm8256_vm6, %v1070_v46  ;;  %vm8259_vm4 = vmmov %vm8256_vm6  ;;  %vm8260_vm6 = vcmask 523520   ;;  %v8262_v46 = vld [vmem:[#allocation23_spill] sm:$0xff] }
 0x11a   :  { %1211 = vst.msk [vmem:[#allocation2 + $0x38] sm:$0xff] %vm8257_vm12, %v5612_v36  ;;  %1091 = vrot.lane.b32.xlu0 %v1046_v6, %s3771_s29  ;;  %v976_v21 = vpop.permute.xlu0 %975  ;;  %v837_v36 = vsel %vm5701_vm5, %v5344_v12, 0.0  ;;  %v8261_v6 = vld [vmem:[#allocation18_spill] sm:$0xff]  ;;  %vm8263_vm12 = vnez %v8262_v46  ;;  %v8269_v12 = vld [vmem:[#allocation8_spill] sm:$0xff]  ;;  %v8288_v46 = vld [vmem:[#allocation13_spill] sm:$0xff] }
 0x11b   :  { %810 = vst.msk [vmem:[#allocation2 + $0x30] sm:$0xff] %vm8259_vm4, %v764_v53  ;;  %785 = vrot.lane.b32.xlu1 %v740_v1, %s3771_s29  ;;  %v951_v16 = vsel %vm8263_vm12, %v8261_v6, 0.0  ;;  %vm5839_vm4 = vmand %vm8264_vm2, %vm5779_vm14  ;;  %v8265_v1 = vmov 0 }
 0x11c   :  { %1020 = vst.msk [vmem:[#allocation2 + $0x50] sm:$0xff] %vm8260_vm6, %v976_v21  ;;  %v861_v17 = vpop.permute.xlu1 %860  ;;  %v8266_v1 = vsel %vm5839_vm4, 4294967295, %v8265_v1  ;;  %v8270_v21 = vand.u32 7, %v8269_v12 }
 0x11d   :  { %907 = vst.msk [vmem:[#allocation2 + $0x30] sm:$0xff] %vm8255_vm10, %v861_v17  ;;  %8267 = vst [vmem:[#allocation18_spill] sm:$0xff] %v8266_v1  ;;  %vm8274_vm10 = vcmask 785920  }
 0x11e   :  { %1187 = vrot.lane.b32.xlu0 %v1142_v32, %s3770_s19  ;;  %v1072_v53 = vpop.permute.xlu0 %1071  ;;  %v8268_v32 = vld [vmem:[#allocation16_spill] sm:$0xff]  ;;  %vm5846_vm5 = vcmp.ge.s32.totalorder %v8270_v21, 1  ;;  %v8280_v21 = vld [vmem:[#allocation22_spill] sm:$0xff] }
 0x11f   :  { %v1260_v54 = vld [vmem:[#allocation2 + $0x18] sm:$0xff]  ;;  %vm7722_vm6 = vcmp.ge.s32.totalorder %v8268_v32, 1  ;;  %v8272_v5 = vsel %vm5846_vm5, 4294967295, %v8271_v5  ;;  %882 = vrot.lane.b32.xlu1 %v837_v36, %s3770_s19  ;;  %1116 = vst.msk [vmem:[#allocation2 + $0x50] sm:$0xff] %vm8274_vm10, %v1072_v53  ;;  %v611_v36 = vsel %vm8279_vm9, %v5287_v27, 0.0  ;;  %v1047_v0 = vsel %vm5839_vm4, %v8280_v21, 0.0 }
 0x120   :  { %1427 = vmatmul.mubr.f32.gmra.mrb[2].mxu0 %v1260_v54  ;;  %8273 = vst [vmem:[#allocation8_spill] sm:$0xff] %v8272_v5  ;;  %vm5856_vm2 = vmand %vm7722_vm6, %vm5846_vm5  ;;  %v8275_v54 = vmov 0  ;;  %v766_v12 = vpop.permute.xlu1 %765  ;;  %vm8285_vm6 = vcmask 261120   ;;  %vm8300_vm4 = vcmask 523520  }
 0x121   :  { %v1264_v17 = vld [vmem:[#allocation2 + $0x38] sm:$0xff]  ;;  %v8276_v54 = vsel %vm5856_vm2, 4294967295, %v8275_v54  ;;  %1212 = vst.msk [vmem:[#allocation2 + $0x50] sm:$0xff] %vm8278_vm0, %v5623_v13  ;;  %v580_v53 = vsel %vm5856_vm2, %v5774_v31, 0.0  ;;  %vm8281_vm0 = vmmov %vm8279_vm9  ;;  %v8282_v13 = vmov 0  ;;  %vm8286_vm9 = vcmask 785920  }
 0x122   :  { %8277 = vst [vmem:[#allocation98_spill] sm:$0xff] %v8276_v54  ;;  %997 = vrot.lane.b32.xlu0 %v951_v16, %s3769_s27  ;;  %1431 = vmatprep.mubr.f32.mxu0 %v1264_v17  ;;  %vm5876_vm10 = vmand %vm8281_vm0, %vm8263_vm12  ;;  %v978_v27 = vpop.permute.xlu0 %977  ;;  %vm8287_vm2 = vcmask 523520   ;;  %vm8289_vm0 = vcmp.lt.s32.totalorder %v8239_v33, 7 }
 0x123   :  { %v8283_v13 = vsel %vm5876_vm10, 4294967295, %v8282_v13  ;;  %596 = vst.msk [vmem:[#allocation2 + $0x168] sm:$0xff] %vm8285_vm6, %v580_v53  ;;  %657 = vrot.lane.b32.xlu1 %v611_v36, %s3769_s27  ;;  %v741_v16 = vsel %vm5876_vm10, %v5333_v55, 0.0  ;;  %v1143_v19 = vsel %vm8289_vm0, %v8288_v46, 0.0  ;;  %vm8290_vm6 = vcmask 1048320   ;;  %v8292_v46 = vld [vmem:[#allocation29_spill] sm:$0xff] }
 0x124   :  { %8284 = vst [vmem:[#allocation22_spill] sm:$0xff] %v8283_v13  ;;  %811 = vst.msk [vmem:[#allocation2 + $0x48] sm:$0xff] %vm8286_vm9, %v766_v12  ;;  %v863_v17 = vpop.permute.xlu1 %862  ;;  %v1263_v1 = vld [vmem:[#allocation2 + $0x30] sm:$0xff]  ;;  %v838_v55 = vsel %vm5779_vm14, %v5774_v31, 0.0  ;;  %v8293_v12 = vld [vmem:[#allocation21_spill] sm:$0xff]  ;;  %vm8301_vm14 = vcmp.ge.s32.totalorder %v8268_v32, 1 }
 0x125   :  { %1021 = vst.msk [vmem:[#allocation2 + $0x68] sm:$0xff] %vm8287_vm2, %v978_v27  ;;  %1432 = vmatmul.mubr.f32.gmra.mrb[4].mxu0 %v1263_v1  ;;  %vm8291_vm2 = vmmov %vm8290_vm6  ;;  %vm8294_vm0 = vnez %v8293_v12  ;;  %v612_v31 = vsel %vm8301_vm14, %v8090_v47, 0.0 }
 0x126   :  { %1093 = vrot.lane.b32.xlu0 %v1047_v0, %s3771_s29  ;;  %908 = vst.msk [vmem:[#allocation2 + $0x48] sm:$0xff] %vm8290_vm6, %v863_v17  ;;  %v1074_v53 = vpop.permute.xlu0 %1073  ;;  %v952_v1 = vsel %vm8294_vm0, %v8292_v46, 0.0  ;;  %vm8295_vm6 = vmmov %vm8286_vm9  ;;  %v8302_v17 = vld [vmem:[#allocation50_spill] sm:$0xff] }
 0x127   :  { %787 = vrot.lane.b32.xlu1 %v741_v16, %s3771_s29  ;;  %1117 = vst.msk [vmem:[#allocation2 + $0x68] sm:$0xff] %vm8286_vm9, %v1074_v53  ;;  %vm8296_vm9 = vcmp.lt.s32.totalorder %v8268_v32, 7 }
 0x128   :  { %v1267_v36 = vld [vmem:[#allocation2 + $0x50] sm:$0xff]  ;;  %1213 = vst.msk [vmem:[#allocation2 + $0x68] sm:$0xff] %vm8291_vm2, %v5669_v24  ;;  %v768_v0 = vpop.permute.xlu1 %767  ;;  %vm5908_vm2 = vmand %vm8296_vm9, %vm5846_vm5  ;;  %v8297_v24 = vmov 0 }
 0x129   :  { %1436 = vmatprep.mubr.f32.mxu0 %v1267_v36  ;;  %812 = vst.msk [vmem:[#allocation2 + $0x60] sm:$0xff] %vm8295_vm6, %v768_v0  ;;  %v8298_v24 = vsel %vm5908_vm2, 4294967295, %v8297_v24  ;;  %v1048_v53 = vsel %vm5908_vm2, %v8302_v17, 0.0  ;;  %vm8303_vm6 = vmmov %vm8301_vm14  ;;  %v8304_v36 = vmov 0  ;;  %vm8308_vm14 = vcmask 785920  }
 0x12a   :  { %1189 = vrot.lane.b32.xlu0 %v1143_v19, %s3770_s19  ;;  %v980_v27 = vpop.permute.xlu0 %979  ;;  %8299 = vst [vmem:[#allocation13_spill] sm:$0xff] %v8298_v24  ;;  %vm5925_vm9 = vmand %vm8303_vm6, %vm8294_vm0  ;;  %vm8311_vm6 = vcmp.lt.s32.totalorder %v8268_v32, 7 }
 0x12b   :  { %884 = vrot.lane.b32.xlu1 %v838_v55, %s3770_s19  ;;  %1022 = vst.msk [vmem:[#allocation2 + $0x80] sm:$0xff] %vm8300_vm4, %v980_v27  ;;  %v8305_v36 = vsel %vm5925_vm9, 4294967295, %v8304_v36  ;;  %vm8307_vm4 = vcmask 1048320   ;;  %v742_v0 = vsel %vm5925_vm9, %v8261_v6, 0.0 }
 0x12c   :  { %v865_v19 = vpop.permute.xlu1 %864  ;;  %8306 = vst [vmem:[#allocation29_spill] sm:$0xff] %v8305_v36  ;;  %vm8309_vm12 = vmmov %vm8307_vm4 }
 0x12d   :  { %v1266_v16 = vld [vmem:[#allocation2 + $0x48] sm:$0xff]  ;;  %909 = vst.msk [vmem:[#allocation2 + $0x60] sm:$0xff] %vm8307_vm4, %v865_v19  ;;  %vm8312_vm4 = vmmov %vm8308_vm14 }
 0x12e   :  { %999 = vrot.lane.b32.xlu0 %v952_v1, %s3769_s27  ;;  %1437 = vmatmul.mubr.f32.gmra.mrb[6].mxu0 %v1266_v16  ;;  %v1076_v55 = vpop.permute.xlu0 %1075  ;;  %v8310_v1 = vld [vmem:[#allocation24_spill] sm:$0xff]  ;;  %vm8316_vm2 = vmmov %vm8309_vm12 }
 0x12f   :  { %659 = vrot.lane.b32.xlu1 %v612_v31, %s3769_s27  ;;  %1118 = vst.msk [vmem:[#allocation2 + $0x80] sm:$0xff] %vm8308_vm14, %v1076_v55  ;;  %v1270_v47 = vld [vmem:[#allocation2 + $0x68] sm:$0xff]  ;;  %v1144_v27 = vsel %vm8311_vm6, %v8310_v1, 0.0  ;;  %vm8313_vm14 = vcmask 523520   ;;  %vm8314_vm6 = vmmov %vm8312_vm4 }
 0x130   :  { %1214 = vst.msk [vmem:[#allocation2 + $0x80] sm:$0xff] %vm8309_vm12, %v5680_v41  ;;  %1441 = vmatprep.mubr.f32.mxu0 %v1270_v47  ;;  %v770_v46 = vpop.permute.xlu1 %769  ;;  %v839_v41 = vsel %vm5846_vm5, %v8280_v21, 0.0 }
 0x131   :  { %813 = vst.msk [vmem:[#allocation2 + $0x78] sm:$0xff] %vm8312_vm4, %v770_v46 }
 0x132   :  { %1095 = vrot.lane.b32.xlu0 %v1048_v53, %s3771_s29  ;;  %v982_v31 = vpop.permute.xlu0 %981 }
 0x133   :  { %789 = vrot.lane.b32.xlu1 %v742_v0, %s3771_s29  ;;  %1023 = vst.msk [vmem:[#allocation2 + $0x98] sm:$0xff] %vm8313_vm14, %v982_v31  ;;  %vm8315_vm14 = vmmov %vm8309_vm12 }
 0x134   :  { %v1269_v6 = vld [vmem:[#allocation2 + $0x60] sm:$0xff] }
 0x135   :  { %v867_v19 = vpop.permute.xlu1 %866  ;;  %1442 = vmatmul.mubr.f32.gmra.mrb[8].mxu0 %v1269_v6 }
 0x136   :  { %1191 = vrot.lane.b32.xlu0 %v1144_v27, %s3770_s19  ;;  %910 = vst.msk [vmem:[#allocation2 + $0x78] sm:$0xff] %vm8309_vm12, %v867_v19  ;;  %v1078_v16 = vpop.permute.xlu0 %1077  ;;  %vm8317_vm12 = vcmask 523520  }
 0x137   :  { %886 = vrot.lane.b32.xlu1 %v839_v41, %s3770_s19  ;;  %1119 = vst.msk [vmem:[#allocation2 + $0x98] sm:$0xff] %vm8314_vm6, %v1078_v16  ;;  %v1273_v17 = vld [vmem:[#allocation2 + $0x80] sm:$0xff]  ;;  %vm8318_vm5 = vmmov %vm8317_vm12 }
 0x138   :  { %1446 = vmatprep.mubr.f32.mxu0 %v1273_v17  ;;  %vm8319_vm6 = vmmov %vm8312_vm4 }
 0x139   :  { %v772_v53 = vpop.permute.xlu1 %771 }
 0x13a   :  { %814 = vst.msk [vmem:[#allocation2 + $0x90] sm:$0xff] %vm8312_vm4, %v772_v53 }
 0x13c   :  { %v1174_v55 = vpop.permute.xlu0 %1173 }
 0x13d   :  { %1215 = vst.msk [vmem:[#allocation2 + $0x98] sm:$0xff] %vm8315_vm14, %v1174_v55  ;;  %v869_v47 = vpop.permute.xlu1 %868  ;;  %v1272_v21 = vld [vmem:[#allocation2 + $0x78] sm:$0xff]  ;;  %vm8320_vm14 = vmmov %vm8316_vm2 }
 0x13e   :  { %911 = vst.msk [vmem:[#allocation2 + $0x90] sm:$0xff] %vm8316_vm2, %v869_v47  ;;  %1447 = vmatmul.mubr.f32.gmra.mrb[10].mxu0 %v1272_v21 }
 0x140   :  { %v984_v0 = vpop.permute.xlu0 %983 }
 0x141   :  { %1024 = vst.msk [vmem:[#allocation2 + $0xb0] sm:$0xff] %vm8317_vm12, %v984_v0  ;;  %v644_v46 = vpop.permute.xlu1 %643  ;;  %vm8321_vm12 = vmmov %vm8318_vm5 }
 0x142   :  { %685 = vst.msk [vmem:[#allocation2 + $0xa8] sm:$0xff] %vm8318_vm5, %v644_v46 }
 0x144   :  { %v1080_v1 = vpop.permute.xlu0 %1079  ;;  %v1276_v27 = vld [vmem:[#allocation2 + $0x98] sm:$0xff] }
 0x145   :  { %1120 = vst.msk [vmem:[#allocation2 + $0xb0] sm:$0xff] %vm8319_vm6, %v1080_v1  ;;  %1451 = vmatprep.mubr.f32.mxu0 %v1276_v27  ;;  %v774_v31 = vpop.permute.xlu1 %773  ;;  %v1275_v41 = vld [vmem:[#allocation2 + $0x90] sm:$0xff]  ;;  %vm8322_vm6 = vmmov %vm8312_vm4 }
 0x146   :  { %815 = vst.msk [vmem:[#allocation2 + $0xa8] sm:$0xff] %vm8312_vm4, %v774_v31  ;;  %1452 = vmatmul.mubr.f32.gmra.mrb[12].mxu0 %v1275_v41 }
 0x148   :  { %v1176_v19 = vpop.permute.xlu0 %1175 }
 0x149   :  { %1216 = vst.msk [vmem:[#allocation2 + $0xb0] sm:$0xff] %vm8320_vm14, %v1176_v19  ;;  %v871_v6 = vpop.permute.xlu1 %870  ;;  %vm8323_vm14 = vmmov %vm8316_vm2 }
 0x14a   :  { %912 = vst.msk [vmem:[#allocation2 + $0xa8] sm:$0xff] %vm8316_vm2, %v871_v6 }
 0x14c   :  { %v986_v16 = vpop.permute.xlu0 %985 }
 0x14d   :  { %1025 = vst.msk [vmem:[#allocation2 + $0xc8] sm:$0xff] %vm8321_vm12, %v986_v16  ;;  %v646_v17 = vpop.permute.xlu1 %645  ;;  %vm8324_vm12 = vmmov %vm8318_vm5 }
 0x14e   :  { %686 = vst.msk [vmem:[#allocation2 + $0xc0] sm:$0xff] %vm8318_vm5, %v646_v17 }
 0x150   :  { %v1082_v53 = vpop.permute.xlu0 %1081  ;;  %v1279_v55 = vld [vmem:[#allocation2 + $0xb0] sm:$0xff] }
 0x151   :  { %1121 = vst.msk [vmem:[#allocation2 + $0xc8] sm:$0xff] %vm8322_vm6, %v1082_v53  ;;  %1456 = vmatprep.mubr.f32.mxu0 %v1279_v55  ;;  %v776_v47 = vpop.permute.xlu1 %775  ;;  %v1278_v21 = vld [vmem:[#allocation2 + $0xa8] sm:$0xff]  ;;  %vm8325_vm6 = vmmov %vm8312_vm4 }
 0x152   :  { %816 = vst.msk [vmem:[#allocation2 + $0xc0] sm:$0xff] %vm8312_vm4, %v776_v47  ;;  %1457 = vmatmul.mubr.f32.gmra.mrb[14].mxu0 %v1278_v21 }
 0x153   :  { %v5972_v55 = vpop.f32.mrb[0].mxu1 }
 0x154   :  { %v1178_v0 = vpop.permute.xlu0 %1177  ;;  %v5975_v47 = vpop.f32.mrb[1].mxu1 }
 0x155   :  { %1217 = vst.msk [vmem:[#allocation2 + $0xc8] sm:$0xff] %vm8323_vm14, %v1178_v0  ;;  %v873_v46 = vpop.permute.xlu1 %872  ;;  %vm8326_vm14 = vmmov %vm8316_vm2 }
 0x156   :  { %913 = vst.msk [vmem:[#allocation2 + $0xc0] sm:$0xff] %vm8316_vm2, %v873_v46 }
 0x158   :  { %v988_v1 = vpop.permute.xlu0 %987 }
 0x159   :  { %1026 = vst.msk [vmem:[#allocation2 + $0xe0] sm:$0xff] %vm8324_vm12, %v988_v1  ;;  %v648_v27 = vpop.permute.xlu1 %647  ;;  %vm8327_vm12 = vmmov %vm8318_vm5 }
 0x15a   :  { %687 = vst.msk [vmem:[#allocation2 + $0xd8] sm:$0xff] %vm8318_vm5, %v648_v27 }
 0x15c   :  { %v1084_v31 = vpop.permute.xlu0 %1083  ;;  %v1282_v41 = vld [vmem:[#allocation2 + $0xc8] sm:$0xff] }
 0x15d   :  { %1122 = vst.msk [vmem:[#allocation2 + $0xe0] sm:$0xff] %vm8325_vm6, %v1084_v31  ;;  %1461 = vmatprep.mubr.f32.mxu0 %v1282_v41  ;;  %v778_v19 = vpop.permute.xlu1 %777  ;;  %v1281_v6 = vld [vmem:[#allocation2 + $0xc0] sm:$0xff]  ;;  %vm8328_vm6 = vmmov %vm8312_vm4 }
 0x15e   :  { %817 = vst.msk [vmem:[#allocation2 + $0xd8] sm:$0xff] %vm8312_vm4, %v778_v19  ;;  %1462 = vmatmul.mubr.f32.gmra.mrb[16].mxu0 %v1281_v6 }
 0x160   :  { %v1180_v16 = vpop.permute.xlu0 %1179 }
 0x161   :  { %1218 = vst.msk [vmem:[#allocation2 + $0xe0] sm:$0xff] %vm8326_vm14, %v1180_v16  ;;  %v875_v17 = vpop.permute.xlu1 %874  ;;  %vm8329_vm14 = vmmov %vm8316_vm2 }
 0x162   :  { %914 = vst.msk [vmem:[#allocation2 + $0xd8] sm:$0xff] %vm8316_vm2, %v875_v17 }
 0x164   :  { %v990_v53 = vpop.permute.xlu0 %989  ;;  %v5979_v1 = vpop.f32.mrb[2].mxu1 }
 0x165   :  { %1027 = vst.msk [vmem:[#allocation2 + $0xf8] sm:$0xff] %vm8327_vm12, %v990_v53  ;;  %v650_v21 = vpop.permute.xlu1 %649  ;;  %v5981_v41 = vpop.f32.mrb[3].mxu1  ;;  %vm8330_vm12 = vmmov %vm8318_vm5 }
 0x166   :  { %688 = vst.msk [vmem:[#allocation2 + $0xf0] sm:$0xff] %vm8318_vm5, %v650_v21 }
 0x168   :  { %v1086_v0 = vpop.permute.xlu0 %1085  ;;  %v1285_v46 = vld [vmem:[#allocation2 + $0xe0] sm:$0xff] }
 0x169   :  { %1123 = vst.msk [vmem:[#allocation2 + $0xf8] sm:$0xff] %vm8328_vm6, %v1086_v0  ;;  %1466 = vmatprep.mubr.f32.mxu0 %v1285_v46  ;;  %v780_v27 = vpop.permute.xlu1 %779  ;;  %v1284_v31 = vld [vmem:[#allocation2 + $0xd8] sm:$0xff]  ;;  %vm8331_vm6 = vmmov %vm8312_vm4 }
 0x16a   :  { %818 = vst.msk [vmem:[#allocation2 + $0xf0] sm:$0xff] %vm8312_vm4, %v780_v27  ;;  %1467 = vmatmul.mubr.f32.gmra.mrb[18].mxu0 %v1284_v31 }
 0x16c   :  { %v1182_v19 = vpop.permute.xlu0 %1181 }
 0x16d   :  { %1219 = vst.msk [vmem:[#allocation2 + $0xf8] sm:$0xff] %vm8329_vm14, %v1182_v19  ;;  %v877_v6 = vpop.permute.xlu1 %876  ;;  %v5987_v53 = vpop.f32.mrb[4].mxu1  ;;  %vm8332_vm14 = vmmov %vm8316_vm2 }
 0x16e   :  { %915 = vst.msk [vmem:[#allocation2 + $0xf0] sm:$0xff] %vm8316_vm2, %v877_v6  ;;  %v5990_v46 = vpop.f32.mrb[5].mxu1 }
 0x170   :  { %v992_v16 = vpop.permute.xlu0 %991 }
 0x171   :  { %1028 = vst.msk [vmem:[#allocation2 + $0x110] sm:$0xff] %vm8330_vm12, %v992_v16  ;;  %v652_v17 = vpop.permute.xlu1 %651  ;;  %vm8333_vm12 = vmmov %vm8318_vm5 }
 0x172   :  { %689 = vst.msk [vmem:[#allocation2 + $0x108] sm:$0xff] %vm8318_vm5, %v652_v17 }
 0x174   :  { %v1088_v21 = vpop.permute.xlu0 %1087  ;;  %v1288_v0 = vld [vmem:[#allocation2 + $0xf8] sm:$0xff] }
 0x175   :  { %1124 = vst.msk [vmem:[#allocation2 + $0x110] sm:$0xff] %vm8331_vm6, %v1088_v21  ;;  %1471 = vmatprep.mubr.f32.mxu0 %v1288_v0  ;;  %v782_v27 = vpop.permute.xlu1 %781  ;;  %v1287_v31 = vld [vmem:[#allocation2 + $0xf0] sm:$0xff]  ;;  %vm8334_vm6 = vmmov %vm8312_vm4 }
 0x176   :  { %819 = vst.msk [vmem:[#allocation2 + $0x108] sm:$0xff] %vm8312_vm4, %v782_v27  ;;  %1472 = vmatmul.mubr.f32.gmra.mrb[20].mxu0 %v1287_v31 }
 0x177   :  { %v5994_v6 = vpop.f32.mrb[6].mxu1 }
 0x178   :  { %v1184_v19 = vpop.permute.xlu0 %1183  ;;  %v5997_v16 = vpop.f32.mrb[7].mxu1 }
 0x179   :  { %1220 = vst.msk [vmem:[#allocation2 + $0x110] sm:$0xff] %vm8332_vm14, %v1184_v19  ;;  %v879_v17 = vpop.permute.xlu1 %878  ;;  %vm8335_vm14 = vmmov %vm8316_vm2 }
 0x17a   :  { %916 = vst.msk [vmem:[#allocation2 + $0x108] sm:$0xff] %vm8316_vm2, %v879_v17 }
 0x17c   :  { %v994_v24 = vpop.permute.xlu0 %993 }
 0x17d   :  { %1029 = vst.msk [vmem:[#allocation2 + $0x128] sm:$0xff] %vm8333_vm12, %v994_v24  ;;  %v654_v21 = vpop.permute.xlu1 %653  ;;  %vm8336_vm12 = vmmov %vm8318_vm5 }
 0x17e   :  { %690 = vst.msk [vmem:[#allocation2 + $0x120] sm:$0xff] %vm8318_vm5, %v654_v21 }
 0x180   :  { %v1090_v0 = vpop.permute.xlu0 %1089  ;;  %v1291_v5 = vld [vmem:[#allocation2 + $0x110] sm:$0xff] }
 0x181   :  { %1125 = vst.msk [vmem:[#allocation2 + $0x128] sm:$0xff] %vm8334_vm6, %v1090_v0  ;;  %1476 = vmatprep.mubr.f32.mxu0 %v1291_v5  ;;  %v784_v27 = vpop.permute.xlu1 %783  ;;  %v1290_v31 = vld [vmem:[#allocation2 + $0x108] sm:$0xff]  ;;  %vm8337_vm6 = vmmov %vm8312_vm4 }
 0x182   :  { %820 = vst.msk [vmem:[#allocation2 + $0x120] sm:$0xff] %vm8312_vm4, %v784_v27  ;;  %1477 = vmatmul.mubr.f32.gmra.mrb[22].mxu0 %v1290_v31 }
 0x184   :  { %v6003_v12 = vpop.f32.mrb[8].mxu1  ;;  %v1186_v19 = vpop.permute.xlu0 %1185 }
 0x185   :  { %v6006_v17 = vpop.f32.mrb[9].mxu1  ;;  %1221 = vst.msk [vmem:[#allocation2 + $0x128] sm:$0xff] %vm8335_vm14, %v1186_v19  ;;  %v881_v24 = vpop.permute.xlu1 %880  ;;  %vm8338_vm14 = vmmov %vm8316_vm2 }
 0x186   :  { %917 = vst.msk [vmem:[#allocation2 + $0x120] sm:$0xff] %vm8316_vm2, %v881_v24 }
 0x188   :  { %v996_v21 = vpop.permute.xlu0 %995 }
 0x189   :  { %1030 = vst.msk [vmem:[#allocation2 + $0x140] sm:$0xff] %vm8336_vm12, %v996_v21  ;;  %v656_v0 = vpop.permute.xlu1 %655  ;;  %vm8339_vm12 = vmmov %vm8318_vm5 }
 0x18a   :  { %691 = vst.msk [vmem:[#allocation2 + $0x138] sm:$0xff] %vm8318_vm5, %v656_v0 }
 0x18c   :  { %v1092_v5 = vpop.permute.xlu0 %1091  ;;  %v1294_v36 = vld [vmem:[#allocation2 + $0x128] sm:$0xff] }
 0x18d   :  { %1126 = vst.msk [vmem:[#allocation2 + $0x140] sm:$0xff] %vm8337_vm6, %v1092_v5  ;;  %1481 = vmatprep.mubr.f32.mxu0 %v1294_v36  ;;  %v786_v27 = vpop.permute.xlu1 %785  ;;  %v1293_v31 = vld [vmem:[#allocation2 + $0x120] sm:$0xff]  ;;  %vm8340_vm6 = vmmov %vm8312_vm4 }
 0x18e   :  { %821 = vst.msk [vmem:[#allocation2 + $0x138] sm:$0xff] %vm8312_vm4, %v786_v27  ;;  %1482 = vmatmul.mubr.f32.gmra.mrb[24].mxu0 %v1293_v31 }
 0x190   :  { %v1188_v19 = vpop.permute.xlu0 %1187 }
 0x191   :  { %1222 = vst.msk [vmem:[#allocation2 + $0x140] sm:$0xff] %vm8338_vm14, %v1188_v19  ;;  %v883_v24 = vpop.permute.xlu1 %882  ;;  %vm8341_vm14 = vmmov %vm8316_vm2 }
 0x192   :  { %918 = vst.msk [vmem:[#allocation2 + $0x138] sm:$0xff] %vm8316_vm2, %v883_v24 }
 0x194   :  { %v998_v21 = vpop.permute.xlu0 %997 }
 0x195   :  { %1031 = vst.msk [vmem:[#allocation2 + $0x158] sm:$0xff] %vm8339_vm12, %v998_v21  ;;  %v658_v0 = vpop.permute.xlu1 %657  ;;  %vm8342_vm12 = vmmov %vm8318_vm5 }
 0x196   :  { %692 = vst.msk [vmem:[#allocation2 + $0x150] sm:$0xff] %vm8318_vm5, %v658_v0 }
 0x198   :  { %v1094_v58 = vpop.permute.xlu0 %1093  ;;  %v1297_v5 = vld [vmem:[#allocation2 + $0x140] sm:$0xff] }
 0x199   :  { %1127 = vst.msk [vmem:[#allocation2 + $0x158] sm:$0xff] %vm8340_vm6, %v1094_v58  ;;  %1486 = vmatprep.mubr.f32.mxu0 %v1297_v5  ;;  %v788_v36 = vpop.permute.xlu1 %787  ;;  %v1296_v27 = vld [vmem:[#allocation2 + $0x138] sm:$0xff]  ;;  %vm8343_vm6 = vmmov %vm8312_vm4 }
 0x19a   :  { %822 = vst.msk [vmem:[#allocation2 + $0x150] sm:$0xff] %vm8312_vm4, %v788_v36  ;;  %1487 = vmatmul.mubr.f32.gmra.mrb[26].mxu0 %v1296_v27 }
 0x19c   :  { %v1190_v31 = vpop.permute.xlu0 %1189 }
 0x19d   :  { %1223 = vst.msk [vmem:[#allocation2 + $0x158] sm:$0xff] %vm8341_vm14, %v1190_v31  ;;  %v885_v19 = vpop.permute.xlu1 %884  ;;  %vm8344_vm14 = vmmov %vm8316_vm2 }
 0x19e   :  { %919 = vst.msk [vmem:[#allocation2 + $0x150] sm:$0xff] %vm8316_vm2, %v885_v19 }
 0x1a0   :  { %v1000_v24 = vpop.permute.xlu0 %999 }
 0x1a1   :  { %1032 = vst.msk [vmem:[#allocation2 + $0x170] sm:$0xff] %vm8342_vm12, %v1000_v24  ;;  %v660_v0 = vpop.permute.xlu1 %659  ;;  %vm8346_vm12 = vcmask 261120  }
 0x1a2   :  { %693 = vst.msk [vmem:[#allocation2 + $0x168] sm:$0xff] %vm8318_vm5, %v660_v0  ;;  %vm8347_vm5 = vmmov %vm8346_vm12 }
 0x1a4   :  { %v1096_v58 = vpop.permute.xlu0 %1095  ;;  %v1300_v5 = vld [vmem:[#allocation2 + $0x158] sm:$0xff] }
 0x1a5   :  { %v6023_v21 = vpop.f32.mrb[10].mxu1  ;;  %1128 = vst.msk [vmem:[#allocation2 + $0x170] sm:$0xff] %vm8343_vm6, %v1096_v58  ;;  %1491 = vmatprep.mubr.f32.mxu0 %v1300_v5  ;;  %v790_v27 = vpop.permute.xlu1 %789  ;;  %v1299_v31 = vld [vmem:[#allocation2 + $0x150] sm:$0xff]  ;;  %vm8348_vm6 = vmmov %vm8347_vm5 }
 0x1a6   :  { %v6025_v13 = vpop.f32.mrb[11].mxu1  ;;  %823 = vst.msk [vmem:[#allocation2 + $0x168] sm:$0xff] %vm8312_vm4, %v790_v27  ;;  %1492 = vmatmul.mubr.f32.gmra.mrb[28].mxu0 %v1299_v31  ;;  %v1307_v27 = vsub.s32 2, %v3962_v9  ;;  %v6045_v31 = vld [vmem:[%s7476_s2] sm:$0xff]  ;;  %vm8349_vm4 = vmmov %vm8347_vm5 }
 0x1a8   :  { %v1192_v24 = vpop.permute.xlu0 %1191 }
 0x1a9   :  { %v6029_v36 = vpop.f32.mrb[12].mxu1  ;;  %1224 = vst.msk [vmem:[#allocation2 + $0x170] sm:$0xff] %vm8344_vm14, %v1192_v24  ;;  %v887_v0 = vpop.permute.xlu1 %886  ;;  %v1658_v24 = vrot.slane %v6045_v31, %v1657_v4  ;;  %v3265_v4 = vld [vmem:[%s7477_s3 + $0x220] sm:$0xff]  ;;  %vm8350_vm14 = vmmov %vm8349_vm4 }
 0x1aa   :  { %v6031_v19 = vpop.f32.mrb[13].mxu1  ;;  %920 = vst.msk [vmem:[#allocation2 + $0x168] sm:$0xff] %vm8316_vm2, %v887_v0  ;;  %v6049_v0 = vrot.slane %v6045_v31, %v1307_v27  ;;  %vm8351_vm2 = vmmov %vm8349_vm4 }
 0x1ad   :  { %v6035_v30 = vpop.f32.mrb[14].mxu1 }
 0x1ae   :  { %v6037_v3 = vpop.f32.mrb[15].mxu1 }
 0x1b0   :  { %v1303_v61 = vld [vmem:[#allocation2 + $0x170] sm:$0xff] }
 0x1b1   :  { %v1729_v58 = vpop.f32.mrb[16].mxu1  ;;  %1496 = vmatprep.mubr.f32.mxu0 %v1303_v61  ;;  %v1302_v23 = vld [vmem:[#allocation2 + $0x168] sm:$0xff] }
 0x1b2   :  { %v3526_v5 = vpop.f32.mrb[17].mxu1  ;;  %1497 = vmatmul.mubr.f32.gmra.mrb[30].mxu0 %v1302_v23 }
 0x1b3   :  { %v6051_v5 = vadd.f32 %v1729_v58, %v1658_v24  ;;  %v3266_v58 = vld [vmem:[%s7477_s3 + $0x228] sm:$0xff] }
 0x1b4   :  { %v3634_v27 = vpack.c.bf16 %v3266_v58, %v3265_v4 }
 0x1b5   :  { %v6057_v29 = vrot.slane %v6051_v5, %v8345_v35  ;;  %v3267_v35 = vld [vmem:[%s7477_s3 + $0x230] sm:$0xff] }
 0x1b6   :  { %3635 = vmatprep.subr.bf16.mxu0 %v3634_v27 }
 0x1b7   :  { %3637 = vmatpush3.bf16.msra.mxu0 %v3634_v27 }
 0x1e8   :  { %v3317_v14 = vpop.f32.mrb[0].mxu0 }
 0x1e9   :  { %v3318_v61 = vpop.f32.mrb[1].mxu0 }
 0x1ea   :  { %v3319_v11 = vadd.f32 %v3318_v61, %v3317_v14 }
 0x1ec   :  { %v1424_v23 = vadd.f32 %v3319_v11, %v6049_v0 }
 0x1ee   :  { %v1569_v22 = vadd.f32 %v5975_v47, %v1424_v23  ;;  %v3268_v47 = vld [vmem:[%s7477_s3 + $0x238] sm:$0xff] }
 0x1ef   :  { %v3638_v54 = vpack.c.bf16 %v3268_v47, %v3267_v35 }
 0x1f0   :  { %v6067_v14 = vadd.f32 %v6057_v29, %v1569_v22 }
 0x1f1   :  { %3639 = vmatprep.subr.bf16.mxu0 %v3638_v54 }
 0x1f2   :  { %3641 = vmatpush3.bf16.msra.mxu0 %v3638_v54  ;;  %v1799_v58 = vmul.f32 %v6067_v14, %v6067_v14 }
 0x1f3   :  { %v3320_v24 = vpop.f32.mrb[2].mxu0 }
 0x1f4   :  { %v3321_v11 = vpop.f32.mrb[3].mxu0  ;;  %v1815_v54 = vsel %vm8348_vm6, %v1799_v58, 0.0  ;;  %vm8354_vm6 = vmmov %vm8351_vm2 }
 0x1f5   :  { %v3322_v61 = vadd.f32 %v3321_v11, %v3320_v24  ;;  %v1757_v11 = vsel %vm8346_vm12, %v6067_v14, 0.0  ;;  %vm8352_vm12 = vmmov %vm8351_vm2 }
 0x1f7   :  { %v1429_v23 = vadd.f32 %v3322_v61, %v6049_v0 }
 0x1f8   :  { %v3323_v27 = vpop.f32.mrb[4].mxu0 }
 0x1f9   :  { %v1574_v4 = vadd.f32 %v5972_v55, %v1429_v23  ;;  %v3324_v24 = vpop.f32.mrb[5].mxu0 }
 0x1fa   :  { %v3325_v55 = vadd.f32 %v3324_v24, %v3323_v27 }
 0x1fb   :  { %v6078_v22 = vadd.f32 %v6057_v29, %v1574_v4 }
 0x1fc   :  { %v1434_v23 = vadd.f32 %v3325_v55, %v6049_v0 }
 0x1fd   :  { %v1758_v50 = vsel %vm8347_vm5, %v6078_v22, 0.0  ;;  %v1800_v61 = vmul.f32 %v6078_v22, %v6078_v22  ;;  %vm8353_vm5 = vmmov %vm8351_vm2 }
 0x1fe   :  { %v1759_v35 = vadd.f32 %v1758_v50, %v1757_v11  ;;  %v1579_v2 = vadd.f32 %v5981_v41, %v1434_v23 }
 0x1ff   :  { %v1816_v47 = vsel %vm8349_vm4, %v1800_v61, 0.0  ;;  %vm8355_vm4 = vmmov %vm8351_vm2 }
 0x200   :  { %v1817_v4 = vadd.f32 %v1816_v47, %v1815_v54  ;;  %v6093_v45 = vadd.f32 %v6057_v29, %v1579_v2 }
 0x201   :  { %v3326_v62 = vpop.f32.mrb[6].mxu0 }
 0x202   :  { %v3327_v28 = vpop.f32.mrb[7].mxu0  ;;  %v1760_v59 = vsel %vm8350_vm14, %v6093_v45, 0.0  ;;  %v1801_v50 = vmul.f32 %v6093_v45, %v6093_v45  ;;  %vm8356_vm14 = vmmov %vm8351_vm2 }
 0x203   :  { %v3328_v27 = vadd.f32 %v3327_v28, %v3326_v62  ;;  %v1761_v58 = vadd.f32 %v1760_v59, %v1759_v35 }
 0x204   :  { %v1818_v24 = vsel %vm8351_vm2, %v1801_v50, 0.0 }
 0x205   :  { %v1439_v11 = vadd.f32 %v3328_v27, %v6049_v0  ;;  %v1819_v61 = vadd.f32 %v1818_v24, %v1817_v4 }
 0x207   :  { %v1584_v41 = vadd.f32 %v5979_v1, %v1439_v11 }
 0x208   :  { %v3329_v55 = vpop.f32.mrb[8].mxu0 }
 0x209   :  { %v6103_v2 = vadd.f32 %v6057_v29, %v1584_v41  ;;  %v3330_v54 = vpop.f32.mrb[9].mxu0 }
 0x20a   :  { %v3331_v28 = vadd.f32 %v3330_v54, %v3329_v55 }
 0x20b   :  { %v1762_v47 = vsel %vm8352_vm12, %v6103_v2, 0.0  ;;  %v1802_v23 = vmul.f32 %v6103_v2, %v6103_v2  ;;  %vm8357_vm12 = vmmov %vm8351_vm2 }
 0x20c   :  { %v1763_v59 = vadd.f32 %v1762_v47, %v1761_v58  ;;  %v1444_v35 = vadd.f32 %v3331_v28, %v6049_v0 }
 0x20d   :  { %v1820_v62 = vsel %vm8353_vm5, %v1802_v23, 0.0  ;;  %vm8358_vm5 = vmmov %vm8351_vm2 }
 0x20e   :  { %v1821_v4 = vadd.f32 %v1820_v62, %v1819_v61  ;;  %v1589_v1 = vadd.f32 %v5990_v46, %v1444_v35 }
 0x210   :  { %v6113_v50 = vadd.f32 %v6057_v29, %v1589_v1 }
 0x211   :  { %v3332_v27 = vpop.f32.mrb[10].mxu0 }
 0x212   :  { %v3333_v24 = vpop.f32.mrb[11].mxu0  ;;  %v1764_v11 = vsel %vm8354_vm6, %v6113_v50, 0.0  ;;  %v1803_v41 = vmul.f32 %v6113_v50, %v6113_v50  ;;  %vm8359_vm6 = vmmov %vm8351_vm2 }
 0x213   :  { %v3334_v55 = vadd.f32 %v3333_v24, %v3332_v27  ;;  %v1765_v58 = vadd.f32 %v1764_v11, %v1763_v59 }
 0x214   :  { %v1822_v54 = vsel %vm8355_vm4, %v1803_v41, 0.0  ;;  %vm8360_vm4 = vmmov %vm8351_vm2 }
 0x215   :  { %v1449_v47 = vadd.f32 %v3334_v55, %v6049_v0  ;;  %v1823_v61 = vadd.f32 %v1822_v54, %v1821_v4 }
 0x217   :  { %v1594_v46 = vadd.f32 %v5987_v53, %v1449_v47 }
 0x219   :  { %v6123_v23 = vadd.f32 %v6057_v29, %v1594_v46  ;;  %v3335_v28 = vpop.f32.mrb[12].mxu0 }
 0x21a   :  { %v3336_v62 = vpop.f32.mrb[13].mxu0 }
 0x21b   :  { %v1766_v35 = vsel %vm8356_vm14, %v6123_v23, 0.0  ;;  %v1804_v1 = vmul.f32 %v6123_v23, %v6123_v23  ;;  %v3337_v27 = vadd.f32 %v3336_v62, %v3335_v28  ;;  %vm8362_vm14 = vmmov %vm8351_vm2 }
 0x21c   :  { %v1767_v59 = vadd.f32 %v1766_v35, %v1765_v58 }
 0x21d   :  { %v1824_v24 = vsel %vm8351_vm2, %v1804_v1, 0.0  ;;  %v1454_v11 = vadd.f32 %v3337_v27, %v6049_v0 }
 0x21e   :  { %v1825_v4 = vadd.f32 %v1824_v24, %v1823_v61 }
 0x21f   :  { %v1599_v53 = vadd.f32 %v5997_v16, %v1454_v11 }
 0x221   :  { %v6133_v41 = vadd.f32 %v6057_v29, %v1599_v53 }
 0x223   :  { %v1768_v55 = vsel %vm8357_vm12, %v6133_v41, 0.0  ;;  %v1805_v54 = vmul.f32 %v6133_v41, %v6133_v41  ;;  %vm8363_vm12 = vmmov %vm8351_vm2 }
 0x224   :  { %v1769_v47 = vadd.f32 %v1768_v55, %v1767_v59 }
 0x225   :  { %v1826_v46 = vsel %vm8358_vm5, %v1805_v54, 0.0  ;;  %v3338_v58 = vpop.f32.mrb[14].mxu0  ;;  %vm8364_vm5 = vmmov %vm8351_vm2 }
 0x226   :  { %v1827_v28 = vadd.f32 %v1826_v46, %v1825_v4  ;;  %v3339_v62 = vpop.f32.mrb[15].mxu0 }
 0x227   :  { %v3340_v35 = vadd.f32 %v3339_v62, %v3338_v58 }
 0x229   :  { %v1459_v61 = vadd.f32 %v3340_v35, %v6049_v0 }
 0x22b   :  { %v1604_v16 = vadd.f32 %v5994_v6, %v1459_v61  ;;  %v8361_v61 = vsub.s32 1, %v3962_v9 }
 0x22d   :  { %v6143_v1 = vadd.f32 %v6057_v29, %v1604_v16  ;;  %v6154_v16 = vrot.slane %v6051_v5, %v8361_v61 }
 0x22f   :  { %v1770_v27 = vsel %vm8359_vm6, %v6143_v1, 0.0  ;;  %v1806_v24 = vmul.f32 %v6143_v1, %v6143_v1  ;;  %vm8365_vm6 = vmmov %vm8351_vm2 }
 0x230   :  { %v1771_v59 = vadd.f32 %v1770_v27, %v1769_v47 }
 0x231   :  { %v1828_v11 = vsel %vm8360_vm4, %v1806_v24, 0.0  ;;  %v3341_v53 = vpop.f32.mrb[16].mxu0  ;;  %vm8366_vm4 = vmmov %vm8351_vm2 }
 0x232   :  { %v1772_v4 = vrot.slane %v1771_v59, 4  ;;  %v1829_v55 = vadd.f32 %v1828_v11, %v1827_v28  ;;  %v3342_v54 = vpop.f32.mrb[17].mxu0 }
 0x233   :  { %v3343_v46 = vadd.f32 %v3342_v54, %v3341_v53 }
 0x234   :  { %v1773_v58 = vadd.f32 %v1772_v4, %v1771_v59  ;;  %v1830_v62 = vrot.slane %v1829_v55, 4 }
 0x235   :  { %v1464_v6 = vadd.f32 %v3343_v46, %v6049_v0 }
 0x236   :  { %v1774_v29 = vrot.slane %v1773_v58, 2  ;;  %v1831_v35 = vadd.f32 %v1830_v62, %v1829_v55 }
 0x237   :  { %v1609_v47 = vadd.f32 %v6006_v17, %v1464_v6 }
 0x238   :  { %v1775_v27 = vadd.f32 %v1774_v29, %v1773_v58  ;;  %v1832_v24 = vrot.slane %v1831_v35, 2 }
 0x239   :  { %v6158_v32 = vadd.f32 %v6154_v16, %v1609_v47 }
 0x23a   :  { %v1776_v28 = vrot.slane %v1775_v27, 1  ;;  %v1833_v11 = vadd.f32 %v1832_v24, %v1831_v35 }
 0x23c   :  { %v1777_v59 = vadd.f32 %v1776_v28, %v1775_v27  ;;  %v1834_v53 = vrot.slane %v1833_v11, 1 }
 0x23d   :  { %v3344_v4 = vpop.f32.mrb[18].mxu0 }
 0x23e   :  { %v1835_v54 = vadd.f32 %v1834_v53, %v1833_v11  ;;  %v6160_v46 = vmul.f32 0.015625, %v1777_v59  ;;  %v3345_v55 = vpop.f32.mrb[19].mxu0 }
 0x23f   :  { %v3346_v62 = vadd.f32 %v3345_v55, %v3344_v4  ;;  %v1903_v4 = vsub.s32 4, %v3962_v9 }
 0x240   :  { %v1859_v33 = vmul.f32 0.015625, %v1835_v54  ;;  %v1861_v5 = vmul.f32 %v6160_v46, %v6160_v46  ;;  %v1875_v17 = vsub.f32 %v6133_v41, %v6160_v46  ;;  %v1876_v58 = vsub.f32 %v6143_v1, %v6160_v46 }
 0x241   :  { %v1469_v6 = vadd.f32 %v3346_v62, %v6049_v0  ;;  %v1870_v29 = vsub.f32 %v6078_v22, %v6160_v46  ;;  %v1869_v35 = vsub.f32 %v6067_v14, %v6160_v46  ;;  %v1871_v61 = vsub.f32 %v6093_v45, %v6160_v46 }
 0x242   :  { %v1863_v47 = vsub.f32 %v1859_v33, %v1861_v5  ;;  %v1872_v27 = vsub.f32 %v6103_v2, %v6160_v46  ;;  %v1873_v41 = vsub.f32 %v6113_v50, %v6160_v46  ;;  %v1874_v1 = vsub.f32 %v6123_v23, %v6160_v46 }
 0x243   :  { %v1614_v24 = vadd.f32 %v6003_v12, %v1469_v6  ;;  %v1807_v22 = vmul.f32 %v6158_v32, %v6158_v32  ;;  %v1778_v45 = vsel %vm8362_vm14, %v6158_v32, 0.0  ;;  %v1923_v46 = vsub.s32 5, %v3962_v9  ;;  %vm8367_vm14 = vmmov %vm8351_vm2 }
 0x244   :  { %v1865_v28 = vadd.f32 1e-05, %v1863_v47  ;;  %v6199_v62 = vrot.slane %v6045_v31, %v1903_v4 }
 0x245   :  { %v6185_v14 = vadd.f32 %v6154_v16, %v1614_v24  ;;  %v1836_v12 = vsel %vm8363_vm12, %v1807_v22, 0.0  ;;  %v6203_v47 = vrot.slane %v6045_v31, %v1923_v46  ;;  %vm8368_vm12 = vmmov %vm8351_vm2 }
 0x246   :  { %3689 = vrsqrt.f32 %v1865_v28 }
 0x247   :  { %v1779_v33 = vsel %vm8351_vm2, %v6185_v14, 0.0  ;;  %v1808_v2 = vmul.f32 %v6185_v14, %v6185_v14 }
 0x248   :  { %v1780_v50 = vadd.f32 %v1779_v33, %v1778_v45 }
 0x249   :  { %v1837_v23 = vsel %vm8364_vm5, %v1808_v2, 0.0  ;;  %v3347_v11 = vpop.f32.mrb[20].mxu0  ;;  %vm8369_vm5 = vmmov %vm8351_vm2 }
 0x24a   :  { %v1838_v59 = vadd.f32 %v1837_v23, %v1836_v12  ;;  %v3348_v53 = vpop.f32.mrb[21].mxu0 }
 0x24b   :  { %v3349_v54 = vadd.f32 %v3348_v53, %v3347_v11 }
 0x24d   :  { %v1474_v55 = vadd.f32 %v3349_v54, %v6049_v0 }
 0x24f   :  { %v1619_v5 = vadd.f32 %v6025_v13, %v1474_v55 }
 0x250   :  { %v3690_v6 = vpop.eup %3689 }
 0x251   :  { %v1891_v24 = vmul.f32 %v3690_v6, %v1875_v17  ;;  %v1892_v28 = vmul.f32 %v3690_v6, %v1876_v58  ;;  %v6206_v22 = vadd.f32 %v6154_v16, %v1619_v5  ;;  %v1886_v45 = vmul.f32 %v3690_v6, %v1870_v29 }
 0x252   :  { %v1885_v33 = vmul.f32 %v3690_v6, %v1869_v35  ;;  %v1887_v2 = vmul.f32 %v3690_v6, %v1871_v61  ;;  %v1888_v12 = vmul.f32 %v3690_v6, %v1872_v27  ;;  %v1889_v23 = vmul.f32 %v3690_v6, %v1873_v41 }
 0x253   :  { %v1911_v11 = vmul.f32 %v6199_v62, %v1891_v24  ;;  %v1912_v53 = vmul.f32 %v6199_v62, %v1892_v28  ;;  %v1781_v13 = vsel %vm8365_vm6, %v6206_v22, 0.0  ;;  %v1809_v31 = vmul.f32 %v6206_v22, %v6206_v22  ;;  %vm8370_vm6 = vmmov %vm8351_vm2 }
 0x254   :  { %v1782_v17 = vadd.f32 %v1781_v13, %v1780_v50  ;;  %v1906_v58 = vmul.f32 %v6199_v62, %v1886_v45  ;;  %v1905_v4 = vmul.f32 %v6199_v62, %v1885_v33  ;;  %v1907_v29 = vmul.f32 %v6199_v62, %v1887_v2 }
 0x255   :  { %v1931_v35 = vadd.f32 %v6203_v47, %v1911_v11  ;;  %v1932_v61 = vadd.f32 %v6203_v47, %v1912_v53  ;;  %v1839_v27 = vsel %vm8366_vm4, %v1809_v31, 0.0  ;;  %v3350_v41 = vpop.f32.mrb[22].mxu0  ;;  %v1908_v54 = vmul.f32 %v6199_v62, %v1888_v12 }
 0x256   :  { %v1840_v46 = vadd.f32 %v1839_v27, %v1838_v59  ;;  %v3351_v55 = vpop.f32.mrb[23].mxu0  ;;  %v1926_v5 = vadd.f32 %v6203_v47, %v1906_v58  ;;  %v6223_v50 = vadd.f32 %v6203_v47, %v1905_v4  ;;  %v6226_v24 = vadd.f32 %v6203_v47, %v1907_v29 }
 0x257   :  { %v1947_v28 = vmul.f32 0.5, %v1931_v35  ;;  %v1948_v45 = vmul.f32 0.5, %v1932_v61  ;;  %v3352_v33 = vadd.f32 %v3351_v55, %v3350_v41  ;;  %v6229_v2 = vadd.f32 %v6203_v47, %v1908_v54 }
 0x258   :  { %v1942_v11 = vmul.f32 0.5, %v1926_v5  ;;  %v1941_v53 = vmul.f32 0.5, %v6223_v50  ;;  %v1909_v59 = vmul.f32 %v6199_v62, %v1889_v23  ;;  %v1943_v13 = vmul.f32 0.5, %v6226_v24 }
 0x259   :  { %3691 = vtanh.f32 %v1947_v28  ;;  %v1479_v12 = vadd.f32 %v3352_v33, %v6049_v0  ;;  %v1890_v31 = vmul.f32 %v3690_v6, %v1874_v1  ;;  %v1944_v58 = vmul.f32 0.5, %v6229_v2 }
 0x25a   :  { %3693 = vtanh.f32 %v1948_v45  ;;  %v6237_v4 = vadd.f32 %v6203_v47, %v1909_v59 }
 0x25b   :  { %v1624_v29 = vadd.f32 %v6023_v21, %v1479_v12  ;;  %3695 = vtanh.f32 %v1942_v11  ;;  %v1910_v27 = vmul.f32 %v6199_v62, %v1890_v31 }
 0x25c   :  { %3697 = vtanh.f32 %v1941_v53  ;;  %v1945_v23 = vmul.f32 0.5, %v6237_v4 }
 0x25d   :  { %v6243_v41 = vadd.f32 %v6154_v16, %v1624_v29  ;;  %3699 = vtanh.f32 %v1943_v13  ;;  %v6246_v1 = vadd.f32 %v6203_v47, %v1910_v27 }
 0x25e   :  { %3701 = vtanh.f32 %v1944_v58 }
 0x25f   :  { %v1783_v6 = vsel %vm8367_vm14, %v6243_v41, 0.0  ;;  %v1810_v21 = vmul.f32 %v6243_v41, %v6243_v41  ;;  %3703 = vtanh.f32 %v1945_v23  ;;  %v1946_v54 = vmul.f32 0.5, %v6246_v1  ;;  %vm8373_vm14 = vmmov %vm8351_vm2 }
 0x260   :  { %v1784_v55 = vadd.f32 %v1783_v6, %v1782_v17 }
 0x261   :  { %v1841_v28 = vsel %vm8351_vm2, %v1810_v21, 0.0  ;;  %v3353_v45 = vpop.f32.mrb[24].mxu0  ;;  %3705 = vtanh.f32 %v1946_v54  ;;  %vm8374_vm2 = vcmp.lt.s32.totalorder %v3962_v9, 7 }
 0x262   :  { %v1842_v33 = vadd.f32 %v1841_v28, %v1840_v46  ;;  %v3354_v11 = vpop.f32.mrb[25].mxu0 }
 0x263   :  { %v3692_v53 = vpop.eup %3691  ;;  %v3355_v59 = vadd.f32 %v3354_v11, %v3353_v45 }
 0x264   :  { %v3694_v12 = vpop.eup %3693  ;;  %v1979_v13 = vmul.f32 0.5, %v3692_v53 }
 0x265   :  { %v3696_v31 = vpop.eup %3695  ;;  %v1980_v58 = vmul.f32 0.5, %v3694_v12  ;;  %v1484_v29 = vadd.f32 %v3355_v59, %v6049_v0 }
 0x266   :  { %v3698_v27 = vpop.eup %3697  ;;  %v1995_v10 = vadd.f32 0.5, %v1979_v13  ;;  %v1974_v23 = vmul.f32 0.5, %v3696_v31 }
 0x267   :  { %v3700_v42 = vpop.eup %3699  ;;  %v1996_v20 = vadd.f32 0.5, %v1980_v58  ;;  %v1629_v17 = vadd.f32 %v6031_v19, %v1484_v29  ;;  %v1973_v6 = vmul.f32 0.5, %v3698_v27 }
 0x268   :  { %v3702_v21 = vpop.eup %3701  ;;  %v6256_v46 = vmul.f32 %v1995_v10, %v1931_v35  ;;  %v1990_v28 = vadd.f32 0.5, %v1974_v23  ;;  %v1975_v45 = vmul.f32 0.5, %v3700_v42 }
 0x269   :  { %v3704_v54 = vpop.eup %3703  ;;  %v6258_v11 = vmul.f32 %v1996_v20, %v1932_v61  ;;  %v6261_v53 = vadd.f32 %v6154_v16, %v1629_v17  ;;  %v1989_v59 = vadd.f32 0.5, %v1973_v6  ;;  %v1976_v12 = vmul.f32 0.5, %v3702_v21  ;;  %v8376_v6 = vld [vmem:[#allocation7_spill] sm:$0xff] }
 0x26a   :  { %v2224_v13 = vrot.slane %v6256_v46, 1  ;;  %2448 = vst.msk [vmem:[#allocation2 + $0x98] sm:$0xff] %vm8368_vm12, %v6256_v46  ;;  %v6266_v19 = vmul.f32 %v1990_v28, %v1926_v5  ;;  %v1991_v31 = vadd.f32 0.5, %v1975_v45  ;;  %v1977_v10 = vmul.f32 0.5, %v3704_v54  ;;  %v8371_v5 = vld [vmem:[#allocation6_spill] sm:$0xff]  ;;  %vm8375_vm12 = vmmov %vm8369_vm5 }
 0x26b   :  { %v7762_v35 = vrot.slane %v6258_v11, 1  ;;  %2449 = vst.msk [vmem:[#allocation2 + $0xb0] sm:$0xff] %vm8369_vm5, %v6258_v11  ;;  %v1785_v42 = vsel %vm8370_vm6, %v6261_v53, 0.0  ;;  %v1811_v20 = vmul.f32 %v6261_v53, %v6261_v53  ;;  %v6276_v61 = vmul.f32 %v1989_v59, %v6223_v50  ;;  %v3706_v17 = vpop.eup %3705  ;;  %v8378_v28 = vld [vmem:[#allocation54_spill] sm:$0xff] }
 0x26c   :  { %v1786_v58 = vadd.f32 %v1785_v42, %v1784_v55  ;;  %vm8372_vm4 = vcmp.lt.s32.totalorder %v8371_v5, 7  ;;  %v2219_v27 = vrot.slane %v6266_v19, 1  ;;  %2443 = vst.msk [vmem:[#allocation2 + $0x20] sm:$0xff] %vm8373_vm14, %v6266_v19  ;;  %v6285_v23 = vmul.f32 %v1991_v31, %v6226_v24  ;;  %vm8380_vm14 = vmmov %vm8370_vm6 }
 0x26d   :  { %v2650_v29 = vsel %vm8372_vm4, %v6266_v19, 0.0  ;;  %v6293_v50 = vsel %vm8374_vm2, %v2224_v13, %v7762_v35  ;;  %v1843_v55 = vsel %vm8375_vm12, %v1811_v20, 0.0  ;;  %vm8377_vm5 = vcmp.ge.s32.totalorder %v8376_v6, 1  ;;  %2442 = vst.msk [vmem:[#allocation2 + $0x8] sm:$0xff] %vm8370_vm6, %v6276_v61  ;;  %v3356_v24 = vpop.f32.mrb[26].mxu0  ;;  %vm8381_vm2 = vmmov %vm8370_vm6 }
 0x26e   :  { %2682 = vrot.lane.b32.xlu0 %v2650_v29, %s3770_s19  ;;  %v2123_v21 = vsel %vm8377_vm5, %v6276_v61, 0.0  ;;  %vm8379_vm4 = vnez %v8378_v28  ;;  %v1844_v54 = vadd.f32 %v1843_v55, %v1842_v33  ;;  %v3357_v59 = vpop.f32.mrb[27].mxu0  ;;  %v2220_v31 = vrot.slane %v6285_v23, 1  ;;  %2444 = vst.msk [vmem:[#allocation2 + $0x38] sm:$0xff] %vm8380_vm14, %v6285_v23  ;;  %vm8387_vm14 = vmmov %vm8381_vm2 }
 0x26f   :  { %v2751_v45 = vsel %vm8379_vm4, %v6293_v50, 0.0  ;;  %2156 = vrot.lane.b32.xlu1 %v2123_v21, %s3769_s27  ;;  %v3358_v42 = vadd.f32 %v3357_v59, %v3356_v24  ;;  %v1992_v20 = vadd.f32 0.5, %v1976_v12  ;;  %v1993_v29 = vadd.f32 0.5, %v1977_v10  ;;  %v8385_v12 = vld [vmem:[#allocation30_spill] sm:$0xff] }
 0x270   :  { %2767 = vst.msk [vmem:[#allocation2 + $0x88] sm:$0xff] %vm8381_vm2, %v2751_v45  ;;  %vm8382_vm12 = vcmp.lt.s32.totalorder %v8376_v6, 7  ;;  %vm8383_vm5 = vcmp.lt.s32.totalorder %v3962_v9, 7  ;;  %vm8384_vm6 = vcmp.ge.s32.totalorder %v4049_v7, 1  ;;  %v1978_v21 = vmul.f32 0.5, %v3706_v17 }
 0x271   :  { %v2651_v35 = vsel %vm8382_vm12, %v6285_v23, 0.0  ;;  %v6315_v33 = vsel %vm8383_vm5, %v2219_v27, %v2220_v31  ;;  %v2124_v55 = vsel %vm8384_vm6, %v6266_v19, 0.0  ;;  %v1489_v28 = vadd.f32 %v3358_v42, %v6049_v0  ;;  %vm8388_vm12 = vmmov %vm8381_vm2 }
 0x272   :  { %2684 = vrot.lane.b32.xlu0 %v2651_v35, %s3770_s19  ;;  %vm8386_vm4 = vnez %v8385_v12  ;;  %v6326_v6 = vmul.f32 %v1992_v20, %v6229_v2  ;;  %v6329_v24 = vmul.f32 %v1993_v29, %v6237_v4  ;;  %v1994_v45 = vadd.f32 0.5, %v1978_v21 }
 0x273   :  { %v2746_v10 = vsel %vm8386_vm4, %v6315_v33, 0.0  ;;  %2158 = vrot.lane.b32.xlu1 %v2124_v55, %s3769_s27  ;;  %v2218_v17 = vrot.slane %v6276_v61, 1  ;;  %v1634_v59 = vadd.f32 %v6029_v36, %v1489_v28  ;;  %vm8389_vm5 = vcmp.lt.s32.totalorder %v4049_v7, 7 }
 0x274   :  { %2762 = vst.msk [vmem:[#allocation2 + $0x10] sm:$0xff] %vm8387_vm14, %v2746_v10  ;;  %v2221_v35 = vrot.slane %v6326_v6, 1  ;;  %v2222_v2 = vrot.slane %v6329_v24, 1  ;;  %v2652_v4 = vsel %vm8389_vm5, %v6326_v6, 0.0  ;;  %vm8390_vm6 = vcmp.ge.s32.totalorder %v4051_v26, 1 }
 0x275   :  { %2445 = vst.msk [vmem:[#allocation2 + $0x50] sm:$0xff] %vm8381_vm2, %v6326_v6  ;;  %v2125_v42 = vsel %vm8390_vm6, %v6285_v23, 0.0  ;;  %v6348_v36 = vmul.f32 %v1994_v45, %v6246_v1  ;;  %v6351_v20 = vadd.f32 %v6154_v16, %v1634_v59  ;;  %vm8391_vm4 = vcmp.lt.s32.totalorder %v3962_v9, 7  ;;  %v8394_v1 = vld [vmem:[#allocation32_spill] sm:$0xff] }
 0x276   :  { %2446 = vst.msk [vmem:[#allocation2 + $0x68] sm:$0xff] %vm8388_vm12, %v6329_v24  ;;  %v6355_v29 = vsel %vm8391_vm4, %v2220_v31, %v2221_v35  ;;  %2686 = vrot.lane.b32.xlu0 %v2652_v4, %s3770_s19  ;;  %vm8392_vm14 = vmmov %vm8391_vm4  ;;  %vm8395_vm12 = vnez %v8394_v1  ;;  %v8396_v31 = vld [vmem:[#allocation34_spill] sm:$0xff]  ;;  %vm8398_vm6 = vcmask 261120  }
 0x277   :  { %v6360_v7 = vsel %vm8392_vm14, %v2221_v35, %v2222_v2  ;;  %vm8393_vm2 = vmmov %vm8391_vm4  ;;  %v2747_v21 = vsel %vm8395_vm12, %v6355_v29, 0.0  ;;  %2160 = vrot.lane.b32.xlu1 %v2125_v42, %s3769_s27  ;;  %vm8397_vm5 = vnez %v8396_v31  ;;  %v2223_v12 = vrot.slane %v6348_v36, 1  ;;  %2447 = vst.msk [vmem:[#allocation2 + $0x80] sm:$0xff] %vm8398_vm6, %v6348_v36  ;;  %v8405_v42 = vld [vmem:[#allocation26_spill] sm:$0xff] }
 0x278   :  { %v6366_v55 = vsel %vm8393_vm2, %v2218_v17, %v2219_v27  ;;  %v2748_v28 = vsel %vm8397_vm5, %v6360_v7, 0.0  ;;  %vm8399_vm4 = vmmov %vm8398_vm6  ;;  %v1812_v27 = vmul.f32 %v6351_v20, %v6351_v20  ;;  %vm8401_vm2 = vcmp.lt.s32.totalorder %v4051_v26, 7 }
 0x279   :  { %v1787_v10 = vsel %vm8399_vm4, %v6351_v20, 0.0  ;;  %vm8400_vm14 = vmmov %vm8399_vm4  ;;  %v2653_v45 = vsel %vm8401_vm2, %v6329_v24, 0.0  ;;  %vm8403_vm5 = vcmp.lt.s32.totalorder %v3962_v9, 7  ;;  %vm8408_vm2 = vcmp.ge.s32.totalorder %v4053_v34, 1  ;;  %v3359_v31 = vpop.f32.mrb[28].mxu0 }
 0x27a   :  { %2763 = vst.msk [vmem:[#allocation2 + $0x28] sm:$0xff] %vm8400_vm14, %v2747_v21  ;;  %vm8402_vm12 = vmmov %vm8399_vm4  ;;  %v1788_v59 = vadd.f32 %v1787_v10, %v1786_v58  ;;  %v6391_v35 = vsel %vm8403_vm5, %v2223_v12, %v2224_v13  ;;  %vm8406_vm4 = vnez %v8405_v42  ;;  %2688 = vrot.lane.b32.xlu0 %v2653_v45, %s3770_s19  ;;  %v2126_v58 = vsel %vm8408_vm2, %v6326_v6, 0.0  ;;  %v8409_v13 = vld [vmem:[#allocation38_spill] sm:$0xff] }
 0x27b   :  { %2764 = vst.msk [vmem:[#allocation2 + $0x40] sm:$0xff] %vm8402_vm12, %v2748_v28  ;;  %vm8404_vm6 = vmmov %vm8403_vm5  ;;  %v2761_v1 = vsel %vm8406_vm4, %v6366_v55, 0.0  ;;  %v2780_v21 = vld [vmem:[#allocation2 + $0x10] sm:$0xff]  ;;  %2162 = vrot.lane.b32.xlu1 %v2126_v58, %s3769_s27  ;;  %v2059_v45 = vrot.slane %v6266_v19, 7 }
 0x27c   :  { %v6395_v4 = vsel %vm8404_vm6, %v2222_v2, %v2223_v12  ;;  %vm8407_vm14 = vmmov %vm8402_vm12  ;;  %vm8410_vm12 = vnez %v8409_v13  ;;  %v8411_v2 = vld [vmem:[#allocation43_spill] sm:$0xff]  ;;  %v2060_v13 = vrot.slane %v6285_v23, 7 }
 0x27d   :  { %v1845_v26 = vsel %vm8407_vm14, %v1812_v27, 0.0  ;;  %v2749_v28 = vsel %vm8410_vm12, %v6395_v4, 0.0  ;;  %vm8412_vm5 = vnez %v8411_v2  ;;  %vm8413_vm6 = vmmov %vm8407_vm14  ;;  %v3360_v27 = vpop.f32.mrb[29].mxu0  ;;  %vm8417_vm12 = vcmp.lt.s32.totalorder %v4053_v34, 7 }
 0x27e   :  { %v2750_v12 = vsel %vm8412_vm5, %v6391_v35, 0.0  ;;  %2777 = vst.msk [vmem:[#allocation2 + $0x178] sm:$0xff] %vm8413_vm6, %v2761_v1  ;;  %v1846_v10 = vadd.f32 %v1845_v26, %v1844_v54  ;;  %vm8414_vm4 = vmmov %vm8413_vm6  ;;  %v3361_v42 = vadd.f32 %v3360_v27, %v3359_v31  ;;  %v2654_v2 = vsel %vm8417_vm12, %v6348_v36, 0.0 }
 0x27f   :  { %3535 = vmatprep.mubr.msk.f32.mxu0 %vm8414_vm4, %v2780_v21  ;;  %vm8415_vm14 = vmmov %vm8414_vm4  ;;  %v2061_v54 = vrot.slane %v6326_v6, 7  ;;  %2690 = vrot.lane.b32.xlu0 %v2654_v2, %s3770_s19  ;;  %vm8418_vm5 = vcmp.ge.s32.totalorder %v4055_v8, 1  ;;  %vm8419_vm6 = vcmp.lt.s32.totalorder %v3962_v9, 1  ;;  %v2058_v34 = vrot.slane %v6276_v61, 7 }
 0x280   :  { %2765 = vst.msk [vmem:[#allocation2 + $0x58] sm:$0xff] %vm8415_vm14, %v2749_v28  ;;  %vm8416_vm2 = vmmov %vm8414_vm4  ;;  %v1494_v1 = vadd.f32 %v3361_v42, %v6049_v0  ;;  %v2127_v26 = vsel %vm8418_vm5, %v6329_v24, 0.0  ;;  %v6429_v19 = vsel %vm8419_vm6, %v2059_v45, %v2060_v13  ;;  %v2062_v6 = vrot.slane %v6329_v24, 7 }
 0x281   :  { %2766 = vst.msk [vmem:[#allocation2 + $0x70] sm:$0xff] %vm8416_vm2, %v2750_v12  ;;  %v2783_v21 = vld [vmem:[#allocation2 + $0x28] sm:$0xff]  ;;  %2164 = vrot.lane.b32.xlu1 %v2127_v26, %s3769_s27  ;;  %vm8420_vm4 = vmmov %vm8419_vm6  ;;  %vm8422_vm12 = vcmp.lt.s32.totalorder %v4055_v8, 7  ;;  %v2063_v27 = vrot.slane %v6348_v36, 7  ;;  %vm8424_vm6 = vcmp.ge.s32.totalorder %v4317_v52, 1  ;;  %v2064_v2 = vrot.slane %v6256_v46, 7 }
 0x282   :  { %v6435_v23 = vsel %vm8420_vm4, %v2060_v13, %v2061_v54  ;;  %vm8421_vm14 = vmmov %vm8416_vm2  ;;  %v2786_v58 = vld [vmem:[#allocation2 + $0x40] sm:$0xff]  ;;  %v1639_v31 = vadd.f32 %v6037_v3, %v1494_v1  ;;  %v2655_v28 = vsel %vm8422_vm12, %v6256_v46, 0.0  ;;  %v2128_v3 = vsel %vm8424_vm6, %v6348_v36, 0.0 }
 0x283   :  { %3536 = vmatmul.mubr.msk.f32.vlgmr.msra.gmra.mrb[32].mxu0 %vm8421_vm14, %v2783_v21  ;;  %vm8423_vm5 = vmmov %vm8420_vm4  ;;  %2692 = vrot.lane.b32.xlu0 %v2655_v28, %s3770_s19  ;;  %v2088_v8 = vsel %vm8420_vm4, %v2058_v34, %v2059_v45  ;;  %vm8428_vm6 = vcmp.lt.s32.totalorder %v4317_v52, 7  ;;  %v6477_v21 = vsel %vm8420_vm4, %v2063_v27, %v2064_v2  ;;  %v8431_v28 = vld [vmem:[#allocation47_spill] sm:$0xff] }
 0x284   :  { %3538 = vmatprep.mubr.msk.f32.mxu0 %vm8416_vm2, %v2786_v58  ;;  %v6446_v12 = vsel %vm8423_vm5, %v2061_v54, %v2062_v6  ;;  %v6450_v42 = vadd.f32 %v6154_v16, %v1639_v31  ;;  %vm8425_vm14 = vmmov %vm8420_vm4  ;;  %v2656_v45 = vsel %vm8428_vm6, %v6258_v11, 0.0 }
 0x285   :  { %2166 = vrot.lane.b32.xlu1 %v2128_v3, %s3769_s27  ;;  %v6463_v13 = vsel %vm8425_vm14, %v2062_v6, %v2063_v27  ;;  %vm8426_vm12 = vmmov %vm8416_vm2  ;;  %v2065_v6 = vrot.slane %v6258_v11, 7  ;;  %v3362_v31 = vpop.f32.mrb[30].mxu0 }
 0x286   :  { %v1789_v54 = vsel %vm8416_vm2, %v6450_v42, 0.0  ;;  %v1813_v36 = vmul.f32 %v6450_v42, %v6450_v42  ;;  %vm8427_vm5 = vmmov %vm8416_vm2  ;;  %v3363_v27 = vpop.f32.mrb[31].mxu0 }
 0x287   :  { %v2789_v24 = vld [vmem:[#allocation2 + $0x58] sm:$0xff]  ;;  %v1790_v26 = vadd.f32 %v1789_v54, %v1788_v59  ;;  %vm8429_vm14 = vmmov %vm8416_vm2  ;;  %2694 = vrot.lane.b32.xlu0 %v2656_v45, %s3770_s19  ;;  %vm8430_vm2 = vcmp.ge.s32.totalorder %v4696_v49, 1  ;;  %v3364_v45 = vadd.f32 %v3363_v27, %v3362_v31 }
 0x288   :  { %3539 = vmatmul.mubr.msk.f32.gmra.mrb[34].mxu0 %vm8426_vm12, %v2789_v24  ;;  %v2792_v1 = vld [vmem:[#allocation2 + $0x70] sm:$0xff]  ;;  %v1847_v58 = vsel %vm8429_vm14, %v1813_v36, 0.0  ;;  %v2129_v59 = vsel %vm8430_vm2, %v6256_v46, 0.0  ;;  %vm8432_vm12 = vnez %v8431_v28  ;;  %v2795_v24 = vld [vmem:[#allocation2 + $0x88] sm:$0xff]  ;;  %vm8434_vm6 = vmmov %vm8429_vm14 }
 0x289   :  { %3541 = vmatprep.mubr.msk.f32.mxu0 %vm8427_vm5, %v2792_v1  ;;  %v2092_v3 = vsel %vm8432_vm12, %v2088_v8, 0.0  ;;  %v1848_v52 = vadd.f32 %v1847_v58, %v1846_v10  ;;  %2168 = vrot.lane.b32.xlu1 %v2129_v59, %s3769_s27  ;;  %vm8433_vm5 = vmmov %vm8420_vm4  ;;  %v8435_v36 = vld [vmem:[#allocation49_spill] sm:$0xff]  ;;  %v8437_v1 = vld [vmem:[#allocation52_spill] sm:$0xff]  ;;  %v1499_v27 = vadd.f32 %v3364_v45, %v6049_v0 }
 0x28a   :  { %v6492_v54 = vsel %vm8433_vm5, %v2064_v2, %v2065_v6  ;;  %2108 = vst.msk [vmem:[#allocation2 + $0x30] sm:$0xff] %vm8434_vm6, %v2092_v3  ;;  %vm8436_vm4 = vnez %v8435_v36  ;;  %vm8438_vm14 = vnez %v8437_v1  ;;  %vm8439_vm2 = vmmov %vm8434_vm6  ;;  %v8442_v2 = vld [vmem:[#allocation59_spill] sm:$0xff]  ;;  %v8444_v59 = vld [vmem:[#allocation25_spill] sm:$0xff] }
 0x28b   :  { %v2093_v46 = vsel %vm8436_vm4, %v6429_v19, 0.0  ;;  %v2094_v10 = vsel %vm8438_vm14, %v6435_v23, 0.0  ;;  %vm8440_vm12 = vmmov %vm8439_vm2  ;;  %vm8443_vm5 = vnez %v8442_v2  ;;  %vm8445_vm6 = vnez %v8444_v59  ;;  %v8458_v2 = vld [vmem:[#allocation28_spill] sm:$0xff] }
 0x28c   :  { %3542 = vmatmul.mubr.msk.f32.gmra.mrb[36].mxu0 %vm8439_vm2, %v2795_v24  ;;  %2109 = vst.msk [vmem:[#allocation2 + $0x48] sm:$0xff] %vm8440_vm12, %v2093_v46  ;;  %vm8441_vm0 = vmmov %vm8439_vm2  ;;  %v2095_v58 = vsel %vm8443_vm5, %v6446_v12, 0.0  ;;  %v2458_v28 = vsel %vm8445_vm6, %v6366_v55, 0.0  ;;  %vm8447_vm14 = vnez %v7984_v48  ;;  %vm8448_vm2 = vnez %v8081_v37  ;;  %v8453_v37 = vld [vmem:[#allocation39_spill] sm:$0xff]  ;;  %v8455_v46 = vld [vmem:[#allocation62_spill] sm:$0xff] }
 0x28d   :  { %2110 = vst.msk [vmem:[#allocation2 + $0x60] sm:$0xff] %vm8441_vm0, %v2094_v10  ;;  %vm8446_vm4 = vmmov %vm8441_vm0  ;;  %v2096_v3 = vsel %vm8447_vm14, %v6463_v13, 0.0  ;;  %v2097_v31 = vsel %vm8448_vm2, %v6477_v21, 0.0  ;;  %v2098_v24 = vsel %vm5393_vm1, %v6492_v54, 0.0  ;;  %2490 = vrot.lane.b32.xlu0 %v2458_v28, %s3769_s27  ;;  %vm8449_vm0 = vcmp.ge.s32.totalorder %v4729_v39, 1 }
 0x28e   :  { %2111 = vst.msk [vmem:[#allocation2 + $0x78] sm:$0xff] %vm8446_vm4, %v2095_v58  ;;  %v2130_v36 = vsel %vm8449_vm0, %v6258_v11, 0.0  ;;  %vm8450_vm12 = vmmov %vm8446_vm4  ;;  %v1644_v48 = vadd.f32 %v6035_v30, %v1499_v27  ;;  %vm8454_vm1 = vnez %v8453_v37  ;;  %vm8459_vm2 = vnez %v8458_v2 }
 0x28f   :  { %2112 = vst.msk [vmem:[#allocation2 + $0x90] sm:$0xff] %vm8450_vm12, %v2096_v3  ;;  %vm8451_vm5 = vmmov %vm8446_vm4  ;;  %2170 = vrot.lane.b32.xlu1 %v2130_v36, %s3769_s27  ;;  %v2554_v60 = vsel %vm8454_vm1, %v2088_v8, 0.0  ;;  %vm8461_vm12 = vnez %v7820_v38 }
 0x290   :  { %2113 = vst.msk [vmem:[#allocation2 + $0xa8] sm:$0xff] %vm8451_vm5, %v2097_v31  ;;  %vm8452_vm6 = vmmov %vm8446_vm4  ;;  %v6533_v0 = vadd.f32 %v6154_v16, %v1644_v48  ;;  %vm8456_vm4 = vnez %v8455_v46  ;;  %v2459_v16 = vsel %vm8459_vm2, %v6315_v33, 0.0  ;;  %vm8470_vm2 = vnez %v8022_v18 }
 0x291   :  { %2114 = vst.msk [vmem:[#allocation2 + $0xc0] sm:$0xff] %vm8452_vm6, %v2098_v24  ;;  %v2251_v1 = vsel %vm8456_vm4, %v6366_v55, 0.0  ;;  %2586 = vrot.lane.b32.xlu0 %v2554_v60, %s3771_s29  ;;  %vm8457_vm14 = vmmov %vm8451_vm5  ;;  %v2347_v55 = vsel %vm8461_vm12, %v2088_v8, 0.0  ;;  %v8462_v24 = vld [vmem:[#allocation57_spill] sm:$0xff]  ;;  %vm8464_vm6 = vnez %v8001_v51  ;;  %vm8467_vm4 = vnez %v7832_v25 }
 0x292   :  { %v1791_v10 = vsel %vm8457_vm14, %v6533_v0, 0.0  ;;  %v1814_v30 = vmul.f32 %v6533_v0, %v6533_v0  ;;  %vm8460_vm0 = vmmov %vm8451_vm5  ;;  %vm8463_vm5 = vnez %v8462_v24  ;;  %v2252_v27 = vsel %vm8464_vm6, %v6315_v33, 0.0  ;;  %v8471_v25 = vld [vmem:[#allocation33_spill] sm:$0xff] }
 0x293   :  { %2284 = vrot.lane.b32.xlu1 %v2251_v1, %s3771_s29  ;;  %v1792_v45 = vadd.f32 %v1791_v10, %v1790_v26  ;;  %v2555_v26 = vsel %vm8463_vm5, %v6429_v19, 0.0  ;;  %v2348_v60 = vsel %vm8467_vm4, %v6429_v19, 0.0  ;;  %v8468_v10 = vld [vmem:[#allocation66_spill] sm:$0xff] }
 0x294   :  { %v1849_v58 = vsel %vm8460_vm0, %v1814_v30, 0.0  ;;  %vm8469_vm14 = vnez %v8468_v10  ;;  %vm8472_vm0 = vnez %v8471_v25  ;;  %v2256_v10 = vsel %vm5266_vm7, %v6391_v35, 0.0 }
 0x295   :  { %2492 = vrot.lane.b32.xlu0 %v2459_v16, %s3769_s27  ;;  %v1793_v59 = vrot.slane %v1792_v45, 4  ;;  %v1850_v28 = vadd.f32 %v1849_v58, %v1848_v52  ;;  %v8465_v52 = vld [vmem:[#allocation31_spill] sm:$0xff]  ;;  %v2556_v30 = vsel %vm8469_vm14, %v6435_v23, 0.0  ;;  %v2461_v19 = vsel %vm8472_vm0, %v6360_v7, 0.0 }
 0x296   :  { %vm8466_vm1 = vnez %v8465_v52  ;;  %v8473_v58 = vld [vmem:[#allocation35_spill] sm:$0xff] }
 0x297   :  { %2380 = vrot.lane.b32.xlu1 %v2347_v55, %s3770_s19  ;;  %v1794_v3 = vadd.f32 %v1793_v59, %v1792_v45  ;;  %v1851_v31 = vrot.slane %v1850_v28, 4  ;;  %v2460_v37 = vsel %vm8466_vm1, %v6355_v29, 0.0  ;;  %v2253_v45 = vsel %vm8470_vm2, %v6355_v29, 0.0 }
 0x298   :  { %vm8474_vm12 = vnez %v8473_v58 }
 0x299   :  { %2588 = vrot.lane.b32.xlu0 %v2555_v26, %s3771_s29  ;;  %v1795_v36 = vrot.slane %v1794_v3, 2  ;;  %v1852_v48 = vadd.f32 %v1851_v31, %v1850_v28  ;;  %v2349_v55 = vsel %vm8474_vm12, %v6435_v23, 0.0 }
 0x29b   :  { %2286 = vrot.lane.b32.xlu1 %v2252_v27, %s3771_s29  ;;  %v1796_v38 = vadd.f32 %v1795_v36, %v1794_v3  ;;  %v1853_v8 = vrot.slane %v1852_v48, 2 }
 0x29d   :  { %2494 = vrot.lane.b32.xlu0 %v2460_v37, %s3769_s27  ;;  %v1797_v46 = vrot.slane %v1796_v38, 1  ;;  %v1854_v1 = vadd.f32 %v1853_v8, %v1852_v48 }
 0x29f   :  { %2382 = vrot.lane.b32.xlu1 %v2348_v60, %s3770_s19  ;;  %v1798_v51 = vadd.f32 %v1797_v46, %v1796_v38  ;;  %v1855_v33 = vrot.slane %v1854_v1, 1  ;;  %v8483_v38 = vld [vmem:[#allocation36_spill] sm:$0xff]  ;;  %v8487_v60 = vld [vmem:[#allocation41_spill] sm:$0xff] }
 0x2a0   :  { %vm8484_vm14 = vnez %v8483_v38  ;;  %vm8488_vm0 = vnez %v8487_v60 }
 0x2a1   :  { %2590 = vrot.lane.b32.xlu0 %v2556_v30, %s3771_s29  ;;  %v1856_v2 = vadd.f32 %v1855_v33, %v1854_v1  ;;  %v1858_v16 = vmul.f32 0.015625, %v1798_v51  ;;  %v2558_v8 = vsel %vm8484_vm14, %v6463_v13, 0.0  ;;  %v2463_v46 = vsel %vm8488_vm0, %v6391_v35, 0.0  ;;  %v8491_v51 = vld [vmem:[#allocation46_spill] sm:$0xff] }
 0x2a2   :  { %vm8499_vm14 = vnez %v8066_v57  ;;  %vm8501_vm0 = vcmp.ge.s32.totalorder %v8371_v5, 1 }
 0x2a3   :  { %2288 = vrot.lane.b32.xlu1 %v2253_v45, %s3771_s29  ;;  %v1860_v59 = vmul.f32 0.015625, %v1856_v2  ;;  %v1862_v28 = vmul.f32 %v1858_v16, %v1858_v16  ;;  %v1884_v3 = vsub.f32 %v6533_v0, %v1858_v16  ;;  %v1882_v31 = vsub.f32 %v6351_v20, %v1858_v16  ;;  %v8475_v20 = vld [vmem:[#allocation69_spill] sm:$0xff] }
 0x2a4   :  { %v1883_v18 = vsub.f32 %v6450_v42, %v1858_v16  ;;  %v1877_v29 = vsub.f32 %v6158_v32, %v1858_v16  ;;  %v1878_v24 = vsub.f32 %v6185_v14, %v1858_v16  ;;  %v1879_v26 = vsub.f32 %v6206_v22, %v1858_v16  ;;  %v8477_v32 = vld [vmem:[#allocation42_spill] sm:$0xff]  ;;  %v8479_v22 = vld [vmem:[#allocation37_spill] sm:$0xff] }
 0x2a5   :  { %2496 = vrot.lane.b32.xlu0 %v2461_v19, %s3769_s27  ;;  %v1864_v27 = vsub.f32 %v1860_v59, %v1862_v28  ;;  %v1880_v23 = vsub.f32 %v6243_v41, %v1858_v16  ;;  %v1881_v36 = vsub.f32 %v6261_v53, %v1858_v16  ;;  %vm8476_vm5 = vnez %v8475_v20  ;;  %v8481_v53 = vld [vmem:[#allocation40_spill] sm:$0xff] }
 0x2a6   :  { %v2557_v42 = vsel %vm8476_vm5, %v6446_v12, 0.0  ;;  %vm8478_vm6 = vnez %v8477_v32  ;;  %vm8480_vm1 = vnez %v8479_v22  ;;  %vm8482_vm4 = vnez %v8481_v53 }
 0x2a7   :  { %2384 = vrot.lane.b32.xlu1 %v2349_v55, %s3770_s19  ;;  %v1866_v0 = vadd.f32 1e-05, %v1864_v27  ;;  %v2254_v14 = vsel %vm8478_vm6, %v6360_v7, 0.0  ;;  %v2462_v41 = vsel %vm8480_vm1, %v6395_v4, 0.0  ;;  %v2350_v48 = vsel %vm8482_vm4, %v6446_v12, 0.0  ;;  %v8485_v7 = vld [vmem:[#allocation72_spill] sm:$0xff] }
 0x2a8   :  { %vm8486_vm2 = vnez %v8485_v7  ;;  %v8489_v12 = vld [vmem:[#allocation48_spill] sm:$0xff]  ;;  %vm8492_vm5 = vnez %v8491_v51  ;;  %vm8495_vm6 = vnez %v7974_v56  ;;  %vm8498_vm4 = vnez %v8114_v44 }
 0x2a9   :  { %2592 = vrot.lane.b32.xlu0 %v2557_v42, %s3771_s29  ;;  %3707 = vrsqrt.f32 %v1866_v0  ;;  %v2255_v52 = vsel %vm8486_vm2, %v6395_v4, 0.0  ;;  %vm8490_vm12 = vnez %v8489_v12  ;;  %v2559_v33 = vsel %vm8492_vm5, %v6477_v21, 0.0  ;;  %v8493_v42 = vld [vmem:[#allocation44_spill] sm:$0xff] }
 0x2aa   :  { %v2351_v1 = vsel %vm8490_vm12, %v6463_v13, 0.0  ;;  %vm8494_vm7 = vnez %v8493_v42  ;;  %v2257_v56 = vsel %vm8498_vm4, %v6293_v50, 0.0  ;;  %vm8500_vm2 = vcmask 261120  }
 0x2ab   :  { %2290 = vrot.lane.b32.xlu1 %v2254_v14, %s3771_s29  ;;  %v2464_v32 = vsel %vm8494_vm7, %v6293_v50, 0.0  ;;  %vm8502_vm12 = vmmov %vm8500_vm2  ;;  %vm8503_vm5 = vcmp.lt.s32.totalorder %v3962_v9, 7 }
 0x2ac   :  { %vm8504_vm7 = vmmov %vm8500_vm2 }
 0x2ad   :  { %2498 = vrot.lane.b32.xlu0 %v2462_v41, %s3769_s27  ;;  %v2352_v41 = vsel %vm8495_vm6, %v6477_v21, 0.0  ;;  %v2353_v21 = vsel %vm8499_vm14, %v6492_v54, 0.0  ;;  %vm8508_vm4 = vmmov %vm8500_vm2 }
 0x2ae   :  { %vm8509_vm14 = vmmov %vm8503_vm5 }
 0x2af   :  { %2386 = vrot.lane.b32.xlu1 %v2350_v48, %s3770_s19 }
 0x2b1   :  { %2594 = vrot.lane.b32.xlu0 %v2558_v8, %s3771_s29 }
 0x2b3   :  { %2292 = vrot.lane.b32.xlu1 %v2255_v52, %s3771_s29  ;;  %v3708_v37 = vpop.eup %3707 }
 0x2b4   :  { %v1900_v4 = vmul.f32 %v3708_v37, %v1884_v3  ;;  %v1898_v30 = vmul.f32 %v3708_v37, %v1882_v31  ;;  %v1899_v45 = vmul.f32 %v3708_v37, %v1883_v18  ;;  %v1893_v2 = vmul.f32 %v3708_v37, %v1877_v29 }
 0x2b5   :  { %2500 = vrot.lane.b32.xlu0 %v2463_v46, %s3769_s27  ;;  %v1894_v16 = vmul.f32 %v3708_v37, %v1878_v24  ;;  %v1895_v25 = vmul.f32 %v3708_v37, %v1879_v26  ;;  %v1896_v19 = vmul.f32 %v3708_v37, %v1880_v23  ;;  %v1897_v13 = vmul.f32 %v3708_v37, %v1881_v36 }
 0x2b6   :  { %v1920_v58 = vmul.f32 %v6199_v62, %v1900_v4  ;;  %v1918_v55 = vmul.f32 %v6199_v62, %v1898_v30  ;;  %v1919_v59 = vmul.f32 %v6199_v62, %v1899_v45  ;;  %v1913_v43 = vmul.f32 %v6199_v62, %v1893_v2 }
 0x2b7   :  { %2388 = vrot.lane.b32.xlu1 %v2351_v1, %s3770_s19  ;;  %v1914_v35 = vmul.f32 %v6199_v62, %v1894_v16  ;;  %v1915_v28 = vmul.f32 %v6199_v62, %v1895_v25  ;;  %v1916_v3 = vmul.f32 %v6199_v62, %v1896_v19  ;;  %v1917_v31 = vmul.f32 %v6199_v62, %v1897_v13 }
 0x2b8   :  { %v1940_v18 = vadd.f32 %v6203_v47, %v1920_v58  ;;  %v1938_v29 = vadd.f32 %v6203_v47, %v1918_v55  ;;  %v1939_v24 = vadd.f32 %v6203_v47, %v1919_v59  ;;  %v1933_v26 = vadd.f32 %v6203_v47, %v1913_v43 }
 0x2b9   :  { %2596 = vrot.lane.b32.xlu0 %v2559_v33, %s3771_s29  ;;  %v6645_v27 = vadd.f32 %v6203_v47, %v1914_v35  ;;  %v6648_v23 = vadd.f32 %v6203_v47, %v1915_v28  ;;  %v6651_v20 = vadd.f32 %v6203_v47, %v1916_v3  ;;  %v6657_v22 = vadd.f32 %v6203_v47, %v1917_v31  ;;  %v8496_v47 = vld [vmem:[#allocation74_spill] sm:$0xff] }
 0x2ba   :  { %v1956_v36 = vmul.f32 0.5, %v1940_v18  ;;  %v1954_v62 = vmul.f32 0.5, %v1938_v29  ;;  %v1955_v0 = vmul.f32 0.5, %v1939_v24  ;;  %v1949_v14 = vmul.f32 0.5, %v1933_v26 }
 0x2bb   :  { %2294 = vrot.lane.b32.xlu1 %v2256_v10, %s3771_s29  ;;  %v1950_v53 = vmul.f32 0.5, %v6645_v27  ;;  %v1951_v48 = vmul.f32 0.5, %v6648_v23  ;;  %v1952_v38 = vmul.f32 0.5, %v6651_v20  ;;  %vm8497_vm1 = vnez %v8496_v47 }
 0x2bc   :  { %3709 = vtanh.f32 %v1956_v36  ;;  %v2560_v8 = vsel %vm8497_vm1, %v6492_v54, 0.0  ;;  %v1953_v7 = vmul.f32 0.5, %v6657_v22  ;;  %vm8507_vm1 = vcmp.lt.s32.totalorder %v4696_v49, 7 }
 0x2bd   :  { %2502 = vrot.lane.b32.xlu0 %v2464_v32, %s3769_s27  ;;  %3711 = vtanh.f32 %v1954_v62  ;;  %v8515_v32 = vld [vmem:[#allocation17_spill] sm:$0xff] }
 0x2be   :  { %3713 = vtanh.f32 %v1955_v0 }
 0x2bf   :  { %2390 = vrot.lane.b32.xlu1 %v2352_v41, %s3770_s19  ;;  %3715 = vtanh.f32 %v1949_v14  ;;  %v8517_v41 = vrot.slane %v6258_v11, 1  ;;  %v3234_v11 = vld [vmem:[%s7477_s3 + $0x128] sm:$0xff] }
 0x2c0   :  { %3717 = vtanh.f32 %v1950_v53 }
 0x2c1   :  { %2598 = vrot.lane.b32.xlu0 %v2560_v8, %s3771_s29  ;;  %3719 = vtanh.f32 %v1951_v48 }
 0x2c2   :  { %3721 = vtanh.f32 %v1952_v38 }
 0x2c3   :  { %2296 = vrot.lane.b32.xlu1 %v2257_v56, %s3771_s29  ;;  %3723 = vtanh.f32 %v1953_v7  ;;  %v8526_v7 = vld [vmem:[#allocation60_spill] sm:$0xff] }
 0x2c6   :  { %v3710_v52 = vpop.eup %3709 }
 0x2c7   :  { %2392 = vrot.lane.b32.xlu1 %v2353_v21, %s3770_s19  ;;  %v3712_v37 = vpop.eup %3711  ;;  %v1988_v60 = vmul.f32 0.5, %v3710_v52 }
 0x2c8   :  { %v3714_v46 = vpop.eup %3713  ;;  %v1986_v12 = vmul.f32 0.5, %v3712_v37 }
 0x2c9   :  { %v3716_v1 = vpop.eup %3715  ;;  %v2004_v44 = vadd.f32 0.5, %v1988_v60  ;;  %v1987_v50 = vmul.f32 0.5, %v3714_v46 }
 0x2ca   :  { %v3718_v51 = vpop.eup %3717  ;;  %v2002_v33 = vadd.f32 0.5, %v1986_v12  ;;  %v1981_v10 = vmul.f32 0.5, %v3716_v1  ;;  %v8532_v12 = vld [vmem:[#allocation61_spill] sm:$0xff] }
 0x2cb   :  { %v3720_v4 = vpop.eup %3719  ;;  %v6680_v30 = vmul.f32 %v2004_v44, %v1940_v18  ;;  %v2003_v45 = vadd.f32 0.5, %v1987_v50  ;;  %v1982_v2 = vmul.f32 0.5, %v3718_v51 }
 0x2cc   :  { %v3722_v57 = vpop.eup %3721  ;;  %v6682_v54 = vmul.f32 %v2002_v33, %v1938_v29  ;;  %v1997_v16 = vadd.f32 0.5, %v1981_v10  ;;  %v1983_v25 = vmul.f32 0.5, %v3720_v4  ;;  %v8505_v29 = vld [vmem:[#allocation27_spill] sm:$0xff]  ;;  %v8542_v4 = vld [vmem:[#allocation45_spill] sm:$0xff] }
 0x2cd   :  { %v3724_v19 = vpop.eup %3723  ;;  %2457 = vst.msk [vmem:[#allocation2 + $0x170] sm:$0xff] %vm8500_vm2, %v6680_v30  ;;  %v6686_v13 = vmul.f32 %v2003_v45, %v1939_v24  ;;  %v2233_v58 = vrot.slane %v6680_v30, 1  ;;  %v2122_v55 = vsel %vm8501_vm0, %v6680_v30, 0.0  ;;  %v1998_v59 = vadd.f32 0.5, %v1982_v2  ;;  %vm8510_vm2 = vmmov %vm8503_vm5 }
 0x2ce   :  { %v2231_v43 = vrot.slane %v6682_v54, 1  ;;  %2455 = vst.msk [vmem:[#allocation2 + $0x140] sm:$0xff] %vm8502_vm12, %v6682_v54  ;;  %v6695_v35 = vmul.f32 %v1997_v16, %v1933_v26  ;;  %2154 = vrot.lane.b32.xlu1 %v2122_v55, %s3769_s27  ;;  %v1999_v28 = vadd.f32 0.5, %v1983_v25  ;;  %v1984_v18 = vmul.f32 0.5, %v3722_v57  ;;  %vm8511_vm0 = vmmov %vm8508_vm4 }
 0x2cf   :  { %v2232_v3 = vrot.slane %v6686_v13, 1  ;;  %v6703_v31 = vsel %vm8503_vm5, %v2233_v58, %v2218_v17  ;;  %2456 = vst.msk [vmem:[#allocation2 + $0x158] sm:$0xff] %vm8504_vm7, %v6686_v13  ;;  %v6708_v5 = vmul.f32 %v1998_v59, %v6645_v27  ;;  %vm8506_vm6 = vnez %v8505_v29  ;;  %vm8512_vm12 = vmmov %vm8511_vm0  ;;  %v8551_v59 = vld [vmem:[#allocation71_spill] sm:$0xff] }
 0x2d0   :  { %v2760_v24 = vsel %vm8506_vm6, %v6703_v31, 0.0  ;;  %v2226_v26 = vrot.slane %v6695_v35, 1  ;;  %v2657_v36 = vsel %vm8507_vm1, %v6695_v35, 0.0  ;;  %2450 = vst.msk [vmem:[#allocation2 + $0xc8] sm:$0xff] %vm8508_vm4, %v6695_v35  ;;  %v1985_v17 = vmul.f32 0.5, %v3724_v19  ;;  %vm8518_vm1 = vmmov %vm8510_vm2 }
 0x2d1   :  { %v6721_v62 = vsel %vm8509_vm14, %v2232_v3, %v2233_v58  ;;  %v6727_v27 = vsel %vm8510_vm2, %v2231_v43, %v2232_v3  ;;  %2776 = vst.msk [vmem:[#allocation2 + $0x160] sm:$0xff] %vm8511_vm0, %v2760_v24  ;;  %2696 = vrot.lane.b32.xlu0 %v2657_v36, %s3770_s19  ;;  %v2227_v49 = vrot.slane %v6708_v5, 1  ;;  %vm8513_vm5 = vcmp.ge.s32.totalorder %v4911_v63, 1  ;;  %vm8519_vm4 = vmmov %vm8511_vm0  ;;  %v8553_v3 = vld [vmem:[#allocation78_spill] sm:$0xff] }
 0x2d2   :  { %2451 = vst.msk [vmem:[#allocation2 + $0xe0] sm:$0xff] %vm8512_vm12, %v6708_v5  ;;  %v2131_v0 = vsel %vm8513_vm5, %v6695_v35, 0.0  ;;  %vm8514_vm7 = vnez %v8088_v15  ;;  %vm8516_vm6 = vnez %v8515_v32  ;;  %v6747_v53 = vsel %vm8518_vm1, %v8517_v41, %v2226_v26  ;;  %vm8520_vm14 = vmmov %vm8511_vm0  ;;  %v8521_v15 = vld [vmem:[#allocation55_spill] sm:$0xff] }
 0x2d3   :  { %v2758_v42 = vsel %vm8514_vm7, %v6727_v27, 0.0  ;;  %v2759_v14 = vsel %vm8516_vm6, %v6721_v62, 0.0  ;;  %2172 = vrot.lane.b32.xlu1 %v2131_v0, %s3769_s27  ;;  %v6751_v48 = vmul.f32 %v1999_v28, %v6648_v23  ;;  %vm8522_vm2 = vnez %v8521_v15  ;;  %vm8523_vm0 = vmmov %vm8518_vm1  ;;  %v8563_v0 = vld [vmem:[#allocation12_spill] sm:$0xff] }
 0x2d4   :  { %2775 = vst.msk [vmem:[#allocation2 + $0x148] sm:$0xff] %vm8519_vm4, %v2759_v14  ;;  %v2752_v38 = vsel %vm8522_vm2, %v6747_v53, 0.0  ;;  %v6760_v47 = vsel %vm8523_vm0, %v2226_v26, %v2227_v49  ;;  %v2000_v8 = vadd.f32 0.5, %v1984_v18  ;;  %vm8524_vm12 = vmmov %vm8519_vm4  ;;  %vm8525_vm5 = vcmp.lt.s32.totalorder %v4729_v39, 7 }
 0x2d5   :  { %2774 = vst.msk [vmem:[#allocation2 + $0x130] sm:$0xff] %vm8520_vm14, %v2758_v42  ;;  %v2658_v23 = vsel %vm8525_vm5, %v6708_v5, 0.0  ;;  %vm8527_vm7 = vnez %v8526_v7  ;;  %v2228_v21 = vrot.slane %v6751_v48, 1  ;;  %vm8528_vm6 = vmmov %vm8519_vm4  ;;  %v2001_v37 = vadd.f32 0.5, %v1985_v17 }
 0x2d6   :  { %2768 = vst.msk [vmem:[#allocation2 + $0xa0] sm:$0xff] %vm8524_vm12, %v2752_v38  ;;  %v2753_v56 = vsel %vm8527_vm7, %v6760_v47, 0.0  ;;  %2698 = vrot.lane.b32.xlu0 %v2658_v23, %s3770_s19  ;;  %vm8529_vm1 = vmmov %vm8519_vm4  ;;  %vm8530_vm4 = vcmp.ge.s32.totalorder %v5145_v40, 1  ;;  %v2016_v39 = vmul.f32 %v2000_v8, %v6651_v20  ;;  %v2073_v60 = vrot.slane %v6680_v30, 7 }
 0x2d7   :  { %2452 = vst.msk [vmem:[#allocation2 + $0xf8] sm:$0xff] %vm8528_vm6, %v6751_v48  ;;  %v2132_v52 = vsel %vm8530_vm4, %v6708_v5, 0.0  ;;  %vm8531_vm14 = vmmov %vm8523_vm0  ;;  %vm8533_vm2 = vnez %v8532_v12  ;;  %v2017_v50 = vmul.f32 %v2001_v37, %v6657_v22  ;;  %vm8535_vm12 = vcmp.lt.s32.totalorder %v4911_v63, 7  ;;  %v8539_v22 = vld [vmem:[#allocation75_spill] sm:$0xff] }
 0x2d8   :  { %2769 = vst.msk [vmem:[#allocation2 + $0xb8] sm:$0xff] %vm8529_vm1, %v2753_v56  ;;  %v6781_v46 = vsel %vm8531_vm14, %v2227_v49, %v2228_v21  ;;  %2174 = vrot.lane.b32.xlu1 %v2132_v52, %s3769_s27  ;;  %v2229_v44 = vrot.slane %v2016_v39, 1  ;;  %vm8534_vm0 = vmmov %vm8529_vm1  ;;  %v2659_v20 = vsel %vm8535_vm12, %v6751_v48, 0.0  ;;  %vm8537_vm7 = vcmp.lt.s32.totalorder %v3962_v9, 1  ;;  %v3249_v56 = vld [vmem:[%s7477_s3 + $0x1a0] sm:$0xff]  ;;  %v3250_v12 = vld [vmem:[%s7477_s3 + $0x1a8] sm:$0xff] }
 0x2d9   :  { %v2754_v1 = vsel %vm8533_vm2, %v6781_v46, 0.0  ;;  %2453 = vst.msk [vmem:[#allocation2 + $0x110] sm:$0xff] %vm8534_vm0, %v2016_v39  ;;  %vm8536_vm5 = vmmov %vm8534_vm0  ;;  %v6799_v51 = vsel %vm8537_vm7, %v2073_v60, %v2058_v34  ;;  %vm8540_vm1 = vcmp.ge.s32.totalorder %v8539_v22, 1  ;;  %v2230_v10 = vrot.slane %v2017_v50, 1  ;;  %v8544_v34 = vld [vmem:[#allocation68_spill] sm:$0xff] }
 0x2da   :  { %2770 = vst.msk [vmem:[#allocation2 + $0xd0] sm:$0xff] %vm8536_vm5, %v2754_v1  ;;  %2700 = vrot.lane.b32.xlu0 %v2659_v20, %s3770_s19  ;;  %vm8538_vm6 = vmmov %vm8531_vm14  ;;  %v2133_v63 = vsel %vm8540_vm1, %v6751_v48, 0.0  ;;  %vm8543_vm14 = vnez %v8542_v4  ;;  %vm8545_vm2 = vnez %v8544_v34  ;;  %v2066_v19 = vrot.slane %v6695_v35, 7  ;;  %v8557_v35 = vld [vmem:[#allocation73_spill] sm:$0xff]  ;;  %v3233_v1 = vld [vmem:[%s7477_s3 + $0x120] sm:$0xff] }
 0x2db   :  { %v6804_v33 = vsel %vm8538_vm6, %v2228_v21, %v2229_v44  ;;  %vm8541_vm4 = vmmov %vm8534_vm0  ;;  %v2091_v45 = vsel %vm8543_vm14, %v6799_v51, 0.0  ;;  %vm8550_vm1 = vcmp.lt.s32.totalorder %v5145_v40, 7  ;;  %vm8554_vm14 = vnez %v8553_v3  ;;  %v8570_v21 = vld [vmem:[#allocation20_spill] sm:$0xff]  ;;  %v8580_v34 = vld [vmem:[#allocation19_spill] sm:$0xff] }
 0x2dc   :  { %2454 = vst.msk [vmem:[#allocation2 + $0x128] sm:$0xff] %vm8541_vm4, %v2017_v50  ;;  %v2755_v2 = vsel %vm8545_vm2, %v6804_v33, 0.0  ;;  %2176 = vrot.lane.b32.xlu1 %v2133_v63, %s3769_s27  ;;  %vm8546_vm12 = vmmov %vm8534_vm0  ;;  %v2660_v55 = vsel %vm8550_vm1, %v2016_v39, 0.0  ;;  %vm8552_vm4 = vnez %v8551_v59  ;;  %v2067_v18 = vrot.slane %v6708_v5, 7  ;;  %v3251_v20 = vld [vmem:[%s7477_s3 + $0x1b0] sm:$0xff] }
 0x2dd   :  { %2107 = vst.msk [vmem:[#allocation2 + $0x18] sm:$0xff] %vm8534_vm0, %v2091_v45  ;;  %v2798_v57 = vld [vmem:[#allocation2 + $0xa0] sm:$0xff]  ;;  %vm8547_vm5 = vmmov %vm8538_vm6  ;;  %v2068_v29 = vrot.slane %v6751_v48, 7  ;;  %v2069_v36 = vrot.slane %v2016_v39, 7  ;;  %vm8561_vm1 = vcmp.lt.s32.totalorder %v8539_v22, 7  ;;  %v2070_v5 = vrot.slane %v2017_v50, 7 }
 0x2de   :  { %2771 = vst.msk [vmem:[#allocation2 + $0xe8] sm:$0xff] %vm8546_vm12, %v2755_v2  ;;  %v6823_v16 = vsel %vm8547_vm5, %v2230_v10, %v2231_v43  ;;  %vm8548_vm7 = vmmov %vm8547_vm5  ;;  %2702 = vrot.lane.b32.xlu0 %v2660_v55, %s3770_s19  ;;  %vm8558_vm5 = vcmp.ge.s32.totalorder %v8557_v35, 1  ;;  %v2661_v17 = vsel %vm8561_vm1, %v2017_v50, 0.0  ;;  %v2071_v38 = vrot.slane %v6682_v54, 7  ;;  %v3252_v22 = vld [vmem:[%s7477_s3 + $0x1b8] sm:$0xff]  ;;  %v2816_v63 = vld [vmem:[#allocation2 + $0x130] sm:$0xff] }
 0x2df   :  { %v6827_v25 = vsel %vm8548_vm7, %v2229_v44, %v2230_v10  ;;  %vm8549_vm6 = vmmov %vm8534_vm0  ;;  %v2801_v58 = vld [vmem:[#allocation2 + $0xb8] sm:$0xff]  ;;  %v2757_v43 = vsel %vm8554_vm14, %v6823_v16, 0.0  ;;  %v2134_v40 = vsel %vm8558_vm5, %v2016_v39, 0.0  ;;  %vm8559_vm7 = vcmp.lt.s32.totalorder %v3962_v9, 1  ;;  %v8577_v45 = vld [vmem:[#allocation16_spill] sm:$0xff] }
 0x2e0   :  { %3544 = vmatprep.mubr.msk.f32.mxu0 %vm8549_vm6, %v2798_v57  ;;  %v2756_v28 = vsel %vm8552_vm4, %v6827_v25, 0.0  ;;  %vm8555_vm2 = vmmov %vm8534_vm0  ;;  %2178 = vrot.lane.b32.xlu1 %v2134_v40, %s3769_s27  ;;  %v6850_v26 = vsel %vm8559_vm7, %v2066_v19, %v2067_v18  ;;  %vm8564_vm14 = vcmp.ge.s32.totalorder %v8563_v0, 1  ;;  %v6866_v41 = vpop.permute.xlu0 %2682  ;;  %vm8568_vm5 = vcmask 523520  }
 0x2e1   :  { %3545 = vmatmul.mubr.msk.f32.gmra.mrb[38].mxu0 %vm8555_vm2, %v2801_v58  ;;  %2772 = vst.msk [vmem:[#allocation2 + $0x100] sm:$0xff] %vm8534_vm0, %v2756_v28  ;;  %vm8556_vm12 = vmmov %vm8534_vm0  ;;  %v2804_v24 = vld [vmem:[#allocation2 + $0xd0] sm:$0xff]  ;;  %v2135_v42 = vsel %vm8564_vm14, %v2017_v50, 0.0  ;;  %v2157_v15 = vpop.permute.xlu1 %2156  ;;  %v2072_v7 = vrot.slane %v6686_v13, 7  ;;  %vm8571_vm1 = vcmp.ge.s32.totalorder %v8570_v21, 1  ;;  %v2100_v55 = vsel %vm5515_vm3, %v6850_v26, 0.0 }
 0x2e2   :  { %2773 = vst.msk [vmem:[#allocation2 + $0x118] sm:$0xff] %vm8556_vm12, %v2757_v43  ;;  %vm8560_vm6 = vmmov %vm8534_vm0  ;;  %2704 = vrot.lane.b32.xlu0 %v2661_v17, %s3770_s19  ;;  %v2136_v52 = vsel %vm8571_vm1, %v6682_v54, 0.0  ;;  %vm8579_vm1 = vcmask 523520   ;;  %v3602_v28 = vpack.c.bf16 %v3250_v12, %v3249_v56  ;;  %v3604_v3 = vpack.c.bf16 %v3234_v11, %v3233_v1  ;;  %v8603_v12 = vld [vmem:[#allocation53_spill] sm:$0xff]  ;;  %v3239_v58 = vld [vmem:[%s7477_s3 + $0x150] sm:$0xff] }
 0x2e3   :  { %3547 = vmatprep.mubr.msk.f32.mxu0 %vm8560_vm6, %v2804_v24  ;;  %vm8562_vm4 = vmmov %vm8559_vm7  ;;  %2203 = vst.msk [vmem:[#allocation2 + $0x18] sm:$0xff] %vm8568_vm5, %v2157_v15  ;;  %vm8569_vm7 = vcmp.lt.s32.totalorder %v8557_v35, 7  ;;  %vm8576_vm5 = vcmp.lt.s32.totalorder %v8563_v0, 7  ;;  %v3606_v40 = vpack.c.bf16 %v3252_v22, %v3251_v20  ;;  %v2819_v24 = vld [vmem:[#allocation2 + $0x148] sm:$0xff]  ;;  %v3253_v0 = vld [vmem:[%s7477_s3 + $0x1c0] sm:$0xff] }
 0x2e4   :  { %v6857_v49 = vsel %vm8562_vm4, %v2067_v18, %v2068_v29  ;;  %vm8565_vm2 = vmmov %vm8562_vm4  ;;  %2180 = vrot.lane.b32.xlu1 %v2135_v42, %s3769_s27  ;;  %v2662_v23 = vsel %vm8569_vm7, %v6682_v54, 0.0  ;;  %v6907_v44 = vpop.permute.xlu0 %2684  ;;  %v2663_v4 = vsel %vm8576_vm5, %v6686_v13, 0.0  ;;  %vm8578_vm7 = vcmp.ge.s32.totalorder %v8577_v45, 1  ;;  %v3235_v18 = vld [vmem:[%s7477_s3 + $0x130] sm:$0xff]  ;;  %v3254_v42 = vld [vmem:[%s7477_s3 + $0x1c8] sm:$0xff]  ;;  %3603 = vmatprep.subr.bf16.mxu1 %v3602_v28 }
 0x2e5   :  { %v6864_v32 = vsel %vm8565_vm2, %v2068_v29, %v2069_v36  ;;  %v2807_v14 = vld [vmem:[#allocation2 + $0xe8] sm:$0xff]  ;;  %vm8566_vm0 = vmmov %vm8565_vm2  ;;  %v2159_v10 = vpop.permute.xlu1 %2158  ;;  %v3236_v29 = vld [vmem:[%s7477_s3 + $0x138] sm:$0xff]  ;;  %3605 = vmatpush3.bf16.msra.mxu1 %v3604_v3  ;;  %v3610_v11 = vpack.c.bf16 %v3254_v42, %v3253_v0 }
 0x2e6   :  { %v6871_v48 = vsel %vm8566_vm0, %v2069_v36, %v2070_v5  ;;  %vm8567_vm12 = vmmov %vm8560_vm6  ;;  %2706 = vrot.lane.b32.xlu0 %v2662_v23, %s3770_s19  ;;  %v6918_v50 = vsel %vm8566_vm0, %v2072_v7, %v2073_v60  ;;  %v2137_v60 = vsel %vm8578_vm7, %v6686_v13, 0.0  ;;  %2204 = vst.msk [vmem:[#allocation2 + $0x30] sm:$0xff] %vm8579_vm1, %v2159_v10  ;;  %v2101_v13 = vsel %vm5577_vm13, %v6857_v49, 0.0  ;;  %v8596_v23 = vld [vmem:[#allocation98_spill] sm:$0xff]  ;;  %3607 = vmatprep.subr.bf16.mxu1 %v3606_v40  ;;  %v3255_v22 = vld [vmem:[%s7477_s3 + $0x1d0] sm:$0xff] }
 0x2e7   :  { %3548 = vmatmul.mubr.msk.f32.gmra.mrb[40].mxu0 %vm8567_vm12, %v2807_v14  ;;  %vm8572_vm4 = vmmov %vm8566_vm0  ;;  %v2102_v35 = vsel %vm5645_vm11, %v6864_v32, 0.0  ;;  %v2822_v14 = vld [vmem:[#allocation2 + $0x160] sm:$0xff]  ;;  %v3258_v28 = vld [vmem:[%s7477_s3 + $0x1e8] sm:$0xff] }
 0x2e8   :  { %v2810_v8 = vld [vmem:[#allocation2 + $0x100] sm:$0xff]  ;;  %v6892_v39 = vsel %vm8572_vm4, %v2065_v6, %v2066_v19  ;;  %vm8573_vm14 = vmmov %vm8566_vm0  ;;  %2182 = vrot.lane.b32.xlu1 %v2136_v52, %s3769_s27  ;;  %vm8581_vm4 = vnez %v8580_v34  ;;  %v6961_v36 = vpop.permute.xlu0 %2686  ;;  %v3608_v52 = vpack.c.bf16 %v3236_v29, %v3235_v18  ;;  %v8612_v43 = vld [vmem:[#allocation15_spill] sm:$0xff] }
 0x2e9   :  { %3550 = vmatprep.mubr.msk.f32.mxu0 %vm8560_vm6, %v2810_v8  ;;  %v6896_v37 = vsel %vm8573_vm14, %v2070_v5, %v2071_v38  ;;  %v2813_v54 = vld [vmem:[#allocation2 + $0x118] sm:$0xff]  ;;  %vm8574_vm2 = vmmov %vm8566_vm0  ;;  %v2090_v2 = vsel %vm8581_vm4, %v6918_v50, 0.0  ;;  %v2099_v19 = vsel %vm5457_vm15, %v6892_v39, 0.0  ;;  %v2103_v5 = vsel %vm5711_vm8, %v6871_v48, 0.0  ;;  %v2161_v15 = vpop.permute.xlu1 %2160  ;;  %v8614_v18 = vld [vmem:[#allocation63_spill] sm:$0xff] }
 0x2ea   :  { %v6912_v6 = vsel %vm8574_vm2, %v2071_v38, %v2072_v7  ;;  %vm8575_vm12 = vmmov %vm8560_vm6  ;;  %2708 = vrot.lane.b32.xlu0 %v2663_v4, %s3770_s19  ;;  %v8594_v38 = vld [vmem:[#allocation96_spill] sm:$0xff]  ;;  %vm8597_vm8 = vnez %v8596_v23  ;;  %v8607_v4 = vld [vmem:[#allocation51_spill] sm:$0xff]  ;;  %3609 = vmatpush3.bf16.msra.mxu1 %v3608_v52 }
 0x2eb   :  { %3551 = vmatmul.mubr.msk.f32.gmra.mrb[42].mxu0 %vm8575_vm12, %v2813_v54  ;;  %vm8585_vm14 = vmmov %vm8560_vm6  ;;  %vm8595_vm11 = vnez %v8594_v38  ;;  %v2105_v7 = vsel %vm8597_vm8, %v6912_v6, 0.0  ;;  %v3237_v54 = vld [vmem:[%s7477_s3 + $0x140] sm:$0xff]  ;;  %3611 = vmatprep.subr.bf16.mxu1 %v3610_v11  ;;  %v3259_v42 = vld [vmem:[%s7477_s3 + $0x1f0] sm:$0xff] }
 0x2ec   :  { %3553 = vmatprep.mubr.msk.f32.mxu0 %vm8560_vm6, %v2816_v63  ;;  %2106 = vst.msk [vmem:[#allocation2] sm:$0xff] %vm8585_vm14, %v2090_v2  ;;  %vm8586_vm2 = vmmov %vm8560_vm6  ;;  %2184 = vrot.lane.b32.xlu1 %v2137_v60, %s3769_s27  ;;  %v2104_v8 = vsel %vm8595_vm11, %v6896_v37, 0.0  ;;  %vm8600_vm6 = vcmp.lt.s32.totalorder %v8570_v21, 7  ;;  %vm8604_vm14 = vnez %v8603_v12  ;;  %v2825_v21 = vld [vmem:[#allocation2 + $0x178] sm:$0xff]  ;;  %v6999_v20 = vpop.permute.xlu0 %2688  ;;  %v8609_v2 = vld [vmem:[#allocation10_spill] sm:$0xff]  ;;  %vm8615_vm11 = vnez %v8614_v18 }
 0x2ed   :  { %2115 = vst.msk [vmem:[#allocation2 + $0xd8] sm:$0xff] %vm8586_vm2, %v2099_v19  ;;  %vm8587_vm0 = vmmov %vm8586_vm2  ;;  %v2664_v56 = vsel %vm8600_vm6, %v6680_v30, 0.0  ;;  %v2250_v1 = vsel %vm8604_vm14, %v6703_v31, 0.0  ;;  %v3238_v30 = vld [vmem:[%s7477_s3 + $0x148] sm:$0xff]  ;;  %v3256_v63 = vld [vmem:[%s7477_s3 + $0x1d8] sm:$0xff]  ;;  %v2163_v10 = vpop.permute.xlu1 %2162  ;;  %v2258_v29 = vsel %vm8615_vm11, %v6747_v53, 0.0 }
 0x2ee   :  { %2116 = vst.msk [vmem:[#allocation2 + $0xf0] sm:$0xff] %vm8587_vm0, %v2100_v55  ;;  %vm8588_vm12 = vmmov %vm8587_vm0  ;;  %2710 = vrot.lane.b32.xlu0 %v2664_v56, %s3770_s19  ;;  %v3612_v34 = vpack.c.bf16 %v3238_v30, %v3237_v54  ;;  %v3614_v19 = vpack.c.bf16 %v3256_v63, %v3255_v22  ;;  %v3240_v55 = vld [vmem:[%s7477_s3 + $0x158] sm:$0xff]  ;;  %v3241_v17 = vld [vmem:[%s7477_s3 + $0x160] sm:$0xff] }
 0x2ef   :  { %2117 = vst.msk [vmem:[#allocation2 + $0x108] sm:$0xff] %vm8588_vm12, %v2101_v13  ;;  %vm8590_vm3 = vmmov %vm8587_vm0  ;;  %vm8608_vm12 = vnez %v8607_v4  ;;  %v3257_v13 = vld [vmem:[%s7477_s3 + $0x1e0] sm:$0xff]  ;;  %v3616_v40 = vpack.c.bf16 %v3240_v55, %v3239_v58  ;;  %v8619_v23 = vld [vmem:[#allocation79_spill] sm:$0xff] }
 0x2f0   :  { %2118 = vst.msk [vmem:[#allocation2 + $0x120] sm:$0xff] %vm8590_vm3, %v2102_v35  ;;  %vm8592_vm15 = vmmov %vm8587_vm0  ;;  %2282 = vrot.lane.b32.xlu1 %v2250_v1, %s3771_s29  ;;  %v2465_v60 = vsel %vm8608_vm12, %v6747_v53, 0.0  ;;  %vm8610_vm3 = vnez %v8609_v2  ;;  %3613 = vmatpush3.bf16.msra.mxu1 %v3612_v34  ;;  %v3260_v53 = vld [vmem:[%s7477_s3 + $0x1f8] sm:$0xff]  ;;  %v3243_v52 = vld [vmem:[%s7477_s3 + $0x170] sm:$0xff] }
 0x2f1   :  { %3554 = vmatmul.mubr.msk.f32.gmra.mrb[44].mxu0 %vm8592_vm15, %v2819_v24  ;;  %vm8593_vm13 = vmmov %vm8587_vm0  ;;  %v2346_v57 = vsel %vm8610_vm3, %v6799_v51, 0.0  ;;  %v7023_v59 = vpop.permute.xlu0 %2690  ;;  %3615 = vmatprep.subr.bf16.mxu1 %v3614_v19  ;;  %v3618_v24 = vpack.c.bf16 %v3258_v28, %v3257_v13  ;;  %v3622_v56 = vpack.c.bf16 %v3260_v53, %v3259_v42  ;;  %v3244_v12 = vld [vmem:[%s7477_s3 + $0x178] sm:$0xff]  ;;  %v3261_v11 = vld [vmem:[%s7477_s3 + $0x200] sm:$0xff]  ;;  %vm8632_vm3 = vcmask 785920  }
 0x2f2   :  { %2119 = vst.msk [vmem:[#allocation2 + $0x138] sm:$0xff] %vm8593_vm13, %v2103_v5  ;;  %vm8598_vm5 = vmmov %vm8587_vm0  ;;  %2504 = vrot.lane.b32.xlu0 %v2465_v60, %s3769_s27  ;;  %vm8613_vm13 = vnez %v8612_v43  ;;  %v3242_v5 = vld [vmem:[%s7477_s3 + $0x168] sm:$0xff]  ;;  %v8622_v30 = vld [vmem:[#allocation80_spill] sm:$0xff]  ;;  %v3624_v22 = vpack.c.bf16 %v3244_v12, %v3243_v52 }
 0x2f3   :  { %3556 = vmatprep.mubr.msk.f32.mxu0 %vm8598_vm5, %v2822_v14  ;;  %vm8599_vm7 = vmmov %vm8579_vm1  ;;  %v2165_v3 = vpop.permute.xlu1 %2164  ;;  %v2561_v35 = vsel %vm8613_vm13, %v6892_v39, 0.0  ;;  %v8624_v63 = vld [vmem:[#allocation65_spill] sm:$0xff]  ;;  %v3245_v60 = vld [vmem:[%s7477_s3 + $0x180] sm:$0xff]  ;;  %vm8634_vm13 = vcmask 1048320  }
 0x2f4   :  { %2205 = vst.msk [vmem:[#allocation2 + $0x48] sm:$0xff] %vm8599_vm7, %v2161_v15  ;;  %vm8601_vm1 = vmmov %vm8587_vm0  ;;  %2378 = vrot.lane.b32.xlu1 %v2346_v57, %s3770_s19  ;;  %v8617_v15 = vld [vmem:[#allocation58_spill] sm:$0xff]  ;;  %3617 = vmatpush3.bf16.msra.mxu1 %v3616_v40  ;;  %v3246_v34 = vld [vmem:[%s7477_s3 + $0x188] sm:$0xff] }
 0x2f5   :  { %2120 = vst.msk [vmem:[#allocation2 + $0x150] sm:$0xff] %vm8601_vm1, %v2104_v8  ;;  %vm8602_vm4 = vmmov %vm8587_vm0  ;;  %v7046_v0 = vpop.permute.xlu0 %2692  ;;  %vm8618_vm5 = vnez %v8617_v15  ;;  %v3620_v8 = vpack.c.bf16 %v3242_v5, %v3241_v17  ;;  %3619 = vmatprep.subr.bf16.mxu1 %v3618_v24  ;;  %vm8623_vm1 = vnez %v8622_v30  ;;  %v3263_v57 = vld [vmem:[%s7477_s3 + $0x210] sm:$0xff]  ;;  %v8628_v58 = vld [vmem:[#allocation67_spill] sm:$0xff]  ;;  %v3628_v13 = vpack.c.bf16 %v3246_v34, %v3245_v60 }
 0x2f6   :  { %2121 = vst.msk [vmem:[#allocation2 + $0x168] sm:$0xff] %vm8602_vm4, %v2105_v7  ;;  %vm8605_vm2 = vmmov %vm8587_vm0  ;;  %2600 = vrot.lane.b32.xlu0 %v2561_v35, %s3771_s29  ;;  %v2466_v38 = vsel %vm8618_vm5, %v6760_v47, 0.0  ;;  %vm8625_vm4 = vnez %v8624_v63  ;;  %v8630_v28 = vld [vmem:[#allocation81_spill] sm:$0xff]  ;;  %v3247_v35 = vld [vmem:[%s7477_s3 + $0x190] sm:$0xff] }
 0x2f7   :  { %3557 = vmatmul.mubr.msk.f32.gmra.mrb[46].mxu0 %vm8605_vm2, %v2825_v21  ;;  %vm8606_vm0 = vmmov %vm8599_vm7  ;;  %v2167_v14 = vpop.permute.xlu1 %2166  ;;  %vm8620_vm7 = vnez %v8619_v23  ;;  %v2562_v21 = vsel %vm8623_vm1, %v6850_v26, 0.0  ;;  %vm8631_vm12 = vnez %v8630_v28  ;;  %v3248_v40 = vld [vmem:[%s7477_s3 + $0x198] sm:$0xff]  ;;  %v8637_v5 = vld [vmem:[#allocation87_spill] sm:$0xff] }
 0x2f8   :  { %2206 = vst.msk [vmem:[#allocation2 + $0x60] sm:$0xff] %vm8606_vm0, %v2163_v10  ;;  %vm8611_vm15 = vmmov %vm8606_vm0  ;;  %2298 = vrot.lane.b32.xlu1 %v2258_v29, %s3771_s29  ;;  %v2354_v7 = vsel %vm8620_vm7, %v6892_v39, 0.0  ;;  %v3262_v39 = vld [vmem:[%s7477_s3 + $0x208] sm:$0xff]  ;;  %3621 = vmatpush3.bf16.msra.mxu1 %v3620_v8  ;;  %v2259_v10 = vsel %vm8625_vm4, %v6760_v47, 0.0  ;;  %v3264_v47 = vld [vmem:[%s7477_s3 + $0x218] sm:$0xff]  ;;  %v3632_v17 = vpack.c.bf16 %v3248_v40, %v3247_v35 }
 0x2f9   :  { %2207 = vst.msk [vmem:[#allocation2 + $0x78] sm:$0xff] %vm8611_vm15, %v2165_v3  ;;  %vm8616_vm8 = vmmov %vm8606_vm0  ;;  %v7069_v1 = vpop.permute.xlu0 %2694  ;;  %3623 = vmatprep.subr.bf16.mxu1 %v3622_v56  ;;  %v3626_v4 = vpack.c.bf16 %v3262_v39, %v3261_v11  ;;  %v2355_v3 = vsel %vm8631_vm12, %v6850_v26, 0.0  ;;  %v3630_v43 = vpack.c.bf16 %v3264_v47, %v3263_v57  ;;  %v8635_v26 = vld [vmem:[#allocation56_spill] sm:$0xff]  ;;  %v8656_v30 = vld [vmem:[#allocation85_spill] sm:$0xff] }
 0x2fa   :  { %2208 = vst.msk [vmem:[#allocation2 + $0x90] sm:$0xff] %vm8616_vm8, %v2167_v14  ;;  %2506 = vrot.lane.b32.xlu0 %v2466_v38, %s3769_s27  ;;  %vm8621_vm6 = vmmov %vm8606_vm0  ;;  %vm8636_vm11 = vnez %v8635_v26  ;;  %vm8638_vm8 = vnez %v8637_v5  ;;  %v8643_v38 = vld [vmem:[#allocation64_spill] sm:$0xff]  ;;  %v8669_v57 = vld [vmem:[#allocation89_spill] sm:$0xff] }
 0x2fb   :  { %v2169_v54 = vpop.permute.xlu1 %2168  ;;  %vm8626_vm14 = vmmov %vm8606_vm0  ;;  %v2563_v24 = vsel %vm8636_vm11, %v6857_v49, 0.0  ;;  %v2260_v42 = vsel %vm8638_vm8, %v6781_v46, 0.0  ;;  %vm8644_vm1 = vnez %v8643_v38  ;;  %v8648_v56 = vld [vmem:[#allocation84_spill] sm:$0xff]  ;;  %vm8657_vm11 = vnez %v8656_v30  ;;  %v8682_v35 = vld [vmem:[#allocation9_spill] sm:$0xff] }
 0x2fc   :  { %2394 = vrot.lane.b32.xlu1 %v2354_v7, %s3770_s19  ;;  %2209 = vst.msk [vmem:[#allocation2 + $0xa8] sm:$0xff] %vm8621_vm6, %v2169_v54  ;;  %vm8627_vm2 = vmmov %vm8606_vm0  ;;  %vm8629_vm0 = vnez %v8628_v58  ;;  %3625 = vmatpush3.bf16.msra.mxu1 %v3624_v22  ;;  %v8661_v63 = vld [vmem:[#allocation88_spill] sm:$0xff] }
 0x2fd   :  { %v2467_v55 = vsel %vm8629_vm0, %v6781_v46, 0.0  ;;  %3627 = vmatprep.subr.bf16.mxu1 %v3626_v4  ;;  %vm8633_vm15 = vmmov %vm8632_vm3  ;;  %v2356_v46 = vsel %vm8644_vm1, %v6857_v49, 0.0  ;;  %vm8649_vm0 = vnez %v8648_v56  ;;  %v8650_v49 = vld [vmem:[#allocation91_spill] sm:$0xff]  ;;  %v8663_v4 = vld [vmem:[#allocation94_spill] sm:$0xff] }
 0x2fe   :  { %2602 = vrot.lane.b32.xlu0 %v2562_v21, %s3771_s29  ;;  %vm8639_vm5 = vmmov %vm8627_vm2  ;;  %v2564_v52 = vsel %vm8649_vm0, %v6864_v32, 0.0  ;;  %vm8651_vm12 = vnez %v8650_v49  ;;  %v2357_v21 = vsel %vm8657_vm11, %v6864_v32, 0.0  ;;  %vm8664_vm1 = vnez %v8663_v4  ;;  %v8674_v58 = vld [vmem:[#allocation92_spill] sm:$0xff] }
 0x2ff   :  { %v2491_v2 = vpop.permute.xlu0 %2490  ;;  %vm8640_vm7 = vmmov %vm8634_vm13  ;;  %v2261_v12 = vsel %vm8651_vm12, %v6804_v33, 0.0  ;;  %v2262_v32 = vsel %vm8664_vm1, %v6827_v25, 0.0  ;;  %vm8670_vm0 = vnez %v8669_v57  ;;  %v8706_v56 = vld [vmem:[#allocation8_spill] sm:$0xff] }
 0x300   :  { %2300 = vrot.lane.b32.xlu1 %v2259_v10, %s3771_s29  ;;  %2538 = vst.msk [vmem:[#allocation2 + $0x8] sm:$0xff] %vm8626_vm14, %v2491_v2  ;;  %3629 = vmatpush3.bf16.msra.mxu1 %v3628_v13  ;;  %vm8645_vm4 = vmmov %vm8632_vm3  ;;  %v2358_v47 = vsel %vm8670_vm0, %v6871_v48, 0.0  ;;  %v8676_v13 = vld [vmem:[#allocation97_spill] sm:$0xff] }
 0x301   :  { %v2171_v19 = vpop.permute.xlu1 %2170  ;;  %3631 = vmatprep.subr.bf16.mxu1 %v3630_v43  ;;  %vm8646_vm14 = vmmov %vm8640_vm7  ;;  %vm8677_vm11 = vnez %v8676_v13 }
 0x302   :  { %2210 = vst.msk [vmem:[#allocation2 + $0xc0] sm:$0xff] %vm8627_vm2, %v2171_v19  ;;  %2508 = vrot.lane.b32.xlu0 %v2467_v55, %s3769_s27  ;;  %vm8647_vm2 = vmmov %vm8632_vm3 }
 0x303   :  { %v2587_v18 = vpop.permute.xlu0 %2586  ;;  %vm8658_vm8 = vmmov %vm8647_vm2 }
 0x304   :  { %2396 = vrot.lane.b32.xlu1 %v2355_v3, %s3770_s19  ;;  %2634 = vst.msk [vmem:[#allocation2 + $0x8] sm:$0xff] %vm8632_vm3, %v2587_v18  ;;  %3633 = vmatpush3.bf16.msra.mxu1 %v3632_v17  ;;  %vm8652_vm3 = vmmov %vm8639_vm5 }
 0x305   :  { %v2285_v29 = vpop.permute.xlu1 %2284  ;;  %2730 = vst.msk [vmem:[#allocation2 + $0x8] sm:$0xff] %vm8634_vm13, %v6866_v41  ;;  %v8641_v41 = vld [vmem:[#allocation70_spill] sm:$0xff] }
 0x306   :  { %2331 = vst.msk [vmem:[#allocation2 + $0x18] sm:$0xff] %vm8633_vm15, %v2285_v29  ;;  %2604 = vrot.lane.b32.xlu0 %v2563_v24, %s3771_s29  ;;  %vm8642_vm6 = vnez %v8641_v41  ;;  %vm8653_vm15 = vmmov %vm8640_vm7  ;;  %v8687_v29 = vld [vmem:[#allocation95_spill] sm:$0xff] }
 0x307   :  { %v2493_v53 = vpop.permute.xlu0 %2492  ;;  %v2468_v15 = vsel %vm8642_vm6, %v6804_v33, 0.0  ;;  %vm8662_vm6 = vnez %v8661_v63 }
 0x308   :  { %2302 = vrot.lane.b32.xlu1 %v2260_v42, %s3771_s29  ;;  %2539 = vst.msk [vmem:[#allocation2 + $0x20] sm:$0xff] %vm8639_vm5, %v2493_v53  ;;  %vm8659_vm5 = vmmov %vm8640_vm7  ;;  %v2565_v10 = vsel %vm8662_vm6, %v6871_v48, 0.0  ;;  %v2263_v48 = vsel %vm8677_vm11, %v6823_v16, 0.0  ;;  %vm8683_vm6 = vnez %v8682_v35  ;;  %v8694_v53 = vld [vmem:[#allocation11_spill] sm:$0xff] }
 0x309   :  { %v2381_v14 = vpop.permute.xlu1 %2380  ;;  %v2359_v40 = vsel %vm8683_vm6, %v6896_v37, 0.0 }
 0x30a   :  { %2427 = vst.msk [vmem:[#allocation2 + $0x18] sm:$0xff] %vm8640_vm7, %v2381_v14  ;;  %2510 = vrot.lane.b32.xlu0 %v2468_v15, %s3769_s27  ;;  %vm8660_vm7 = vmmov %vm8647_vm2  ;;  %v8699_v15 = vld [vmem:[#allocation18_spill] sm:$0xff] }
 0x30b   :  { %v2589_v8 = vpop.permute.xlu0 %2588  ;;  %vm8671_vm12 = vmmov %vm8660_vm7 }
 0x30c   :  { %2398 = vrot.lane.b32.xlu1 %v2356_v46, %s3770_s19  ;;  %2635 = vst.msk [vmem:[#allocation2 + $0x20] sm:$0xff] %vm8645_vm4, %v2589_v8  ;;  %v2779_v7 = vld [vmem:[#allocation2 + $0x8] sm:$0xff]  ;;  %vm8665_vm4 = vmmov %vm8652_vm3 }
 0x30d   :  { %v2287_v23 = vpop.permute.xlu1 %2286  ;;  %2731 = vst.msk [vmem:[#allocation2 + $0x20] sm:$0xff] %vm8646_vm14, %v6907_v44  ;;  %2942 = vmatprep.mubr.f32.mxu1 %v2779_v7  ;;  %v8654_v44 = vld [vmem:[#allocation77_spill] sm:$0xff]  ;;  %vm8666_vm14 = vmmov %vm8659_vm5 }
 0x30e   :  { %2332 = vst.msk [vmem:[#allocation2 + $0x30] sm:$0xff] %vm8647_vm2, %v2287_v23  ;;  %2606 = vrot.lane.b32.xlu0 %v2564_v52, %s3771_s29  ;;  %vm8655_vm13 = vnez %v8654_v44  ;;  %vm8684_vm1 = vmmov %vm8671_vm12 }
 0x30f   :  { %v2495_v11 = vpop.permute.xlu0 %2494  ;;  %v2469_v54 = vsel %vm8655_vm13, %v6827_v25, 0.0  ;;  %vm8675_vm13 = vnez %v8674_v58  ;;  %vm8698_vm11 = vmmov %vm8684_vm1 }
 0x310   :  { %2304 = vrot.lane.b32.xlu1 %v2261_v12, %s3771_s29  ;;  %2540 = vst.msk [vmem:[#allocation2 + $0x38] sm:$0xff] %vm8652_vm3, %v2495_v11  ;;  %vm8672_vm3 = vmmov %vm8659_vm5  ;;  %v2566_v55 = vsel %vm8675_vm13, %v6896_v37, 0.0  ;;  %v2264_v37 = vsel %vm5876_vm10, %v6727_v27, 0.0  ;;  %v8710_v12 = vld [vmem:[#allocation13_spill] sm:$0xff] }
 0x311   :  { %v2383_v39 = vpop.permute.xlu1 %2382  ;;  %vm8696_vm10 = vmmov %vm8684_vm1 }
 0x312   :  { %2428 = vst.msk [vmem:[#allocation2 + $0x30] sm:$0xff] %vm8653_vm15, %v2383_v39  ;;  %2512 = vrot.lane.b32.xlu0 %v2469_v54, %s3769_s27  ;;  %vm8673_vm15 = vmmov %vm8660_vm7 }
 0x313   :  { %v2591_v22 = vpop.permute.xlu0 %2590 }
 0x314   :  { %2400 = vrot.lane.b32.xlu1 %v2357_v21, %s3770_s19  ;;  %2636 = vst.msk [vmem:[#allocation2 + $0x38] sm:$0xff] %vm8658_vm8, %v2591_v22  ;;  %vm8678_vm8 = vmmov %vm8665_vm4 }
 0x315   :  { %v2289_v33 = vpop.permute.xlu1 %2288  ;;  %2732 = vst.msk [vmem:[#allocation2 + $0x38] sm:$0xff] %vm8659_vm5, %v6961_v36  ;;  %v8667_v36 = vld [vmem:[#allocation76_spill] sm:$0xff]  ;;  %vm8679_vm5 = vmmov %vm8672_vm3 }
 0x316   :  { %2333 = vst.msk [vmem:[#allocation2 + $0x48] sm:$0xff] %vm8660_vm7, %v2289_v33  ;;  %2608 = vrot.lane.b32.xlu0 %v2565_v10, %s3771_s29  ;;  %vm8668_vm2 = vnez %v8667_v36  ;;  %vm8690_vm0 = vmmov %vm8678_vm8 }
 0x317   :  { %v2497_v60 = vpop.permute.xlu0 %2496  ;;  %v2470_v2 = vsel %vm8668_vm2, %v6823_v16, 0.0  ;;  %vm8688_vm2 = vnez %v8687_v29 }
 0x318   :  { %2306 = vrot.lane.b32.xlu1 %v2262_v32, %s3771_s29  ;;  %2541 = vst.msk [vmem:[#allocation2 + $0x50] sm:$0xff] %vm8665_vm4, %v2497_v60  ;;  %vm8685_vm4 = vmmov %vm8672_vm3  ;;  %v2567_v26 = vsel %vm8688_vm2, %v6912_v6, 0.0  ;;  %vm8711_vm2 = vnez %v8710_v12 }
 0x319   :  { %v2385_v34 = vpop.permute.xlu1 %2384  ;;  %vm8697_vm13 = vmmov %vm8685_vm4  ;;  %v2784_v24 = vld [vmem:[#allocation2 + $0x30] sm:$0xff] }
 0x31a   :  { %2429 = vst.msk [vmem:[#allocation2 + $0x48] sm:$0xff] %vm8666_vm14, %v2385_v34  ;;  %2514 = vrot.lane.b32.xlu0 %v2470_v2, %s3769_s27  ;;  %vm8686_vm14 = vmmov %vm8684_vm1 }
 0x31b   :  { %v2593_v19 = vpop.permute.xlu0 %2592 }
 0x31c   :  { %2402 = vrot.lane.b32.xlu1 %v2358_v47, %s3770_s19  ;;  %2637 = vst.msk [vmem:[#allocation2 + $0x50] sm:$0xff] %vm8671_vm12, %v2593_v19  ;;  %vm8691_vm12 = vmmov %vm8672_vm3 }
 0x31d   :  { %v2291_v25 = vpop.permute.xlu1 %2290  ;;  %2733 = vst.msk [vmem:[#allocation2 + $0x50] sm:$0xff] %vm8672_vm3, %v6999_v20  ;;  %v8680_v20 = vld [vmem:[#allocation14_spill] sm:$0xff] }
 0x31e   :  { %2334 = vst.msk [vmem:[#allocation2 + $0x60] sm:$0xff] %vm8673_vm15, %v2291_v25  ;;  %2610 = vrot.lane.b32.xlu0 %v2566_v55, %s3771_s29  ;;  %vm8681_vm7 = vnez %v8680_v20  ;;  %vm8695_vm15 = vnez %v8694_v53 }
 0x31f   :  { %v2499_v28 = vpop.permute.xlu0 %2498  ;;  %v2471_v43 = vsel %vm8681_vm7, %v6727_v27, 0.0  ;;  %v2360_v14 = vsel %vm8695_vm15, %v6912_v6, 0.0  ;;  %v2265_v6 = vsel %vm5925_vm9, %v6721_v62, 0.0  ;;  %vm8703_vm7 = vmmov %vm8685_vm4 }
 0x320   :  { %2308 = vrot.lane.b32.xlu1 %v2263_v48, %s3771_s29  ;;  %2542 = vst.msk [vmem:[#allocation2 + $0x68] sm:$0xff] %vm8678_vm8, %v2499_v28  ;;  %vm8700_vm8 = vnez %v8699_v15  ;;  %vm8708_vm9 = vmmov %vm8696_vm10 }
 0x321   :  { %v2387_v3 = vpop.permute.xlu1 %2386  ;;  %v2568_v38 = vsel %vm8700_vm8, %v6918_v50, 0.0 }
 0x322   :  { %2430 = vst.msk [vmem:[#allocation2 + $0x60] sm:$0xff] %vm8679_vm5, %v2387_v3  ;;  %2516 = vrot.lane.b32.xlu0 %v2471_v43, %s3769_s27  ;;  %vm8702_vm5 = vmmov %vm8690_vm0  ;;  %v2782_v43 = vld [vmem:[#allocation2 + $0x20] sm:$0xff] }
 0x323   :  { %v2595_v18 = vpop.permute.xlu0 %2594 }
 0x324   :  { %2404 = vrot.lane.b32.xlu1 %v2359_v40, %s3770_s19  ;;  %2638 = vst.msk [vmem:[#allocation2 + $0x68] sm:$0xff] %vm8684_vm1, %v2595_v18  ;;  %vm8707_vm1 = vnez %v8706_v56  ;;  %v2781_v18 = vld [vmem:[#allocation2 + $0x18] sm:$0xff] }
 0x325   :  { %v2293_v16 = vpop.permute.xlu1 %2292  ;;  %2734 = vst.msk [vmem:[#allocation2 + $0x68] sm:$0xff] %vm8685_vm4, %v7023_v59  ;;  %v8692_v59 = vld [vmem:[#allocation23_spill] sm:$0xff]  ;;  %v2361_v52 = vsel %vm8707_vm1, %v6918_v50, 0.0 }
 0x326   :  { %2335 = vst.msk [vmem:[#allocation2 + $0x78] sm:$0xff] %vm8686_vm14, %v2293_v16  ;;  %2612 = vrot.lane.b32.xlu0 %v2567_v26, %s3771_s29  ;;  %vm8693_vm3 = vnez %v8692_v59  ;;  %vm8709_vm14 = vmmov %vm8708_vm9  ;;  %v2785_v16 = vld [vmem:[#allocation2 + $0x38] sm:$0xff]  ;;  %v2787_v59 = vld [vmem:[#allocation2 + $0x48] sm:$0xff] }
 0x327   :  { %v2501_v17 = vpop.permute.xlu0 %2500  ;;  %v2472_v42 = vsel %vm8693_vm3, %v6721_v62, 0.0  ;;  %vm8714_vm3 = vmmov %vm8702_vm5 }
 0x328   :  { %2310 = vrot.lane.b32.xlu1 %v2264_v37, %s3771_s29  ;;  %2543 = vst.msk [vmem:[#allocation2 + $0x80] sm:$0xff] %vm8690_vm0, %v2501_v17  ;;  %vm8712_vm0 = vmmov %vm8685_vm4  ;;  %v2788_v37 = vld [vmem:[#allocation2 + $0x50] sm:$0xff] }
 0x329   :  { %v2389_v5 = vpop.permute.xlu1 %2388  ;;  %vm8715_vm15 = vmmov %vm8714_vm3 }
 0x32a   :  { %2431 = vst.msk [vmem:[#allocation2 + $0x78] sm:$0xff] %vm8691_vm12, %v2389_v5  ;;  %2518 = vrot.lane.b32.xlu0 %v2472_v42, %s3769_s27  ;;  %vm8713_vm12 = vcmp.lt.s32.totalorder %v8577_v45, 7  ;;  %vm8719_vm8 = vmmov %vm8714_vm3 }
 0x32b   :  { %v2597_v41 = vpop.permute.xlu0 %2596  ;;  %v2665_v50 = vsel %vm8713_vm12, %v6276_v61, 0.0  ;;  %vm8723_vm1 = vmmov %vm8714_vm3 }
 0x32c   :  { %2406 = vrot.lane.b32.xlu1 %v2360_v14, %s3770_s19  ;;  %2639 = vst.msk [vmem:[#allocation2 + $0x80] sm:$0xff] %vm8696_vm10, %v2597_v41  ;;  %vm8716_vm10 = vmmov %vm8714_vm3  ;;  %v2791_v42 = vld [vmem:[#allocation2 + $0x68] sm:$0xff]  ;;  %v2790_v41 = vld [vmem:[#allocation2 + $0x60] sm:$0xff] }
 0x32d   :  { %v2295_v27 = vpop.permute.xlu1 %2294  ;;  %2735 = vst.msk [vmem:[#allocation2 + $0x80] sm:$0xff] %vm8697_vm13, %v7046_v0  ;;  %v8704_v0 = vld [vmem:[#allocation21_spill] sm:$0xff]  ;;  %vm8717_vm13 = vmmov %vm8714_vm3 }
 0x32e   :  { %2336 = vst.msk [vmem:[#allocation2 + $0x90] sm:$0xff] %vm8698_vm11, %v2295_v27  ;;  %2614 = vrot.lane.b32.xlu0 %v2568_v38, %s3771_s29  ;;  %vm8705_vm6 = vnez %v8704_v0  ;;  %vm8718_vm11 = vmmov %vm8714_vm3 }
 0x32f   :  { %v2503_v8 = vpop.permute.xlu0 %2502  ;;  %v2473_v7 = vsel %vm8705_vm6, %v6703_v31, 0.0  ;;  %v2569_v31 = vsel %vm8711_vm2, %v6799_v51, 0.0  ;;  %vm8722_vm6 = vmmov %vm8708_vm9 }
 0x330   :  { %2312 = vrot.lane.b32.xlu1 %v2265_v6, %s3771_s29  ;;  %2544 = vst.msk [vmem:[#allocation2 + $0x98] sm:$0xff] %vm8702_vm5, %v2503_v8  ;;  %vm8720_vm5 = vmmov %vm8714_vm3 }
 0x331   :  { %v2391_v23 = vpop.permute.xlu1 %2390  ;;  %v2793_v46 = vld [vmem:[#allocation2 + $0x78] sm:$0xff] }
 0x332   :  { %2432 = vst.msk [vmem:[#allocation2 + $0x90] sm:$0xff] %vm8703_vm7, %v2391_v23  ;;  %2520 = vrot.lane.b32.xlu0 %v2473_v7, %s3769_s27  ;;  %vm8721_vm7 = vmmov %vm8714_vm3 }
 0x333   :  { %v2599_v49 = vpop.permute.xlu0 %2598 }
 0x334   :  { %2408 = vrot.lane.b32.xlu1 %v2361_v52, %s3770_s19  ;;  %2640 = vst.msk [vmem:[#allocation2 + $0x98] sm:$0xff] %vm8708_vm9, %v2599_v49  ;;  %vm8724_vm9 = vmmov %vm8712_vm0  ;;  %v2794_v27 = vld [vmem:[#allocation2 + $0x80] sm:$0xff] }
 0x335   :  { %v2297_v62 = vpop.permute.xlu1 %2296  ;;  %2736 = vst.msk [vmem:[#allocation2 + $0x98] sm:$0xff] %vm8685_vm4, %v7069_v1  ;;  %vm8725_vm4 = vmmov %vm8722_vm6 }
 0x336   :  { %2337 = vst.msk [vmem:[#allocation2 + $0xa8] sm:$0xff] %vm8709_vm14, %v2297_v62  ;;  %2616 = vrot.lane.b32.xlu0 %v2569_v31, %s3771_s29  ;;  %vm8726_vm14 = vmmov %vm8712_vm0  ;;  %s3775_s29 = smov [#allocation3]  }
 0x337   :  { %vm8727_vm2 = vmmov %vm8725_vm4 }
 0x338   :  { %vm8729_vm12 = vmmov %vm8724_vm9 }
 0x339   :  { %v2393_v11 = vpop.permute.xlu1 %2392  ;;  %v2796_v0 = vld [vmem:[#allocation2 + $0x90] sm:$0xff] }
 0x33a   :  { %2433 = vst.msk [vmem:[#allocation2 + $0xa8] sm:$0xff] %vm8712_vm0, %v2393_v11  ;;  %2712 = vrot.lane.b32.xlu0 %v2665_v50, %s3770_s19  ;;  %vm8728_vm0 = vmmov %vm8723_vm1 }
 0x33c   :  { %v2797_v6 = vld [vmem:[#allocation2 + $0x98] sm:$0xff] }
 0x340   :  { %v2155_v39 = vpop.permute.xlu1 %2154 }
 0x341   :  { %2202 = vst.msk [vmem:[#allocation2] sm:$0xff] %vm8714_vm3, %v2155_v39  ;;  %vm8730_vm3 = vmmov %vm8727_vm2  ;;  %v2799_v49 = vld [vmem:[#allocation2 + $0xa8] sm:$0xff] }
 0x343   :  { %v2697_v1 = vpop.permute.xlu0 %2696 }
 0x345   :  { %v2173_v44 = vpop.permute.xlu1 %2172 }
 0x346   :  { %2211 = vst.msk [vmem:[#allocation2 + $0xd8] sm:$0xff] %vm8715_vm15, %v2173_v44  ;;  %vm8731_vm15 = vmmov %vm8724_vm9 }
 0x348   :  { %v2699_v54 = vpop.permute.xlu0 %2698 }
 0x34a   :  { %v2175_v51 = vpop.permute.xlu1 %2174 }
 0x34b   :  { %2212 = vst.msk [vmem:[#allocation2 + $0xf0] sm:$0xff] %vm8716_vm10, %v2175_v51  ;;  %vm8732_vm10 = vmmov %vm8727_vm2 }
 0x34c   :  { %v2701_v30 = vpop.permute.xlu0 %2700 }
 0x34e   :  { %v2177_v21 = vpop.permute.xlu1 %2176 }
 0x34f   :  { %2213 = vst.msk [vmem:[#allocation2 + $0x108] sm:$0xff] %vm8717_vm13, %v2177_v21  ;;  %vm8733_vm13 = vmmov %vm8728_vm0 }
 0x350   :  { %v7264_v22 = vpop.permute.xlu0 %2702 }
 0x352   :  { %v2179_v61 = vpop.permute.xlu1 %2178 }
 0x353   :  { %2214 = vst.msk [vmem:[#allocation2 + $0x120] sm:$0xff] %vm8718_vm11, %v2179_v61  ;;  %vm8734_vm11 = vmmov %vm8724_vm9 }
 0x354   :  { %v7267_v45 = vpop.permute.xlu0 %2704 }
 0x356   :  { %v2181_v33 = vpop.permute.xlu1 %2180  ;;  %v7269_v63 = vpop.f32.mrb[32].mxu0 }
 0x357   :  { %2215 = vst.msk [vmem:[#allocation2 + $0x138] sm:$0xff] %vm8719_vm8, %v2181_v33  ;;  %v7272_v10 = vpop.f32.mrb[33].mxu0  ;;  %vm8735_vm8 = vmmov %vm8727_vm2 }
 0x358   :  { %v7274_v4 = vpop.permute.xlu0 %2706 }
 0x35a   :  { %v2183_v32 = vpop.permute.xlu1 %2182 }
 0x35b   :  { %v7276_v60 = vpop.f32.mrb[34].mxu0  ;;  %2216 = vst.msk [vmem:[#allocation2 + $0x150] sm:$0xff] %vm8720_vm5, %v2183_v32  ;;  %vm8736_vm5 = vmmov %vm8724_vm9 }
 0x35c   :  { %v7279_v34 = vpop.f32.mrb[35].mxu0  ;;  %v7281_v36 = vpop.permute.xlu0 %2708 }
 0x35e   :  { %v2185_v2 = vpop.permute.xlu1 %2184 }
 0x35f   :  { %v7283_v57 = vpop.f32.mrb[36].mxu0  ;;  %2217 = vst.msk [vmem:[#allocation2 + $0x168] sm:$0xff] %vm8721_vm7, %v2185_v2  ;;  %vm8737_vm7 = vmmov %vm8727_vm2 }
 0x360   :  { %v7286_v47 = vpop.f32.mrb[37].mxu0  ;;  %v7288_v19 = vpop.permute.xlu0 %2710 }
 0x362   :  { %v2283_v25 = vpop.permute.xlu1 %2282 }
 0x363   :  { %2330 = vst.msk [vmem:[#allocation2] sm:$0xff] %vm8722_vm6, %v2283_v25  ;;  %vm8738_vm6 = vmmov %vm8728_vm0 }
 0x364   :  { %v2505_v58 = vpop.permute.xlu0 %2504 }
 0x365   :  { %2545 = vst.msk [vmem:[#allocation2 + $0xb0] sm:$0xff] %vm8723_vm1, %v2505_v58  ;;  %vm8739_vm1 = vmmov %vm8736_vm5 }
 0x366   :  { %v2379_v55 = vpop.permute.xlu1 %2378 }
 0x367   :  { %2426 = vst.msk [vmem:[#allocation2] sm:$0xff] %vm8724_vm9, %v2379_v55  ;;  %vm8740_vm9 = vmmov %vm8727_vm2 }
 0x368   :  { %v2601_v13 = vpop.permute.xlu0 %2600 }
 0x369   :  { %2641 = vst.msk [vmem:[#allocation2 + $0xb0] sm:$0xff] %vm8725_vm4, %v2601_v13  ;;  %vm8741_vm4 = vmmov %vm8739_vm1 }
 0x36a   :  { %v2299_v48 = vpop.permute.xlu1 %2298  ;;  %2737 = vst.msk [vmem:[#allocation2 + $0xb0] sm:$0xff] %vm8726_vm14, %v2697_v1  ;;  %vm8742_vm14 = vmmov %vm8727_vm2 }
 0x36b   :  { %2338 = vst.msk [vmem:[#allocation2 + $0xc0] sm:$0xff] %vm8727_vm2, %v2299_v48  ;;  %vm8743_vm2 = vmmov %vm8728_vm0 }
 0x36c   :  { %v2507_v28 = vpop.permute.xlu0 %2506 }
 0x36d   :  { %2546 = vst.msk [vmem:[#allocation2 + $0xc8] sm:$0xff] %vm8728_vm0, %v2507_v28  ;;  %vm8744_vm0 = vmmov %vm8739_vm1 }
 0x36e   :  { %v2395_v3 = vpop.permute.xlu1 %2394  ;;  %v2778_v20 = vld [vmem:[#allocation2] sm:$0xff] }
 0x36f   :  { %2434 = vst.msk [vmem:[#allocation2 + $0xc0] sm:$0xff] %vm8729_vm12, %v2395_v3  ;;  %2943 = vmatmul.mubr.f32.vlgmr.msra.gmra.mrb[18].mxu1 %v2778_v20  ;;  %vm8745_vm12 = vmmov %vm8730_vm3 }
 0x370   :  { %2947 = vmatprep.mubr.f32.mxu1 %v2782_v43  ;;  %v2603_v35 = vpop.permute.xlu0 %2602 }
 0x371   :  { %2642 = vst.msk [vmem:[#allocation2 + $0xc8] sm:$0xff] %vm8730_vm3, %v2603_v35  ;;  %v2800_v7 = vld [vmem:[#allocation2 + $0xb0] sm:$0xff]  ;;  %vm8746_vm3 = vmmov %vm8744_vm0 }
 0x372   :  { %v2301_v40 = vpop.permute.xlu1 %2300  ;;  %2738 = vst.msk [vmem:[#allocation2 + $0xc8] sm:$0xff] %vm8731_vm15, %v2699_v54  ;;  %vm8747_vm15 = vmmov %vm8737_vm7 }
 0x373   :  { %2339 = vst.msk [vmem:[#allocation2 + $0xd8] sm:$0xff] %vm8732_vm10, %v2301_v40  ;;  %2948 = vmatmul.mubr.f32.gmra.mrb[20].mxu1 %v2781_v18  ;;  %vm8748_vm10 = vmmov %vm8743_vm2 }
 0x374   :  { %2952 = vmatprep.mubr.f32.mxu1 %v2785_v16  ;;  %v2509_v29 = vpop.permute.xlu0 %2508 }
 0x375   :  { %2547 = vst.msk [vmem:[#allocation2 + $0xe0] sm:$0xff] %vm8733_vm13, %v2509_v29  ;;  %vm8749_vm13 = vmmov %vm8744_vm0 }
 0x376   :  { %v2397_v26 = vpop.permute.xlu1 %2396  ;;  %v2802_v11 = vld [vmem:[#allocation2 + $0xc0] sm:$0xff] }
 0x377   :  { %2435 = vst.msk [vmem:[#allocation2 + $0xd8] sm:$0xff] %vm8734_vm11, %v2397_v26  ;;  %2953 = vmatmul.mubr.f32.gmra.mrb[22].mxu1 %v2784_v24  ;;  %vm8750_vm11 = vmmov %vm8737_vm7 }
 0x378   :  { %2957 = vmatprep.mubr.f32.mxu1 %v2788_v37  ;;  %v2605_v17 = vpop.permute.xlu0 %2604 }
 0x379   :  { %2643 = vst.msk [vmem:[#allocation2 + $0xe0] sm:$0xff] %vm8735_vm8, %v2605_v17  ;;  %v2803_v62 = vld [vmem:[#allocation2 + $0xc8] sm:$0xff]  ;;  %vm8751_vm8 = vmmov %vm8744_vm0 }
 0x37a   :  { %v2303_v5 = vpop.permute.xlu1 %2302  ;;  %2739 = vst.msk [vmem:[#allocation2 + $0xe0] sm:$0xff] %vm8736_vm5, %v2701_v30  ;;  %vm8752_vm5 = vmmov %vm8737_vm7 }
 0x37b   :  { %2340 = vst.msk [vmem:[#allocation2 + $0xf0] sm:$0xff] %vm8737_vm7, %v2303_v5  ;;  %2958 = vmatmul.mubr.f32.gmra.mrb[24].mxu1 %v2787_v59  ;;  %vm8753_vm7 = vmmov %vm8743_vm2 }
 0x37c   :  { %2962 = vmatprep.mubr.f32.mxu1 %v2791_v42  ;;  %v2511_v53 = vpop.permute.xlu0 %2510 }
 0x37d   :  { %2548 = vst.msk [vmem:[#allocation2 + $0xf8] sm:$0xff] %vm8738_vm6, %v2511_v53  ;;  %vm8754_vm6 = vmmov %vm8744_vm0  ;;  %v2828_v53 = vsub.s32 6, %v3962_v9  ;;  %v3729_v9 = vld [vmem:[%s7474_s0] sm:$0xff] }
 0x37e   :  { %v2399_v14 = vpop.permute.xlu1 %2398  ;;  %v2805_v44 = vld [vmem:[#allocation2 + $0xd8] sm:$0xff] }
 0x37f   :  { %2436 = vst.msk [vmem:[#allocation2 + $0xf0] sm:$0xff] %vm8739_vm1, %v2399_v14  ;;  %2963 = vmatmul.mubr.f32.gmra.mrb[26].mxu1 %v2790_v41  ;;  %vm8755_vm1 = vmmov %vm8752_vm5  ;;  %v3728_v41 = vld [vmem:[%s7476_s2] sm:$0xff]  ;;  %s3205_s2 = sshll.u32 %s3775_s29, 4  ;;  %s3206_s2 = int_to_ptr.vmem [resolvable:$true] %s3205_s2 }
 0x380   :  { %2967 = vmatprep.mubr.f32.mxu1 %v2794_v27  ;;  %v2607_v15 = vpop.permute.xlu0 %2606  ;;  %v7364_v27 = vrot.slane %v3728_v41, %v2828_v53  ;;  %v3735_v53 = vld [vmem:[%s7474_s0 + $0x30] sm:$0xff]  ;;  %s3745_s22 = scalar_lea.vmem %s3206_s2, 2048  ;;  %p3750_p1 = scmp.lt.s32.totalorder %s3206_s2, %s3206_s2 }
 0x381   :  { %2644 = vst.msk [vmem:[#allocation2 + $0xf8] sm:$0xff] %vm8740_vm9, %v2607_v15  ;;  %v2806_v50 = vld [vmem:[#allocation2 + $0xe0] sm:$0xff]  ;;  %vm8756_vm9 = vmmov %vm8744_vm0  ;;  %p3746_p0 = scmp.ne.s32.totalorder %s3206_s2, %s3745_s22  ;;  %p3751_p2 = scmp.lt.s32.totalorder %s3745_s22, %s3745_s22 }
 0x382   :  { %v2305_v38 = vpop.permute.xlu1 %2304  ;;  %2740 = vst.msk [vmem:[#allocation2 + $0xf8] sm:$0xff] %vm8741_vm4, %v7264_v22  ;;  %vm8757_vm4 = vmmov %vm8755_vm1 }
 0x383   :  { %2341 = vst.msk [vmem:[#allocation2 + $0x108] sm:$0xff] %vm8742_vm14, %v2305_v38  ;;  %2968 = vmatmul.mubr.f32.gmra.mrb[28].mxu1 %v2793_v46  ;;  %vm8758_vm14 = vmmov %vm8743_vm2  ;;  %p3752_p3 = por %p3751_p2, %p3750_p1 }
 0x384   :  { %2972 = vmatprep.mubr.f32.mxu1 %v2797_v6  ;;  %v2513_v8 = vpop.permute.xlu0 %2512 }
 0x385   :  { %2549 = vst.msk [vmem:[#allocation2 + $0x110] sm:$0xff] %vm8743_vm2, %v2513_v8  ;;  %vm8759_vm2 = vmmov %vm8744_vm0  ;;  %p3753_p4 = pnand %p3752_p3, %p3746_p0 }
 0x386   :  { %v2401_v23 = vpop.permute.xlu1 %2400  ;;  %v2808_v21 = vld [vmem:[#allocation2 + $0xf0] sm:$0xff] }
 0x387   :  { %2437 = vst.msk [vmem:[#allocation2 + $0x108] sm:$0xff] %vm8744_vm0, %v2401_v23  ;;  %2973 = vmatmul.mubr.f32.gmra.mrb[30].mxu1 %v2796_v0  ;;  %vm8760_vm0 = vmmov %vm8755_vm1 }
 0x388   :  { %2977 = vmatprep.mubr.f32.mxu1 %v2800_v7  ;;  %v2609_v56 = vpop.permute.xlu0 %2608 }
 0x389   :  { %2645 = vst.msk [vmem:[#allocation2 + $0x110] sm:$0xff] %vm8745_vm12, %v2609_v56  ;;  %v2809_v54 = vld [vmem:[#allocation2 + $0xf8] sm:$0xff]  ;;  %vm8761_vm12 = vmmov %vm8759_vm2 }
 0x38a   :  { %v2307_v52 = vpop.permute.xlu1 %2306  ;;  %2741 = vst.msk [vmem:[#allocation2 + $0x110] sm:$0xff] %vm8746_vm3, %v7267_v45  ;;  %vm8762_vm3 = vmmov %vm8760_vm0 }
 0x38b   :  { %2342 = vst.msk [vmem:[#allocation2 + $0x120] sm:$0xff] %vm8747_vm15, %v2307_v52  ;;  %2978 = vmatmul.mubr.f32.gmra.mrb[32].mxu1 %v2799_v49  ;;  %vm8763_vm15 = vmmov %vm8753_vm7 }
 0x38c   :  { %2982 = vmatprep.mubr.f32.mxu1 %v2803_v62  ;;  %v2515_v12 = vpop.permute.xlu0 %2514 }
 0x38d   :  { %2550 = vst.msk [vmem:[#allocation2 + $0x128] sm:$0xff] %vm8748_vm10, %v2515_v12  ;;  %vm8764_vm10 = vmmov %vm8759_vm2 }
 0x38e   :  { %v2403_v31 = vpop.permute.xlu1 %2402  ;;  %v2811_v33 = vld [vmem:[#allocation2 + $0x108] sm:$0xff] }
 0x38f   :  { %2438 = vst.msk [vmem:[#allocation2 + $0x120] sm:$0xff] %vm8749_vm13, %v2403_v31  ;;  %2983 = vmatmul.mubr.f32.gmra.mrb[34].mxu1 %v2802_v11  ;;  %vm8765_vm13 = vmmov %vm8760_vm0  ;;  %v3730_v31 = vld [vmem:[%s7474_s0 + $0x8] sm:$0xff] }
 0x390   :  { %2987 = vmatprep.mubr.f32.mxu1 %v2806_v50  ;;  %v2611_v39 = vpop.permute.xlu0 %2610 }
 0x391   :  { %2646 = vst.msk [vmem:[#allocation2 + $0x128] sm:$0xff] %vm8750_vm11, %v2611_v39  ;;  %v2812_v22 = vld [vmem:[#allocation2 + $0x110] sm:$0xff]  ;;  %vm8766_vm11 = vmmov %vm8759_vm2 }
 0x392   :  { %v2309_v1 = vpop.permute.xlu1 %2308  ;;  %2742 = vst.msk [vmem:[#allocation2 + $0x128] sm:$0xff] %vm8751_vm8, %v7274_v4  ;;  %vm8767_vm8 = vcmask 261120  }
 0x393   :  { %2343 = vst.msk [vmem:[#allocation2 + $0x138] sm:$0xff] %vm8752_vm5, %v2309_v1  ;;  %2988 = vmatmul.mubr.f32.gmra.mrb[36].mxu1 %v2805_v44  ;;  %vm8768_vm5 = vmmov %vm8767_vm8 }
 0x394   :  { %2992 = vmatprep.mubr.f32.mxu1 %v2809_v54  ;;  %v2517_v51 = vpop.permute.xlu0 %2516  ;;  %v3731_v54 = vld [vmem:[%s7474_s0 + $0x10] sm:$0xff] }
 0x395   :  { %2551 = vst.msk [vmem:[#allocation2 + $0x140] sm:$0xff] %vm8753_vm7, %v2517_v51  ;;  %vm8769_vm7 = vmmov %vm8768_vm5 }
 0x396   :  { %v2405_v30 = vpop.permute.xlu1 %2404  ;;  %v2814_v25 = vld [vmem:[#allocation2 + $0x120] sm:$0xff] }
 0x397   :  { %2439 = vst.msk [vmem:[#allocation2 + $0x138] sm:$0xff] %vm8754_vm6, %v2405_v30  ;;  %2993 = vmatmul.mubr.f32.gmra.mrb[38].mxu1 %v2808_v21  ;;  %vm8770_vm6 = vmmov %vm8768_vm5 }
 0x398   :  { %2997 = vmatprep.mubr.f32.mxu1 %v2812_v22  ;;  %v2613_v61 = vpop.permute.xlu0 %2612 }
 0x399   :  { %2647 = vst.msk [vmem:[#allocation2 + $0x140] sm:$0xff] %vm8755_vm1, %v2613_v61  ;;  %v2815_v4 = vld [vmem:[#allocation2 + $0x128] sm:$0xff]  ;;  %vm8771_vm1 = vmmov %vm8768_vm5 }
 0x39a   :  { %v2311_v45 = vpop.permute.xlu1 %2310  ;;  %2743 = vst.msk [vmem:[#allocation2 + $0x140] sm:$0xff] %vm8756_vm9, %v7281_v36  ;;  %vm8772_vm9 = vmmov %vm8771_vm1 }
 0x39b   :  { %2344 = vst.msk [vmem:[#allocation2 + $0x150] sm:$0xff] %vm8757_vm4, %v2311_v45  ;;  %2998 = vmatmul.mubr.f32.gmra.mrb[40].mxu1 %v2811_v33  ;;  %v3732_v45 = vld [vmem:[%s7474_s0 + $0x18] sm:$0xff]  ;;  %vm8773_vm4 = vmmov %vm8771_vm1 }
 0x39c   :  { %3002 = vmatprep.mubr.f32.mxu1 %v2815_v4  ;;  %v2519_v32 = vpop.permute.xlu0 %2518 }
 0x39d   :  { %2552 = vst.msk [vmem:[#allocation2 + $0x158] sm:$0xff] %vm8758_vm14, %v2519_v32  ;;  %vm8774_vm14 = vmmov %vm8771_vm1 }
 0x39e   :  { %v2407_v2 = vpop.permute.xlu1 %2406  ;;  %v2817_v36 = vld [vmem:[#allocation2 + $0x138] sm:$0xff] }
 0x39f   :  { %2440 = vst.msk [vmem:[#allocation2 + $0x150] sm:$0xff] %vm8759_vm2, %v2407_v2  ;;  %3003 = vmatmul.mubr.f32.gmra.mrb[42].mxu1 %v2814_v25  ;;  %vm8775_vm2 = vmmov %vm8771_vm1 }
 0x3a0   :  { %v2615_v58 = vpop.permute.xlu0 %2614 }
 0x3a1   :  { %2648 = vst.msk [vmem:[#allocation2 + $0x158] sm:$0xff] %vm8760_vm0, %v2615_v58  ;;  %v2818_v55 = vld [vmem:[#allocation2 + $0x140] sm:$0xff]  ;;  %vm8776_vm0 = vmmov %vm8771_vm1 }
 0x3a2   :  { %v2313_v13 = vpop.permute.xlu1 %2312  ;;  %2744 = vst.msk [vmem:[#allocation2 + $0x158] sm:$0xff] %vm8761_vm12, %v7288_v19  ;;  %3007 = vmatprep.mubr.f32.mxu1 %v2818_v55  ;;  %v3733_v58 = vld [vmem:[%s7474_s0 + $0x20] sm:$0xff]  ;;  %vm8777_vm12 = vmmov %vm8776_vm0 }
 0x3a3   :  { %2345 = vst.msk [vmem:[#allocation2 + $0x168] sm:$0xff] %vm8762_vm3, %v2313_v13  ;;  %3008 = vmatmul.mubr.f32.gmra.mrb[44].mxu1 %v2817_v36  ;;  %vm8778_vm3 = vmmov %vm8776_vm0 }
 0x3a4   :  { %v2521_v48 = vpop.permute.xlu0 %2520 }
 0x3a5   :  { %2553 = vst.msk [vmem:[#allocation2 + $0x170] sm:$0xff] %vm8763_vm15, %v2521_v48  ;;  %vm8779_vm15 = vmmov %vm8776_vm0 }
 0x3a6   :  { %v2409_v28 = vpop.permute.xlu1 %2408  ;;  %v2820_v43 = vld [vmem:[#allocation2 + $0x150] sm:$0xff] }
 0x3a7   :  { %2441 = vst.msk [vmem:[#allocation2 + $0x168] sm:$0xff] %vm8764_vm10, %v2409_v28  ;;  %vm8780_vm10 = vmmov %vm8776_vm0 }
 0x3a8   :  { %v2617_v3 = vpop.permute.xlu0 %2616 }
 0x3a9   :  { %2649 = vst.msk [vmem:[#allocation2 + $0x170] sm:$0xff] %vm8765_vm13, %v2617_v3  ;;  %v2821_v20 = vld [vmem:[#allocation2 + $0x158] sm:$0xff]  ;;  %v3734_v3 = vld [vmem:[%s7474_s0 + $0x28] sm:$0xff]  ;;  %vm8781_vm13 = vmmov %vm8776_vm0 }
 0x3aa   :  { %3012 = vmatprep.mubr.f32.mxu1 %v2821_v20 }
 0x3ab   :  { %3013 = vmatmul.mubr.f32.gmra.mrb[46].mxu1 %v2820_v43 }
 0x3ac   :  { %v2713_v35 = vpop.permute.xlu0 %2712 }
 0x3ad   :  { %2745 = vst.msk [vmem:[#allocation2 + $0x170] sm:$0xff] %vm8766_vm11, %v2713_v35  ;;  %vm8782_vm11 = vmmov %vm8776_vm0 }
 0x3ae   :  { %v2823_v16 = vld [vmem:[#allocation2 + $0x168] sm:$0xff] }
 0x3b4   :  { %v7340_v19 = vpop.f32.mrb[38].mxu0  ;;  %v2824_v18 = vld [vmem:[#allocation2 + $0x170] sm:$0xff] }
 0x3b5   :  { %v7342_v40 = vpop.f32.mrb[39].mxu0  ;;  %3017 = vmatprep.mubr.f32.mxu1 %v2824_v18 }
 0x3b6   :  { %3018 = vmatmul.mubr.f32.gmra.mrb[48].mxu1 %v2823_v16 }
 0x3ba   :  { %v7344_v29 = vpop.f32.mrb[40].mxu0 }
 0x3bb   :  { %v7346_v26 = vpop.f32.mrb[41].mxu0 }
 0x3be   :  { %v7348_v24 = vpop.f32.mrb[42].mxu0 }
 0x3bf   :  { %v7350_v37 = vpop.f32.mrb[43].mxu0 }
 0x3c4   :  { %v7352_v17 = vpop.f32.mrb[44].mxu0 }
 0x3c5   :  { %v7354_v5 = vpop.f32.mrb[45].mxu0 }
 0x3ca   :  { %v7356_v59 = vpop.f32.mrb[46].mxu0 }
 0x3cb   :  { %v7358_v42 = vpop.f32.mrb[47].mxu0 }
 0x442   :  { %v3420_v14 = vpop.f32.mrb[18].mxu1 }
 0x443   :  { %v3421_v15 = vpop.f32.mrb[19].mxu1 }
 0x444   :  { %v3422_v38 = vadd.f32 %v3421_v15, %v3420_v14 }
 0x446   :  { %v2945_v46 = vadd.f32 %v3422_v38, %v7364_v27  ;;  %v3423_v6 = vpop.f32.mrb[20].mxu1 }
 0x447   :  { %v3424_v8 = vpop.f32.mrb[21].mxu1 }
 0x448   :  { %v3090_v23 = vadd.f32 %v7272_v10, %v2945_v46  ;;  %v3425_v0 = vadd.f32 %v3424_v8, %v3423_v6  ;;  %v3736_v6 = vld [vmem:[%s7474_s0 + $0x38] sm:$0xff] }
 0x44a   :  { %v3168_v7 = vadd.f32 %v3729_v9, %v3090_v23  ;;  %v2950_v56 = vadd.f32 %v3425_v0, %v7364_v27  ;;  %v3426_v52 = vpop.f32.mrb[22].mxu1 }
 0x44b   :  { %v3427_v49 = vpop.f32.mrb[23].mxu1 }
 0x44c   :  { %3184 = vst.msk [vmem:[#allocation3] sm:$0xff] %vm8767_vm8, %v3168_v7  ;;  %v3095_v62 = vadd.f32 %v7269_v63, %v2950_v56  ;;  %v3428_v12 = vadd.f32 %v3427_v49, %v3426_v52  ;;  %v3737_v56 = vld [vmem:[%s7474_s0 + $0x40] sm:$0xff] }
 0x44e   :  { %v3169_v10 = vadd.f32 %v3730_v31, %v3095_v62  ;;  %v2955_v11 = vadd.f32 %v3428_v12, %v7364_v27  ;;  %v3429_v50 = vpop.f32.mrb[24].mxu1 }
 0x44f   :  { %v3430_v39 = vpop.f32.mrb[25].mxu1 }
 0x450   :  { %3185 = vst.msk [vmem:[#allocation3 + $0x8] sm:$0xff] %vm8768_vm5, %v3169_v10  ;;  %v3100_v1 = vadd.f32 %v7279_v34, %v2955_v11  ;;  %v3431_v44 = vadd.f32 %v3430_v39, %v3429_v50  ;;  %v3738_v10 = vld [vmem:[%s7474_s0 + $0x48] sm:$0xff] }
 0x452   :  { %v3170_v63 = vadd.f32 %v3731_v54, %v3100_v1  ;;  %v2960_v51 = vadd.f32 %v3431_v44, %v7364_v27  ;;  %v3432_v30 = vpop.f32.mrb[26].mxu1  ;;  %v3739_v54 = vld [vmem:[%s7474_s0 + $0x50] sm:$0xff] }
 0x453   :  { %v3433_v21 = vpop.f32.mrb[27].mxu1 }
 0x454   :  { %3186 = vst.msk [vmem:[#allocation3 + $0x10] sm:$0xff] %vm8769_vm7, %v3170_v63  ;;  %v3105_v22 = vadd.f32 %v7276_v60, %v2960_v51  ;;  %v3434_v61 = vadd.f32 %v3433_v21, %v3432_v30 }
 0x456   :  { %v3171_v34 = vadd.f32 %v3732_v45, %v3105_v22  ;;  %v2965_v33 = vadd.f32 %v3434_v61, %v7364_v27  ;;  %v3435_v4 = vpop.f32.mrb[28].mxu1  ;;  %v3740_v61 = vld [vmem:[%s7474_s0 + $0x58] sm:$0xff] }
 0x457   :  { %v3436_v32 = vpop.f32.mrb[29].mxu1 }
 0x458   :  { %3187 = vst.msk [vmem:[#allocation3 + $0x18] sm:$0xff] %vm8770_vm6, %v3171_v34  ;;  %v3110_v2 = vadd.f32 %v7286_v47, %v2965_v33  ;;  %v3437_v25 = vadd.f32 %v3436_v32, %v3435_v4 }
 0x45a   :  { %v3172_v60 = vadd.f32 %v3733_v58, %v3110_v2  ;;  %v2970_v55 = vadd.f32 %v3437_v25, %v7364_v27  ;;  %v3438_v13 = vpop.f32.mrb[30].mxu1  ;;  %v3741_v2 = vld [vmem:[%s7474_s0 + $0x60] sm:$0xff] }
 0x45b   :  { %v3439_v36 = vpop.f32.mrb[31].mxu1 }
 0x45c   :  { %3188 = vst.msk [vmem:[#allocation3 + $0x20] sm:$0xff] %vm8771_vm1, %v3172_v60  ;;  %v3115_v48 = vadd.f32 %v7283_v57, %v2970_v55  ;;  %v3440_v28 = vadd.f32 %v3439_v36, %v3438_v13  ;;  %v3742_v60 = vld [vmem:[%s7474_s0 + $0x68] sm:$0xff] }
 0x45e   :  { %v3173_v47 = vadd.f32 %v3734_v3, %v3115_v48  ;;  %v2975_v20 = vadd.f32 %v3440_v28, %v7364_v27  ;;  %v3441_v43 = vpop.f32.mrb[32].mxu1  ;;  %v3743_v3 = vld [vmem:[%s7474_s0 + $0x70] sm:$0xff] }
 0x45f   :  { %v3442_v35 = vpop.f32.mrb[33].mxu1 }
 0x460   :  { %3189 = vst.msk [vmem:[#allocation3 + $0x28] sm:$0xff] %vm8772_vm9, %v3173_v47  ;;  %v3120_v18 = vadd.f32 %v7342_v40, %v2975_v20  ;;  %v3443_v16 = vadd.f32 %v3442_v35, %v3441_v43 }
 0x462   :  { %v3174_v57 = vadd.f32 %v3735_v53, %v3120_v18  ;;  %v2980_v14 = vadd.f32 %v3443_v16, %v7364_v27  ;;  %v3444_v41 = vpop.f32.mrb[34].mxu1 }
 0x463   :  { %v3445_v15 = vpop.f32.mrb[35].mxu1 }
 0x464   :  { %3190 = vst.msk [vmem:[#allocation3 + $0x30] sm:$0xff] %vm8773_vm4, %v3174_v57  ;;  %v3125_v38 = vadd.f32 %v7340_v19, %v2980_v14  ;;  %v3446_v46 = vadd.f32 %v3445_v15, %v3444_v41 }
 0x466   :  { %v3175_v40 = vadd.f32 %v3736_v6, %v3125_v38  ;;  %v2985_v8 = vadd.f32 %v3446_v46, %v7364_v27  ;;  %v3447_v23 = vpop.f32.mrb[36].mxu1 }
 0x467   :  { %v3448_v0 = vpop.f32.mrb[37].mxu1 }
 0x468   :  { %3191 = vst.msk [vmem:[#allocation3 + $0x38] sm:$0xff] %vm8774_vm14, %v3175_v40  ;;  %v3130_v9 = vadd.f32 %v7346_v26, %v2985_v8  ;;  %v3449_v7 = vadd.f32 %v3448_v0, %v3447_v23 }
 0x46a   :  { %v3176_v19 = vadd.f32 %v3737_v56, %v3130_v9  ;;  %v2990_v52 = vadd.f32 %v3449_v7, %v7364_v27  ;;  %v3450_v49 = vpop.f32.mrb[38].mxu1 }
 0x46b   :  { %v3451_v62 = vpop.f32.mrb[39].mxu1 }
 0x46c   :  { %3192 = vst.msk [vmem:[#allocation3 + $0x40] sm:$0xff] %vm8775_vm2, %v3176_v19  ;;  %v3135_v12 = vadd.f32 %v7344_v29, %v2990_v52  ;;  %v3452_v31 = vadd.f32 %v3451_v62, %v3450_v49 }
 0x46e   :  { %v3177_v26 = vadd.f32 %v3738_v10, %v3135_v12  ;;  %v2995_v11 = vadd.f32 %v3452_v31, %v7364_v27  ;;  %v3453_v50 = vpop.f32.mrb[40].mxu1 }
 0x46f   :  { %v3454_v39 = vpop.f32.mrb[41].mxu1 }
 0x470   :  { %3193 = vst.msk [vmem:[#allocation3 + $0x48] sm:$0xff] %vm8776_vm0, %v3177_v26  ;;  %v3140_v1 = vadd.f32 %v7350_v37, %v2995_v11  ;;  %v3455_v44 = vadd.f32 %v3454_v39, %v3453_v50 }
 0x472   :  { %v3178_v29 = vadd.f32 %v3739_v54, %v3140_v1  ;;  %v3000_v63 = vadd.f32 %v3455_v44, %v7364_v27  ;;  %v3456_v51 = vpop.f32.mrb[42].mxu1 }
 0x473   :  { %v3457_v30 = vpop.f32.mrb[43].mxu1 }
 0x474   :  { %3194 = vst.msk [vmem:[#allocation3 + $0x50] sm:$0xff] %vm8777_vm12, %v3178_v29  ;;  %v3145_v21 = vadd.f32 %v7348_v24, %v3000_v63  ;;  %v3458_v22 = vadd.f32 %v3457_v30, %v3456_v51 }
 0x476   :  { %v3179_v37 = vadd.f32 %v3740_v61, %v3145_v21  ;;  %v3005_v45 = vadd.f32 %v3458_v22, %v7364_v27  ;;  %v3459_v34 = vpop.f32.mrb[44].mxu1 }
 0x477   :  { %v3460_v4 = vpop.f32.mrb[45].mxu1 }
 0x478   :  { %3195 = vst.msk [vmem:[#allocation3 + $0x58] sm:$0xff] %vm8778_vm3, %v3179_v37  ;;  %v3150_v33 = vadd.f32 %v7354_v5, %v3005_v45  ;;  %v3461_v32 = vadd.f32 %v3460_v4, %v3459_v34 }
 0x47a   :  { %v3180_v24 = vadd.f32 %v3741_v2, %v3150_v33  ;;  %v3010_v25 = vadd.f32 %v3461_v32, %v7364_v27 }
 0x47c   :  { %3196 = vst.msk [vmem:[#allocation3 + $0x60] sm:$0xff] %vm8779_vm15, %v3180_v24  ;;  %v3155_v58 = vadd.f32 %v7352_v17, %v3010_v25 }
 0x47e   :  { %v3181_v55 = vadd.f32 %v3742_v60, %v3155_v58  ;;  %v3462_v13 = vpop.f32.mrb[46].mxu1 }
 0x47f   :  { %v3463_v5 = vpop.f32.mrb[47].mxu1 }
 0x480   :  { %3197 = vst.msk [vmem:[#allocation3 + $0x68] sm:$0xff] %vm8780_vm10, %v3181_v55  ;;  %v3464_v36 = vadd.f32 %v3463_v5, %v3462_v13 }
 0x482   :  { %v3015_v48 = vadd.f32 %v3464_v36, %v7364_v27 }
 0x484   :  { %v3160_v28 = vadd.f32 %v7358_v42, %v3015_v48  ;;  %v3744_v42 = vld [vmem:[%s7474_s0 + $0x78] sm:$0xff] }
 0x486   :  { %v3182_v47 = vadd.f32 %v3743_v3, %v3160_v28 }
 0x488   :  { %3198 = vst.msk [vmem:[#allocation3 + $0x70] sm:$0xff] %vm8781_vm13, %v3182_v47 }
 0x489   :  { %v3465_v17 = vpop.f32.mrb[48].mxu1 }
 0x48a   :  { %v3466_v20 = vpop.f32.mrb[49].mxu1 }
 0x48b   :  { %v3467_v43 = vadd.f32 %v3466_v20, %v3465_v17 }
 0x48d   :  { %v3020_v35 = vadd.f32 %v3467_v43, %v7364_v27 }
 0x48f   :  { %v3165_v18 = vadd.f32 %v7356_v59, %v3020_v35 }
 0x491   :  { %v3183_v16 = vadd.f32 %v3744_v42, %v3165_v18 }
 0x493   :  { %3199 = vst.msk [vmem:[#allocation3 + $0x78] sm:$0xff] %vm8782_vm11, %v3183_v16 }
 0x494   :  { %3756 = shalt.err (!%p3753_p4)
}
 0x495   :  { %s3757_s25 = scalar_lea.hbm %s7479_s5, 2048 }
 0x496   :  { %p3758_p5 = scmp.ne.s32.totalorder %s7479_s5, %s3757_s25  ;;  %p3761_p6 = scmp.lt.u32.totalorder %s3757_s25, %s7479_s5 }
 0x498   :  { %p3763_p7 = pnand %p3761_p6, %p3758_p5 }
 0x49a   :  { %3766 = shalt.err (!%p3763_p7)
}
 0x49b   :  { %s3776_s30 = smov 128   ;;  %s3777_s6 = smov 8  }
 0x49c   :  { %3211 = dma.vmem_to_hbm [thread:$0]  %s3206_s2, 2048, %s7479_s5, [#allocation4], %s3776_s30, %s3776_s30, %s3777_s6  }
 0x49d   :  { %3767 = dma.done.wait [#allocation4], 2048  }
 0x49e   :  { %3768 = vsyncadd [#allocation4], 4294965248 }
 0x49f   :  { %3215 = vsyncpa [#allocation4], 1 }

</bundles_post_ra>
